<compile_context>
chip_gen: v5e
topology: v5e:2x2
jax: 0.10.0
libtpu: 0.0.40
codegen_flags: <defaults>
</compile_context>

<pallas_src>
import jax
import jax.numpy as jnp
from jax.experimental import pallas as pl
from jax.experimental.pallas import tpu as pltpu

NEG_SLOPE = 0.2


def _round_up(x, m):
    return ((x + m - 1) // m) * m


def _leaky_relu(x):
    return jnp.where(x >= 0, x, NEG_SLOPE * x)


def decoder_kernel(z_ref,
                   w0_ref, b0_ref,
                   w1_ref, b1_ref,
                   w2_ref, b2_ref,
                   w3_ref, b3_ref,
                   o_ref):
    def layer(h_bf16, w_ref, b_ref, *, keep_bf16):
        # bf16 MXU operands, f32 accumulation; bias + LeakyReLU in f32 (VPU).
        y = jnp.dot(h_bf16, w_ref[...], preferred_element_type=jnp.float32)
        y = _leaky_relu(y + b_ref[...])
        # Hidden activations go back to bf16 (halves VMEM spill traffic and is
        # what the next matmul wants anyway); final layer stays f32 for the store.
        return y.astype(jnp.bfloat16) if keep_bf16 else y

    h = z_ref[...]                                   # already bf16 (wrapper cast)
    h = layer(h, w0_ref, b0_ref, keep_bf16=True)
    h = layer(h, w1_ref, b1_ref, keep_bf16=True)
    h = layer(h, w2_ref, b2_ref, keep_bf16=True)
    h = layer(h, w3_ref, b3_ref, keep_bf16=False)
    o_ref[...] = h.astype(o_ref.dtype)


def decoder_forward(z, params, *, block_b=None, out_dtype=jnp.float32):
    """z: (B, latent_dim) f32/bf16. params: list of (W (in,out) f32, b (1,out) f32).

    out_dtype=jnp.bfloat16 halves the padded-output HBM writeback (useful on
    v5e); default f32 matches the PyTorch module.
    """
    B, latent = z.shape
    out_dim = params[-1][0].shape[1]

    # ---- batch tile selection.
    # Overhead-bound kernel -> big tiles; but keep >=2 grid steps when the batch
    # allows so v7x's two TensorCores both get work ("parallel" grid axis).
    B8 = _round_up(B, 8)
    if block_b is None:
        target = max(256, _round_up(pl.cdiv(B8, 2), 256))
        block_b = min(1024, target, B8)
    assert block_b % 8 == 0, "block_b must be a multiple of 8 (sublane tiling)"
    B_pad = _round_up(B, block_b)

    # ---- stream z as bf16 (MXU sees bf16 anyway; halves the per-step input DMA).
    z = z.astype(jnp.bfloat16)
    if B_pad != B:
        z = jnp.pad(z, ((0, B_pad - B), (0, 0)))

    # ---- lane-dense output: pad final out-features to a multiple of 128
    # (unmasked vst instead of masked partial stores). Padding cols are exact 0.
    out_pad = _round_up(out_dim, 128)

    # ---- weights -> bf16 (cast once); biases stay f32.
    flat = []
    for li, (w, b) in enumerate(params):
        if li == len(params) - 1 and out_pad != out_dim:
            w = jnp.pad(w, ((0, 0), (0, out_pad - out_dim)))
            b = jnp.pad(b, ((0, 0), (0, out_pad - out_dim)))
        flat.append(w.astype(jnp.bfloat16))
        flat.append(b.astype(jnp.float32))

    grid = (B_pad // block_b,)

    in_specs = [pl.BlockSpec((block_b, latent), lambda i: (i, 0))]
    for t in flat:
        # Grid-invariant blocks: DMA'd once, re-copies elided across grid steps.
        in_specs.append(pl.BlockSpec(t.shape, lambda i: (0, 0)))
    out_specs = pl.BlockSpec((block_b, out_pad), lambda i: (i, 0))

    dims = [latent] + [w.shape[1] for (w, _) in params[:-1]] + [out_pad]
    flops = 2 * B_pad * sum(dims[i] * dims[i + 1] for i in range(len(dims) - 1))
    out_itemsize = jnp.dtype(out_dtype).itemsize
    bytes_accessed = (sum(int(t.size) * t.dtype.itemsize for t in flat)
                      + B_pad * latent * 2
                      + B_pad * out_pad * out_itemsize)

    out = pl.pallas_call(
        decoder_kernel,
        out_shape=jax.ShapeDtypeStruct((B_pad, out_pad), out_dtype),
        grid_spec=pltpu.PrefetchScalarGridSpec(
            num_scalar_prefetch=0,
            grid=grid,
            in_specs=in_specs,
            out_specs=out_specs,
        ),
        compiler_params=pltpu.CompilerParams(
            dimension_semantics=("parallel",),
            # v5e's default scoped VMEM is 16 MiB; 32 MiB gives headroom for
            # block_b up to 1024 and matches the v6e/v7x defaults.
            vmem_limit_bytes=32 * 1024 * 1024,
        ),
        cost_estimate=pl.CostEstimate(
            flops=flops, transcendentals=0, bytes_accessed=bytes_accessed),
    )(z, *flat)

    return out[:B, :out_dim]


def init_decoder_params(key, latent_dim, output_dim):
    """Deterministic synthetic init; layer sizes match nb_hidden=2, 'complex'."""
    dims = [latent_dim, 64, 256, 512, output_dim]
    params = []
    for i in range(len(dims) - 1):
        key, kw, kb = jax.random.split(key, 3)
        bound = 1.0 / (dims[i] ** 0.5)
        w = jax.random.uniform(kw, (dims[i], dims[i + 1]),
                               minval=-bound, maxval=bound, dtype=jnp.float32)
        b = jax.random.uniform(kb, (1, dims[i + 1]),
                               minval=-bound, maxval=bound, dtype=jnp.float32)
        params.append((w, b))
    return params


def decoder_reference_bf16(z, params):
    """Mimics the kernel's numerics exactly: bf16 inputs/weights/hidden
    activations, f32 accumulation + bias + LeakyReLU (tight check)."""
    h = z.astype(jnp.bfloat16)
    n = len(params)
    for li, (w, b) in enumerate(params):
        y = jnp.dot(h, w.astype(jnp.bfloat16),
                    preferred_element_type=jnp.float32) + b
        y = jnp.where(y >= 0, y, NEG_SLOPE * y)
        h = y.astype(jnp.bfloat16) if li < n - 1 else y
    return h


def decoder_reference_f32(z, params):
    h = z
    for w, b in params:
        y = h @ w + b
        h = jnp.where(y >= 0, y, NEG_SLOPE * y)
    return h


if __name__ == "__main__":
    key = jax.random.PRNGKey(0)
    k_in, k_params = jax.random.split(key)

    batch = 512        # default tiling -> block_b=256, grid=(2,) (2 TCs on v7x)
    latent_dim = 8
    output_dim = 16

    z = jax.random.normal(k_in, (batch, latent_dim), dtype=jnp.float32)
    params = init_decoder_params(k_params, latent_dim, output_dim)

    out = decoder_forward(z, params)
    out = jax.block_until_ready(out)
    assert out.shape == (batch, output_dim)

    ref = decoder_reference_bf16(z, params)
    assert jnp.allclose(out, ref, atol=1e-3, rtol=1e-3), (
        "mismatch vs bf16-matched reference")

    ref32 = decoder_reference_f32(z, params)
    assert float(jnp.max(jnp.abs(out - ref32))) < 1e-1, (
        "mismatch vs f32 reference beyond bf16 tolerance")

    print("KERNEL_OK")
</pallas_src>

<mosaic_0001>
module attributes {stable_mosaic.version = 11 : i64} {
  func.func @decoder_kernel(%arg0: i32, %arg1: memref<256x8xbf16, #tpu.memory_space<vmem>>, %arg2: memref<8x64xbf16, #tpu.memory_space<vmem>>, %arg3: memref<1x64xf32, #tpu.memory_space<vmem>>, %arg4: memref<64x256xbf16, #tpu.memory_space<vmem>>, %arg5: memref<1x256xf32, #tpu.memory_space<vmem>>, %arg6: memref<256x512xbf16, #tpu.memory_space<vmem>>, %arg7: memref<1x512xf32, #tpu.memory_space<vmem>>, %arg8: memref<512x128xbf16, #tpu.memory_space<vmem>>, %arg9: memref<1x128xf32, #tpu.memory_space<vmem>>, %arg10: memref<256x128xf32, #tpu.memory_space<vmem>>) attributes {dimension_semantics = [#tpu.dimension_semantics<parallel>], iteration_bounds = array<i64: 2>, scalar_prefetch = 0 : i64, scratch_operands = 0 : i64, tpu.core_type = #tpu.core_type<tc>, window_params = [{transform_indices = @transform_0, window_bounds = array<i64: 256, 8>}, {pipeline_mode = #tpu.pipeline_mode<synchronous>, transform_indices = @transform_1, window_bounds = array<i64: 8, 64>}, {pipeline_mode = #tpu.pipeline_mode<synchronous>, transform_indices = @transform_2, window_bounds = array<i64: 1, 64>}, {pipeline_mode = #tpu.pipeline_mode<synchronous>, transform_indices = @transform_3, window_bounds = array<i64: 64, 256>}, {pipeline_mode = #tpu.pipeline_mode<synchronous>, transform_indices = @transform_4, window_bounds = array<i64: 1, 256>}, {pipeline_mode = #tpu.pipeline_mode<synchronous>, transform_indices = @transform_5, window_bounds = array<i64: 256, 512>}, {pipeline_mode = #tpu.pipeline_mode<synchronous>, transform_indices = @transform_6, window_bounds = array<i64: 1, 512>}, {pipeline_mode = #tpu.pipeline_mode<synchronous>, transform_indices = @transform_7, window_bounds = array<i64: 512, 128>}, {pipeline_mode = #tpu.pipeline_mode<synchronous>, transform_indices = @transform_8, window_bounds = array<i64: 1, 128>}, {transform_indices = @transform_9, window_bounds = array<i64: 256, 128>}]} {
    %c0 = arith.constant 0 : index
    %c0_0 = arith.constant 0 : index
    %0 = vector.load %arg1[%c0, %c0_0] : memref<256x8xbf16, #tpu.memory_space<vmem>>, vector<256x8xbf16>
    %c0_1 = arith.constant 0 : index
    %c0_2 = arith.constant 0 : index
    %1 = vector.load %arg2[%c0_1, %c0_2] : memref<8x64xbf16, #tpu.memory_space<vmem>>, vector<8x64xbf16>
    %cst = arith.constant dense<0.000000e+00> : vector<256x64xf32>
    %2 = tpu.matmul %0, %1, %cst {dimension_numbers = #tpu.dot_dimension_numbers<[1], [0], [0], [1], [0, 0, 1, 1], [], []>} : vector<256x8xbf16>, vector<8x64xbf16>, vector<256x64xf32> -> vector<256x64xf32>
    %c0_3 = arith.constant 0 : index
    %c0_4 = arith.constant 0 : index
    %3 = vector.load %arg3[%c0_3, %c0_4] : memref<1x64xf32, #tpu.memory_space<vmem>>, vector<1x64xf32>
    %4 = vector.broadcast %3 : vector<1x64xf32> to vector<256x64xf32>
    %5 = arith.addf %2, %4 : vector<256x64xf32>
    %cst_5 = arith.constant 0.000000e+00 : f32
    %6 = vector.broadcast %cst_5 : f32 to vector<256x64xf32>
    %7 = arith.cmpf oge, %5, %6 : vector<256x64xf32>
    %cst_6 = arith.constant 2.000000e-01 : f32
    %8 = vector.broadcast %cst_6 : f32 to vector<256x64xf32>
    %9 = arith.mulf %8, %5 : vector<256x64xf32>
    %10 = arith.select %7, %5, %9 : vector<256x64xi1>, vector<256x64xf32>
    %11 = arith.truncf %10 : vector<256x64xf32> to vector<256x64xbf16>
    %c0_7 = arith.constant 0 : index
    %c0_8 = arith.constant 0 : index
    %12 = vector.load %arg4[%c0_7, %c0_8] : memref<64x256xbf16, #tpu.memory_space<vmem>>, vector<64x256xbf16>
    %cst_9 = arith.constant dense<0.000000e+00> : vector<256x256xf32>
    %13 = tpu.matmul %11, %12, %cst_9 {dimension_numbers = #tpu.dot_dimension_numbers<[1], [0], [0], [1], [0, 0, 1, 1], [], []>} : vector<256x64xbf16>, vector<64x256xbf16>, vector<256x256xf32> -> vector<256x256xf32>
    %c0_10 = arith.constant 0 : index
    %c0_11 = arith.constant 0 : index
    %14 = vector.load %arg5[%c0_10, %c0_11] : memref<1x256xf32, #tpu.memory_space<vmem>>, vector<1x256xf32>
    %15 = vector.broadcast %14 : vector<1x256xf32> to vector<256x256xf32>
    %16 = arith.addf %13, %15 : vector<256x256xf32>
    %cst_12 = arith.constant 0.000000e+00 : f32
    %17 = vector.broadcast %cst_12 : f32 to vector<256x256xf32>
    %18 = arith.cmpf oge, %16, %17 : vector<256x256xf32>
    %cst_13 = arith.constant 2.000000e-01 : f32
    %19 = vector.broadcast %cst_13 : f32 to vector<256x256xf32>
    %20 = arith.mulf %19, %16 : vector<256x256xf32>
    %21 = arith.select %18, %16, %20 : vector<256x256xi1>, vector<256x256xf32>
    %22 = arith.truncf %21 : vector<256x256xf32> to vector<256x256xbf16>
    %c0_14 = arith.constant 0 : index
    %c0_15 = arith.constant 0 : index
    %23 = vector.load %arg6[%c0_14, %c0_15] : memref<256x512xbf16, #tpu.memory_space<vmem>>, vector<256x512xbf16>
    %cst_16 = arith.constant dense<0.000000e+00> : vector<256x512xf32>
    %24 = tpu.matmul %22, %23, %cst_16 {dimension_numbers = #tpu.dot_dimension_numbers<[1], [0], [0], [1], [0, 0, 1, 1], [], []>} : vector<256x256xbf16>, vector<256x512xbf16>, vector<256x512xf32> -> vector<256x512xf32>
    %c0_17 = arith.constant 0 : index
    %c0_18 = arith.constant 0 : index
    %25 = vector.load %arg7[%c0_17, %c0_18] : memref<1x512xf32, #tpu.memory_space<vmem>>, vector<1x512xf32>
    %26 = vector.broadcast %25 : vector<1x512xf32> to vector<256x512xf32>
    %27 = arith.addf %24, %26 : vector<256x512xf32>
    %cst_19 = arith.constant 0.000000e+00 : f32
    %28 = vector.broadcast %cst_19 : f32 to vector<256x512xf32>
    %29 = arith.cmpf oge, %27, %28 : vector<256x512xf32>
    %cst_20 = arith.constant 2.000000e-01 : f32
    %30 = vector.broadcast %cst_20 : f32 to vector<256x512xf32>
    %31 = arith.mulf %30, %27 : vector<256x512xf32>
    %32 = arith.select %29, %27, %31 : vector<256x512xi1>, vector<256x512xf32>
    %33 = arith.truncf %32 : vector<256x512xf32> to vector<256x512xbf16>
    %c0_21 = arith.constant 0 : index
    %c0_22 = arith.constant 0 : index
    %34 = vector.load %arg8[%c0_21, %c0_22] : memref<512x128xbf16, #tpu.memory_space<vmem>>, vector<512x128xbf16>
    %cst_23 = arith.constant dense<0.000000e+00> : vector<256x128xf32>
    %35 = tpu.matmul %33, %34, %cst_23 {dimension_numbers = #tpu.dot_dimension_numbers<[1], [0], [0], [1], [0, 0, 1, 1], [], []>} : vector<256x512xbf16>, vector<512x128xbf16>, vector<256x128xf32> -> vector<256x128xf32>
    %c0_24 = arith.constant 0 : index
    %c0_25 = arith.constant 0 : index
    %36 = vector.load %arg9[%c0_24, %c0_25] : memref<1x128xf32, #tpu.memory_space<vmem>>, vector<1x128xf32>
    %37 = vector.broadcast %36 : vector<1x128xf32> to vector<256x128xf32>
    %38 = arith.addf %35, %37 : vector<256x128xf32>
    %cst_26 = arith.constant 0.000000e+00 : f32
    %39 = vector.broadcast %cst_26 : f32 to vector<256x128xf32>
    %40 = arith.cmpf oge, %38, %39 : vector<256x128xf32>
    %cst_27 = arith.constant 2.000000e-01 : f32
    %41 = vector.broadcast %cst_27 : f32 to vector<256x128xf32>
    %42 = arith.mulf %41, %38 : vector<256x128xf32>
    %43 = arith.select %40, %38, %42 : vector<256x128xi1>, vector<256x128xf32>
    %c0_28 = arith.constant 0 : index
    %c0_29 = arith.constant 0 : index
    %44 = vector.load %arg10[%c0_28, %c0_29] : memref<256x128xf32, #tpu.memory_space<vmem>>, vector<256x128xf32>
    tpu.vector_store %arg10[%c0_28, %c0_29], %43 {strides = array<i32>} : memref<256x128xf32, #tpu.memory_space<vmem>>, vector<256x128xf32>,
    return
  }
  func.func @transform_0(%arg0: i32) -> (i32, i32) {
    %c0_i32 = arith.constant 0 : i32
    %c0_i32_0 = arith.constant 0 : i32
    return %arg0, %c0_i32 : i32, i32
  }
  func.func @transform_1(%arg0: i32) -> (i32, i32) {
    %c0_i32 = arith.constant 0 : i32
    %c0_i32_0 = arith.constant 0 : i32
    %c0_i32_1 = arith.constant 0 : i32
    return %c0_i32, %c0_i32_0 : i32, i32
  }
  func.func @transform_2(%arg0: i32) -> (i32, i32) {
    %c0_i32 = arith.constant 0 : i32
    %c0_i32_0 = arith.constant 0 : i32
    %c0_i32_1 = arith.constant 0 : i32
    return %c0_i32, %c0_i32_0 : i32, i32
  }
  func.func @transform_3(%arg0: i32) -> (i32, i32) {
    %c0_i32 = arith.constant 0 : i32
    %c0_i32_0 = arith.constant 0 : i32
    %c0_i32_1 = arith.constant 0 : i32
    return %c0_i32, %c0_i32_0 : i32, i32
  }
  func.func @transform_4(%arg0: i32) -> (i32, i32) {
    %c0_i32 = arith.constant 0 : i32
    %c0_i32_0 = arith.constant 0 : i32
    %c0_i32_1 = arith.constant 0 : i32
    return %c0_i32, %c0_i32_0 : i32, i32
  }
  func.func @transform_5(%arg0: i32) -> (i32, i32) {
    %c0_i32 = arith.constant 0 : i32
    %c0_i32_0 = arith.constant 0 : i32
    %c0_i32_1 = arith.constant 0 : i32
    return %c0_i32, %c0_i32_0 : i32, i32
  }
  func.func @transform_6(%arg0: i32) -> (i32, i32) {
    %c0_i32 = arith.constant 0 : i32
    %c0_i32_0 = arith.constant 0 : i32
    %c0_i32_1 = arith.constant 0 : i32
    return %c0_i32, %c0_i32_0 : i32, i32
  }
  func.func @transform_7(%arg0: i32) -> (i32, i32) {
    %c0_i32 = arith.constant 0 : i32
    %c0_i32_0 = arith.constant 0 : i32
    %c0_i32_1 = arith.constant 0 : i32
    return %c0_i32, %c0_i32_0 : i32, i32
  }
  func.func @transform_8(%arg0: i32) -> (i32, i32) {
    %c0_i32 = arith.constant 0 : i32
    %c0_i32_0 = arith.constant 0 : i32
    %c0_i32_1 = arith.constant 0 : i32
    return %c0_i32, %c0_i32_0 : i32, i32
  }
  func.func @transform_9(%arg0: i32) -> (i32, i32) {
    %c0_i32 = arith.constant 0 : i32
    %c0_i32_0 = arith.constant 0 : i32
    return %arg0, %c0_i32 : i32, i32
  }
}

</mosaic_0001>

<bundles_post_ra>
// kernel: tpu_custom_call.1
= control target key start
LH: loop header
LB: loop body
LE: loop exit
PB: predicated region body
PF: predicated region fallthrough
CT: control target
= control target key end

     0   :  { %s6268_s0 = inlined_call_operand.vmem [shape: bf16[512,8], index: 0, kind: input, shape index: {}]   ;;  %s6269_s1 = inlined_call_operand.vmem [shape: bf16[8,64], index: 1, kind: input, shape index: {}]   ;;  %s6270_s2 = inlined_call_operand.vmem [shape: f32[1,64], index: 2, kind: input, shape index: {}]   ;;  %s6271_s3 = inlined_call_operand.hbm [shape: bf16[64,256], index: 3, kind: input, shape index: {}]   ;;  %s6272_s4 = inlined_call_operand.vmem [shape: f32[1,256], index: 4, kind: input, shape index: {}]   ;;  %s6273_s5 = inlined_call_operand.hbm [shape: bf16[256,512], index: 5, kind: input, shape index: {}]   ;;  %s6274_s6 = inlined_call_operand.vmem [shape: f32[1,512], index: 6, kind: input, shape index: {}]   ;;  %s6275_s7 = inlined_call_operand.vmem [shape: bf16[512,128], index: 7, kind: input, shape index: {}]   ;;  %s6276_s8 = inlined_call_operand.vmem [shape: f32[1,128], index: 8, kind: input, shape index: {}]   ;;  %s6277_s9 = inlined_call_operand.hbm [shape: f32[512,128], index: 9, kind: output, shape index: {}]  }
   0x1   :  { %6352 = sst [smem:[#allocation71_spill]] %s6271_s3 }
   0x2   :  { %14 = vsyncpa [#allocation3], 0 }
   0x3   :  { %15 = vsyncpa [#allocation6], 0 }
   0x4   :  { %16 = vsyncpa [#allocation4], 0 }
   0x5   :  { %18 = vsyncpa [#allocation4 + $0x1], 0  ;;  %s4576_s30 = smov 0   ;;  %s4578_s10 = smov 0  }
   0x6   :  { %s4580_s11 = smov 0   ;;  %s4582_s12 = smov 0  }
   0x7 LB: > { %s4597_s13 = sadd.s32 4294967295, %s4516_s12   ;;  %s3643_s14 = sadd.s32 4294967294, %s4516_s12   ;;  %s4516_s12 = sphi %s4582_s12, %s6530_s12   ;;  %s4512_s11 = sphi %s4580_s11, %s6529_s11   ;;  %s4508_s10 = sphi %s4578_s10, %s6528_s10   ;;  %s4504_s30 = sphi %s4576_s30, %s6527_s30  }
   0x8   : > { %s4601_s15 = sadd.s32 1, %s4516_s12   ;;  %s225_s16 = sadd.s32 1, %s4512_s11 }
   0x9   : > { %s222_s17 = ssub.s32 %s4516_s12, %s4601_s15  ;;  %p235_p0 = scmp.ne.s32.totalorder %s4512_s11, %s4508_s10 }
   0xa   : > { %p223_p1 = scmp.eq.s32.totalorder %s222_s17, 0  ;;  %p236_p2 = scmp.eq.s32.totalorder %s4597_s13, 1 }
   0xb   : > { %p241_p3 = scmp.ne.s32.totalorder %s4508_s10, %s4504_s30  ;;  %p242_p4 = scmp.eq.s32.totalorder %s3643_s14, 1 }
   0xc   : > { %s4612_s18 = scalar_select %p223_p1, %s4512_s11, %s225_s16  }
   0xd   : > { %p4614_p5 = por %p236_p2, %p235_p0  ;;  %p4618_p6 = por %p242_p4, %p241_p3 }
   0xe   : > { %p3644_p7 = scmp.ge.s32.totalorder %s4516_s12, 1  ;;  %p249_p8 = scmp.lt.s32.totalorder %s4516_s12, 3 }
   0xf   : > { %p4338_p9 = scmp.eq.s32.totalorder %s4597_s13, 0  ;;  %s6356_s3 = sld [smem:[#allocation71_spill]] }
  0x10   : > { %p4625_p10 = pnand %p3644_p7, %p249_p8  ;;  %s4518_s25 = smov [#allocation2]  }
  0x11   : > { %s268_s26 = sshll.u32 %s4518_s25, 4  ;;  %s283_s29 = sshll.u32 %s6273_s5, 4  ;;  %s269_s26 = int_to_ptr.vmem [resolvable:$true] %s268_s26  ;;  %s284_s29 = int_to_ptr.hbm [resolvable:$true] %s283_s29 }
  0x12   : > { %p4327_p11 = pneg %p4625_p10  ;;  %s4519_s14 = smov 128  }
  0x13   : > { %s4520_s16 = smov 8   ;;  %s4521_s17 = smov [#allocation5]  }
  0x14   : > { %p4328_p12 = pnand %p4338_p9, %p4327_p11  ;;  %s285_s22 = sshll.u32 %s4521_s17, 4  ;;  %s286_s22 = int_to_ptr.vmem [resolvable:$true] %s285_s22 }
  0x15   : > { %s266_s24 = sshll.u32 %s6356_s3, 4  ;;  %s4522_s23 = smov 256   ;;  %s267_s24 = int_to_ptr.hbm [resolvable:$true] %s266_s24 }
  0x16   : > { %4330 = dma.hbm_to_vmem [thread:$0]  (!%p4328_p12), %s267_s24, 1024, %s269_s26, [#allocation3], %s4519_s14, %s4519_s14, %s4520_s16  }
  0x17   : > { %s4523_s3 = smov 16   ;;  %319 = sbr.rel (%p4625_p10) target bundleno = 1406 (0x57e), region = 56 }
  0x18   : > { %4333 = dma.hbm_to_vmem [thread:$0]  (!%p4328_p12), %s284_s29, 8192, %s286_s22, [#allocation6], %s4522_s23, %s4522_s23, %s4523_s3  }
  0x1c   : > { %4491 = dma.done.wait (%p4338_p9), [#allocation3], 1024  }
  0x1d   : > { %4493 = vsyncadd (%p4338_p9), [#allocation3], 4294966272 }
  0x1e   : > { %4495 = dma.done.wait (%p4338_p9), [#allocation6], 8192  }
  0x1f   : > { %4497 = vsyncadd (%p4338_p9), [#allocation6], 4294959104  ;;  %s3652_s24 = sshll.u32 %s4597_s13, 5  ;;  %vm535_vm0 = vcmask 1043456   ;;  %v401_v0 = vld [vmem:[%s6269_s1] sm:$0xf] }
  0x20   : > { %p362_p13 = scmp.lt.s32.totalorder %s3652_s24, 63  ;;  %v537_v1 = vsel %vm535_vm0, %v401_v0, 0  ;;  %vm486_vm1 = vcmask 64512   ;;  %v3760_v8 = vld [vmem:[#allocation2 + $0x30] sm:$0xf]  ;;  %vm794_vm4 = vcmask 523264  }
  0x21   : > { %546 = vmatpush.bf16.msra.mxu0 %v537_v1  ;;  %4308 = vmatpush.bf16.msra.mxu3 %v537_v1  ;;  %v4210_v9 = vld [vmem:[#allocation2 + $0x34] sm:$0xf0]  ;;  %v4209_v10 = vld [vmem:[#allocation2 + $0x34] sm:$0xf]  ;;  %v3762_v13 = vld [vmem:[#allocation2 + $0x38] sm:$0xf0] }
  0x22   : > { %s6532_s24 = smov (!%p362_p13, %s3652_s24), 63  ;;  %v3761_v12 = vor.u32 %v4210_v9, %v3760_v8  ;;  %v4671_v14 = vor.u32 %v4209_v10, %v3762_v13  ;;  %v3752_v15 = vld [vmem:[#allocation2 + $0x20] sm:$0xf]  ;;  %v4208_v16 = vld [vmem:[#allocation2 + $0x24] sm:$0xf0]  ;;  %s358_s25 = sand.u32 1, %s4508_s10  }
  0x23   : > { %s3653_s3 = sshll.u32 %s6532_s24, 2  ;;  %v4207_v17 = vld [vmem:[#allocation2 + $0x24] sm:$0xf]  ;;  %v3753_v18 = vor.u32 %v4208_v16, %v3752_v15  ;;  %v3754_v19 = vld [vmem:[#allocation2 + $0x28] sm:$0xf0]  ;;  %s4307_s28 = sshll.u32 %s4597_s13, 8 }
  0x24   : > { %s4653_s26 = scalar_lea.vmem %s6268_s0, %s3653_s3  ;;  %847 = vmatpush.bf16.msra.mxu1 %v3761_v12  ;;  %936 = vmatpush.bf16.msra.mxu2 %v4671_v14  ;;  %v4675_v20 = vor.u32 %v4207_v17, %v3754_v19  ;;  %v3744_v21 = vld [vmem:[#allocation2 + $0x10] sm:$0xf]  ;;  %v4206_v22 = vld [vmem:[#allocation2 + $0x14] sm:$0xf0]  ;;  %v4205_v23 = vld [vmem:[#allocation2 + $0x14] sm:$0xf]  ;;  %s3555_s16 = scalar_lea.hbm %s6277_s9, %s4307_s28 }
  0x25   : > { %v4187_v2 = vld [vmem:[%s4653_s26] sm:$0xff]  ;;  %v4188_v3 = vld [vmem:[%s4653_s26 + $0x8] sm:$0xff]  ;;  %v4189_v4 = vld [vmem:[%s4653_s26 + $0x10] sm:$0xff]  ;;  %4309 = vmatpush.bf16.msrb.mxu3 %v3761_v12  ;;  %v3745_v24 = vor.u32 %v4206_v22, %v3744_v21  ;;  %s3558_s13 = sshll.u32 %s3555_s16, 4  ;;  %s3544_s22 = scalar_lea.sflag [#allocation4], %s358_s25  ;;  %s3559_s13 = int_to_ptr.hbm [resolvable:$true] %s3558_s13 }
  0x26   : > { %3718 = vmatmul.msk.bf16.vlgmr.msra.gmra.mxu0 %vm486_vm1, %v4187_v2  ;;  %v4190_v5 = vld [vmem:[%s4653_s26 + $0x18] sm:$0xff]  ;;  %v4191_v6 = vld [vmem:[%s4653_s26 + $0x20] sm:$0xff]  ;;  %v4192_v7 = vld [vmem:[%s4653_s26 + $0x28] sm:$0xff]  ;;  %s4460_s23 = sshra.s32 %s3559_s13, 4  ;;  %s4461_s23 = int_to_ptr.hbm [resolvable:$true] %s4460_s23 }
  0x27   : > { %v4193_v11 = vld [vmem:[%s4653_s26 + $0x30] sm:$0xff]  ;;  %v3746_v25 = vld [vmem:[#allocation2 + $0x18] sm:$0xf0]  ;;  %v3736_v27 = vld [vmem:[#allocation2] sm:$0xf]  ;;  %s4462_s24 = scalar_lea.hbm %s4461_s23, 256  ;;  %p4467_p3 = scmp.lt.s32.totalorder %s4461_s23, %s6277_s9 }
  0x28   : > { %848 = vmatpush.bf16.msra.mxu1 %v3753_v18  ;;  %937 = vmatpush.bf16.msra.mxu2 %v4675_v20  ;;  %v3749_v26 = vor.u32 %v4205_v23, %v3746_v25  ;;  %v4204_v28 = vld [vmem:[#allocation2 + $0x4] sm:$0xf0]  ;;  %v4203_v29 = vld [vmem:[#allocation2 + $0x4] sm:$0xf]  ;;  %v3738_v31 = vld [vmem:[#allocation2 + $0x8] sm:$0xf0]  ;;  %p4463_p0 = scmp.ne.s32.totalorder %s4461_s23, %s4462_s24 }
  0x29   : > { %4310 = vmatpush.bf16.msrb.mxu3 %v3753_v18  ;;  %v3737_v30 = vor.u32 %v4204_v28, %v3736_v27  ;;  %v3741_v32 = vor.u32 %v4203_v29, %v3738_v31  ;;  %v4194_v33 = vld [vmem:[%s4653_s26 + $0x38] sm:$0xff]  ;;  %v4195_v34 = vld [vmem:[%s4653_s26 + $0x40] sm:$0xff]  ;;  %v4196_v45 = vld [vmem:[%s4653_s26 + $0x48] sm:$0xff] }
  0x2a   : > { %v4684_v36 = vld [vmem:[%s6270_s2] ss:$0 sm:$0xff]  ;;  %v4197_v55 = vld [vmem:[%s4653_s26 + $0x50] sm:$0xff]  ;;  %v4200_v57 = vld [vmem:[%s4653_s26 + $0x68] sm:$0xff]  ;;  %p4464_p1 = pnand %p4463_p0, %p4614_p5 }
  0x2b   : > { %3731 = vmatmul.msk.bf16.vlgmr.msra.gmra.mxu3 %vm486_vm1, %v4200_v57  ;;  %v4198_v2 = vld [vmem:[%s4653_s26 + $0x58] sm:$0xff]  ;;  %v4199_v13 = vld [vmem:[%s4653_s26 + $0x60] sm:$0xff]  ;;  %v4257_v57 = vld [vmem:[#allocation5 + $0x16c] sm:$0xf0] }
  0x2c   : > { %849 = vmatpush.bf16.msra.mxu1 %v3745_v24  ;;  %938 = vmatpush.bf16.msra.mxu2 %v3749_v26  ;;  %v4202_v15 = vld [vmem:[%s4653_s26 + $0x78] sm:$0xff]  ;;  %p4465_p2 = pneg %p4464_p1 }
  0x2d   : > { %4311 = vmatpush.bf16.msrb.mxu3 %v3745_v24 }
  0x30   : > { %850 = vmatpush.bf16.msra.mxu1 %v3737_v30  ;;  %939 = vmatpush.bf16.msra.mxu2 %v3741_v32 }
  0x31   : > { %4312 = vmatpush.bf16.msrb.mxu3 %v3737_v30 }
  0x35   : > { %4313 = vmatpush.bf16.msra.mxu3 %v4671_v14 }
  0x36   : > { %3719 = vmatmul.msk.bf16.gmra.mxu0 %vm486_vm1, %v4188_v3 }
  0x39   : > { %4314 = vmatpush.bf16.msra.mxu3 %v4675_v20 }
  0x3d   : > { %4315 = vmatpush.bf16.msra.mxu3 %v3749_v26 }
  0x41   : > { %4316 = vmatpush.bf16.msra.mxu3 %v3741_v32 }
  0x46   : > { %3720 = vmatmul.msk.bf16.gmra.mxu0 %vm486_vm1, %v4189_v4  ;;  %v4201_v4 = vld [vmem:[%s4653_s26 + $0x70] sm:$0xff]  ;;  %s3651_s26 = sshll.u32 %s358_s25, 8 }
  0x47   : > { %3732 = vmatmul.msk.bf16.gmra.mxu3 %vm486_vm1, %v4201_v4  ;;  %s6102_s27 = scalar_lea.vmem [#allocation7], %s3651_s26  ;;  %s4466_s26 = scalar_lea.hbm %s6277_s9, 512 }
  0x48   : > { %s3556_s17 = sshll.u32 %s6102_s27, 4  ;;  %p4468_p4 = scmp.lt.s32.totalorder %s4466_s26, %s4462_s24  ;;  %s3557_s17 = int_to_ptr.vmem [resolvable:$true] %s3556_s17 }
  0x4a   : > { %p4469_p7 = por %p4468_p4, %p4467_p3 }
  0x4c   : > { %p4470_p8 = pnand %p4469_p7, %p4465_p2 }
  0x56   : > { %3721 = vmatmul.msk.bf16.gmra.mxu0 %vm486_vm1, %v4190_v5 }
  0x57   : > { %3733 = vmatmul.msk.bf16.gmra.mxu3 %vm486_vm1, %v4202_v15  ;;  %v4245_v15 = vld [vmem:[#allocation5 + $0x10c] sm:$0xf0] }
  0x66   : > { %3722 = vmatmul.msk.bf16.gmra.mxu0 %vm486_vm1, %v4191_v6 }
  0x76   : > { %3723 = vmatmul.msk.bf16.gmra.mxu0 %vm486_vm1, %v4192_v7 }
  0x86   : > { %3724 = vmatmul.msk.bf16.gmra.mxu0 %vm486_vm1, %v4193_v11 }
  0x96   : > { %3725 = vmatmul.msk.bf16.gmra.mxu0 %vm486_vm1, %v4194_v33 }
  0xa3   : > { %v548_v35 = vpop.f32.mrf.mxu0 }
  0xa4   : > { %v549_v37 = vadd.f32 %v4684_v36, %v548_v35  ;;  %v4273_v35 = vld [vmem:[#allocation5 + $0x1ec] sm:$0xf0] }
  0xa6   : > { %3726 = vmatmul.msk.bf16.gmra.mxu0 %vm486_vm1, %v4195_v34  ;;  %v660_v39 = vmul.f32 0.2, %v549_v37  ;;  %vm628_vm2 = vcmp.ge.f32.partialorder %v549_v37, 0.0  ;;  %v4040_v34 = vld [vmem:[#allocation5 + $0x1e0] sm:$0xf] }
  0xa8   : > { %v692_v42 = vsel %vm628_vm2, %v549_v37, %v660_v39  ;;  %v4041_v37 = vor.u32 %v4273_v35, %v4040_v34  ;;  %v4024_v39 = vld [vmem:[#allocation5 + $0x1c0] sm:$0xf]  ;;  %v3898_v35 = vld [vmem:[#allocation5 + $0xd0] sm:$0xf0] }
  0xaa   : > { %1728 = vmatpush.bf16.msrb.mxu0 %v4041_v37 }
  0xab   : > { %v550_v38 = vpop.f32.mrf.mxu0 }
  0xac   : > { %v551_v40 = vadd.f32 %v4684_v36, %v550_v38 }
  0xae   : > { %vm629_vm3 = vcmp.ge.f32.partialorder %v551_v40, 0.0  ;;  %v661_v41 = vmul.f32 0.2, %v551_v40 }
  0xb0   : > { %v693_v43 = vsel %vm629_vm3, %v551_v40, %v661_v41  ;;  %v4269_v40 = vld [vmem:[#allocation5 + $0x1cc] sm:$0xf0] }
  0xb1   : > { %v724_v44 = vpack.c.bf16 %v693_v43, %v692_v42  ;;  %v4025_v41 = vor.u32 %v4269_v40, %v4024_v39 }
  0xb3   : > { %v553_v46 = vpop.f32.mrf.mxu0  ;;  %3766 = vmatmul.msk.bf16.vlgmr.msra.gmra.mxu1 %vm794_vm4, %v724_v44  ;;  %3782 = vmatmul.msk.bf16.vlgmr.msra.gmra.mxu2 %vm794_vm4, %v724_v44 }
  0xb4   : > { %v554_v47 = vadd.f32 %v4684_v36, %v553_v46  ;;  %1729 = vmatpush.bf16.msrb.mxu0 %v4025_v41  ;;  %v4265_v46 = vld [vmem:[#allocation5 + $0x1ac] sm:$0xf0]  ;;  %v4231_v41 = vld [vmem:[#allocation5 + $0xa4] sm:$0xf] }
  0xb6   : > { %3727 = vmatmul.msk.bf16.gmra.mxu0 %vm486_vm1, %v4196_v45  ;;  %v662_v49 = vmul.f32 0.2, %v554_v47  ;;  %vm630_vm5 = vcmp.ge.f32.partialorder %v554_v47, 0.0  ;;  %v4008_v45 = vld [vmem:[#allocation5 + $0x1a0] sm:$0xf] }
  0xb8   : > { %v694_v52 = vsel %vm630_vm5, %v554_v47, %v662_v49  ;;  %v4009_v47 = vor.u32 %v4265_v46, %v4008_v45 }
  0xba   : > { %1730 = vmatpush.bf16.msrb.mxu0 %v4009_v47 }
  0xbb   : > { %v555_v48 = vpop.f32.mrf.mxu0 }
  0xbc   : > { %v556_v50 = vadd.f32 %v4684_v36, %v555_v48 }
  0xbe   : > { %vm631_vm6 = vcmp.ge.f32.partialorder %v556_v50, 0.0  ;;  %v663_v51 = vmul.f32 0.2, %v556_v50 }
  0xc0   : > { %v695_v53 = vsel %vm631_vm6, %v556_v50, %v663_v51  ;;  %v3992_v51 = vld [vmem:[#allocation5 + $0x180] sm:$0xf] }
  0xc1   : > { %v725_v54 = vpack.c.bf16 %v695_v53, %v694_v52  ;;  %v4261_v52 = vld [vmem:[#allocation5 + $0x18c] sm:$0xf0] }
  0xc3   : > { %v558_v56 = vpop.f32.mrf.mxu0  ;;  %3767 = vmatmul.msk.bf16.gmra.mxu1 %vm794_vm4, %v725_v54  ;;  %3783 = vmatmul.msk.bf16.gmra.mxu2 %vm794_vm4, %v725_v54  ;;  %v3993_v54 = vor.u32 %v4261_v52, %v3992_v51  ;;  %v4227_v51 = vld [vmem:[#allocation5 + $0x84] sm:$0xf]  ;;  %v3866_v52 = vld [vmem:[#allocation5 + $0x90] sm:$0xf0] }
  0xc4   : > { %v559_v58 = vadd.f32 %v4684_v36, %v558_v56  ;;  %v3976_v56 = vld [vmem:[#allocation5 + $0x160] sm:$0xf] }
  0xc5   : > { %1731 = vmatpush.bf16.msrb.mxu0 %v3993_v54 }
  0xc6   : > { %3728 = vmatmul.msk.bf16.gmra.mxu0 %vm486_vm1, %v4197_v55  ;;  %v664_v60 = vmul.f32 0.2, %v559_v58  ;;  %vm632_vm7 = vcmp.ge.f32.partialorder %v559_v58, 0.0 }
  0xc8   : > { %v696_v63 = vsel %vm632_vm7, %v559_v58, %v664_v60  ;;  %v3977_v58 = vor.u32 %v4257_v57, %v3976_v56  ;;  %v3960_v60 = vld [vmem:[#allocation5 + $0x140] sm:$0xf]  ;;  %v3869_v56 = vor.u32 %v4227_v51, %v3866_v52  ;;  %v3994_v57 = vld [vmem:[#allocation5 + $0x190] sm:$0xf0] }
  0xca   : > { %1732 = vmatpush.bf16.msrb.mxu0 %v3977_v58 }
  0xcb   : > { %v560_v59 = vpop.f32.mrf.mxu0 }
  0xcc   : > { %v561_v61 = vadd.f32 %v4684_v36, %v560_v59 }
  0xce   : > { %vm633_vm8 = vcmp.ge.f32.partialorder %v561_v61, 0.0  ;;  %v665_v62 = vmul.f32 0.2, %v561_v61 }
  0xd0   : > { %v697_v0 = vsel %vm633_vm8, %v561_v61, %v665_v62  ;;  %v4253_v61 = vld [vmem:[#allocation5 + $0x14c] sm:$0xf0] }
  0xd1   : > { %v726_v1 = vpack.c.bf16 %v697_v0, %v696_v63  ;;  %v3961_v62 = vor.u32 %v4253_v61, %v3960_v60 }
  0xd3   : > { %v563_v3 = vpop.f32.mrf.mxu0  ;;  %3768 = vmatmul.msk.bf16.gmra.mxu1 %vm794_vm4, %v726_v1  ;;  %3784 = vmatmul.msk.bf16.gmra.mxu2 %vm794_vm4, %v726_v1 }
  0xd4   : > { %v564_v5 = vadd.f32 %v4684_v36, %v563_v3  ;;  %1733 = vmatpush.bf16.msrb.mxu0 %v3961_v62  ;;  %v4249_v3 = vld [vmem:[#allocation5 + $0x12c] sm:$0xf0] }
  0xd6   : > { %3729 = vmatmul.msk.bf16.gmra.mxu0 %vm486_vm1, %v4198_v2  ;;  %v666_v7 = vmul.f32 0.2, %v564_v5  ;;  %vm634_vm9 = vcmp.ge.f32.partialorder %v564_v5, 0.0  ;;  %v3944_v2 = vld [vmem:[#allocation5 + $0x120] sm:$0xf] }
  0xd7   : > { %v3945_v4 = vor.u32 %v4249_v3, %v3944_v2  ;;  %v4223_v2 = vld [vmem:[#allocation5 + $0x64] sm:$0xf]  ;;  %v3850_v3 = vld [vmem:[#allocation5 + $0x70] sm:$0xf0] }
  0xd8   : > { %v698_v10 = vsel %vm634_vm9, %v564_v5, %v666_v7  ;;  %v4042_v7 = vld [vmem:[#allocation5 + $0x1f0] sm:$0xf0] }
  0xd9   : > { %1734 = vmatpush.bf16.msrb.mxu0 %v3945_v4  ;;  %v4255_v4 = vld [vmem:[#allocation5 + $0x164] sm:$0xf] }
  0xdb   : > { %v565_v6 = vpop.f32.mrf.mxu0 }
  0xdc   : > { %v566_v8 = vadd.f32 %v4684_v36, %v565_v6  ;;  %v4271_v6 = vld [vmem:[#allocation5 + $0x1e4] sm:$0xf] }
  0xde   : > { %vm635_vm10 = vcmp.ge.f32.partialorder %v566_v8, 0.0  ;;  %v667_v9 = vmul.f32 0.2, %v566_v8 }
  0xe0   : > { %v699_v11 = vsel %vm635_vm10, %v566_v8, %v667_v9  ;;  %v4239_v8 = vld [vmem:[#allocation5 + $0xe4] sm:$0xf]  ;;  %v3914_v9 = vld [vmem:[#allocation5 + $0xf0] sm:$0xf0] }
  0xe1   : > { %v727_v12 = vpack.c.bf16 %v699_v11, %v698_v10 }
  0xe3   : > { %v568_v14 = vpop.f32.mrf.mxu0  ;;  %3769 = vmatmul.msk.bf16.gmra.mxu1 %vm794_vm4, %v727_v12  ;;  %3785 = vmatmul.msk.bf16.gmra.mxu2 %vm794_vm4, %v727_v12  ;;  %v4045_v12 = vor.u32 %v4271_v6, %v4042_v7 }
  0xe4   : > { %v569_v16 = vadd.f32 %v4684_v36, %v568_v14  ;;  %v3928_v14 = vld [vmem:[#allocation5 + $0x100] sm:$0xf] }
  0xe5   : > { %1906 = vmatpush.bf16.msrb.mxu2 %v4045_v12  ;;  %v4219_v12 = vld [vmem:[#allocation5 + $0x44] sm:$0xf] }
  0xe6   : > { %3730 = vmatmul.msk.bf16.gmra.mxu0 %vm486_vm1, %v4199_v13  ;;  %v668_v18 = vmul.f32 0.2, %v569_v16  ;;  %vm636_vm11 = vcmp.ge.f32.partialorder %v569_v16, 0.0  ;;  %v3917_v13 = vor.u32 %v4239_v8, %v3914_v9  ;;  %v3853_v9 = vor.u32 %v4223_v2, %v3850_v3 }
  0xe8   : > { %v700_v21 = vsel %vm636_vm11, %v569_v16, %v668_v18  ;;  %1817 = vmatpush.bf16.msrb.mxu1 %v3917_v13  ;;  %v3834_v13 = vld [vmem:[#allocation5 + $0x50] sm:$0xf0] }
  0xeb   : > { %v570_v17 = vpop.f32.mrf.mxu0 }
  0xec   : > { %v571_v19 = vadd.f32 %v4684_v36, %v570_v17  ;;  %v3929_v17 = vor.u32 %v4245_v15, %v3928_v14  ;;  %v4251_v14 = vld [vmem:[#allocation5 + $0x144] sm:$0xf] }
  0xee   : > { %vm637_vm12 = vcmp.ge.f32.partialorder %v571_v19, 0.0  ;;  %v669_v20 = vmul.f32 0.2, %v571_v19  ;;  %1735 = vmatpush.bf16.msrb.mxu0 %v3929_v17  ;;  %v3962_v17 = vld [vmem:[#allocation5 + $0x150] sm:$0xf0] }
  0xf0   : > { %v701_v22 = vsel %vm637_vm12, %v571_v19, %v669_v20 }
  0xf1   : > { %v728_v23 = vpack.c.bf16 %v701_v22, %v700_v21 }
  0xf3   : > { %v573_v24 = vpop.f32.mrf.mxu0  ;;  %3770 = vmatmul.msk.bf16.gmra.mxu1 %vm794_vm4, %v728_v23  ;;  %3786 = vmatmul.msk.bf16.gmra.mxu2 %vm794_vm4, %v728_v23 }
  0xf4   : > { %v574_v25 = vadd.f32 %v4684_v36, %v573_v24 }
  0xf6   : > { %v670_v27 = vmul.f32 0.2, %v574_v25  ;;  %vm638_vm13 = vcmp.ge.f32.partialorder %v574_v25, 0.0 }
  0xf8   : > { %v702_v30 = vsel %vm638_vm13, %v574_v25, %v670_v27 }
  0xfb   : > { %v575_v26 = vpop.f32.mrf.mxu0 }
  0xfc   : > { %v576_v28 = vadd.f32 %v4684_v36, %v575_v26 }
  0xfe   : > { %vm639_vm14 = vcmp.ge.f32.partialorder %v576_v28, 0.0  ;;  %v671_v29 = vmul.f32 0.2, %v576_v28 }
 0x100   : > { %v703_v31 = vsel %vm639_vm14, %v576_v28, %v671_v29  ;;  %v4267_v29 = vld [vmem:[#allocation5 + $0x1c4] sm:$0xf] }
 0x101   : > { %v729_v32 = vpack.c.bf16 %v703_v31, %v702_v30  ;;  %v4026_v30 = vld [vmem:[#allocation5 + $0x1d0] sm:$0xf0]  ;;  %v4235_v31 = vld [vmem:[#allocation5 + $0xc4] sm:$0xf] }
 0x102   : > { %v4029_v34 = vor.u32 %v4267_v29, %v4026_v30 }
 0x103   : > { %v578_v33 = vpop.f32.mrf.mxu0  ;;  %3771 = vmatmul.msk.bf16.gmra.mxu1 %vm794_vm4, %v729_v32  ;;  %3787 = vmatmul.msk.bf16.gmra.mxu2 %vm794_vm4, %v729_v32  ;;  %v4744_v32 = vld [vmem:[%s6272_s4] sm:$0x3] }
 0x104   : > { %v579_v38 = vadd.f32 %v4684_v36, %v578_v33  ;;  %v4747_v37 = vperm.slane %v4744_v32, 1  ;;  %1907 = vmatpush.bf16.msrb.mxu2 %v4029_v34  ;;  %v3802_v34 = vld [vmem:[#allocation5 + $0x10] sm:$0xf0] }
 0x106   : > { %v672_v43 = vmul.f32 0.2, %v579_v38  ;;  %vm640_vm15 = vcmp.ge.f32.partialorder %v579_v38, 0.0 }
 0x108   : > { %v704_v49 = vsel %vm640_vm15, %v579_v38, %v672_v43  ;;  %v3901_v38 = vor.u32 %v4235_v31, %v3898_v35  ;;  %v4263_v43 = vld [vmem:[#allocation5 + $0x1a4] sm:$0xf] }
 0x109   : > { %v4243_v35 = vld [vmem:[#allocation5 + $0x104] sm:$0xf] }
 0x10a   : > { %1818 = vmatpush.bf16.msrb.mxu1 %v3901_v38 }
 0x10b   : > { %v580_v42 = vpop.f32.mrf.mxu0 }
 0x10c   : > { %v581_v44 = vadd.f32 %v4684_v36, %v580_v42  ;;  %v3882_v42 = vld [vmem:[#allocation5 + $0xb0] sm:$0xf0] }
 0x10d   : > { %v3885_v47 = vor.u32 %v4231_v41, %v3882_v42  ;;  %v3930_v41 = vld [vmem:[#allocation5 + $0x110] sm:$0xf0] }
 0x10e   : > { %vm641_vm0 = vcmp.ge.f32.partialorder %v581_v44, 0.0  ;;  %v673_v48 = vmul.f32 0.2, %v581_v44 }
 0x10f   : > { %1819 = vmatpush.bf16.msrb.mxu1 %v3885_v47 }
 0x110   : > { %v705_v50 = vsel %vm641_vm0, %v581_v44, %v673_v48  ;;  %v4010_v44 = vld [vmem:[#allocation5 + $0x1b0] sm:$0xf0] }
 0x111   : > { %v730_v53 = vpack.c.bf16 %v705_v50, %v704_v49  ;;  %v4013_v50 = vor.u32 %v4263_v43, %v4010_v44 }
 0x113   : > { %v583_v55 = vpop.f32.mrf.mxu0  ;;  %3772 = vmatmul.msk.bf16.gmra.mxu1 %vm794_vm4, %v730_v53  ;;  %3788 = vmatmul.msk.bf16.gmra.mxu2 %vm794_vm4, %v730_v53  ;;  %v4259_v53 = vld [vmem:[#allocation5 + $0x184] sm:$0xf] }
 0x114   : > { %v584_v59 = vadd.f32 %v4684_v36, %v583_v55  ;;  %1908 = vmatpush.bf16.msrb.mxu2 %v4013_v50  ;;  %v3997_v60 = vor.u32 %v4259_v53, %v3994_v57  ;;  %1820 = vmatpush.bf16.msrb.mxu1 %v3869_v56 }
 0x116   : > { %v674_v0 = vmul.f32 0.2, %v584_v59  ;;  %vm642_vm1 = vcmp.ge.f32.partialorder %v584_v59, 0.0 }
 0x118   : > { %v706_v10 = vsel %vm642_vm1, %v584_v59, %v674_v0  ;;  %1909 = vmatpush.bf16.msrb.mxu2 %v3997_v60  ;;  %1821 = vmatpush.bf16.msrb.mxu1 %v3853_v9 }
 0x11b   : > { %v585_v63 = vpop.f32.mrf.mxu0 }
 0x11c   : > { %v586_v1 = vadd.f32 %v4684_v36, %v585_v63 }
 0x11e   : > { %vm643_vm2 = vcmp.ge.f32.partialorder %v586_v1, 0.0  ;;  %v675_v5 = vmul.f32 0.2, %v586_v1 }
 0x120   : > { %v707_v11 = vsel %vm643_vm2, %v586_v1, %v675_v5  ;;  %v3978_v5 = vld [vmem:[#allocation5 + $0x170] sm:$0xf0] }
 0x121   : > { %v731_v16 = vpack.c.bf16 %v707_v11, %v706_v10  ;;  %v3981_v11 = vor.u32 %v4255_v4, %v3978_v5 }
 0x123   : > { %v588_v18 = vpop.f32.mrf.mxu0  ;;  %3773 = vmatmul.msk.bf16.gmra.mxu1 %vm794_vm4, %v731_v16  ;;  %3789 = vmatmul.msk.bf16.gmra.mxu2 %vm794_vm4, %v731_v16  ;;  %v3837_v16 = vor.u32 %v4219_v12, %v3834_v13  ;;  %v4788_v13 = vperm.slane %v4744_v32, 0 }
 0x124   : > { %v589_v19 = vadd.f32 %v4684_v36, %v588_v18  ;;  %1910 = vmatpush.bf16.msrb.mxu2 %v3981_v11  ;;  %v3965_v18 = vor.u32 %v4251_v14, %v3962_v17 }
 0x125   : > { %1822 = vmatpush.bf16.msrb.mxu1 %v3837_v16 }
 0x126   : > { %v676_v21 = vmul.f32 0.2, %v589_v19  ;;  %vm644_vm3 = vcmp.ge.f32.partialorder %v589_v19, 0.0 }
 0x128   : > { %v708_v25 = vsel %vm644_vm3, %v589_v19, %v676_v21  ;;  %v4215_v21 = vld [vmem:[#allocation5 + $0x24] sm:$0xf]  ;;  %1911 = vmatpush.bf16.msrb.mxu2 %v3965_v18 }
 0x12b   : > { %v590_v20 = vpop.f32.mrf.mxu0 }
 0x12c   : > { %v591_v22 = vadd.f32 %v4684_v36, %v590_v20 }
 0x12e   : > { %vm645_vm5 = vcmp.ge.f32.partialorder %v591_v22, 0.0  ;;  %v677_v23 = vmul.f32 0.2, %v591_v22 }
 0x130   : > { %v4737_v24 = vpop.f32.mrf.mxu1  ;;  %v709_v26 = vsel %vm645_vm5, %v591_v22, %v677_v23  ;;  %v3818_v22 = vld [vmem:[#allocation5 + $0x30] sm:$0xf0]  ;;  %v4247_v23 = vld [vmem:[#allocation5 + $0x124] sm:$0xf] }
 0x131   : > { %v732_v27 = vpack.c.bf16 %v709_v26, %v708_v25  ;;  %v3946_v25 = vld [vmem:[#allocation5 + $0x130] sm:$0xf0]  ;;  %v853_v17 = vadd.f32 %v4737_v24, %v4788_v13 }
 0x132   : > { %v3949_v31 = vor.u32 %v4247_v23, %v3946_v25 }
 0x133   : > { %v593_v28 = vpop.f32.mrf.mxu0  ;;  %3774 = vmatmul.msk.bf16.gmra.mxu1 %vm794_vm4, %v732_v27  ;;  %3790 = vmatmul.msk.bf16.gmra.mxu2 %vm794_vm4, %v732_v27  ;;  %v1085_v25 = vmul.f32 0.2, %v853_v17  ;;  %vm1021_vm3 = vcmp.ge.f32.partialorder %v853_v17, 0.0 }
 0x134   : > { %v594_v39 = vadd.f32 %v4684_v36, %v593_v28  ;;  %v3821_v28 = vor.u32 %v4215_v21, %v3818_v22  ;;  %1912 = vmatpush.bf16.msrb.mxu2 %v3949_v31 }
 0x135   : > { %v1149_v31 = vsel %vm1021_vm3, %v853_v17, %v1085_v25 }
 0x136   : > { %v941_v33 = vpop.f32.mrf.mxu2  ;;  %vm646_vm6 = vcmp.ge.f32.partialorder %v594_v39, 0.0  ;;  %v678_v48 = vmul.f32 0.2, %v594_v39  ;;  %1823 = vmatpush.bf16.msrb.mxu1 %v3821_v28 }
 0x137   : > { %v942_v45 = vadd.f32 %v941_v33, %v4747_v37  ;;  %v4211_v33 = vld [vmem:[#allocation5 + $0x4] sm:$0xf] }
 0x138   : > { %v4750_v40 = vpop.f32.mrf.mxu1  ;;  %v710_v62 = vsel %vm646_vm6, %v594_v39, %v678_v48  ;;  %v3805_v44 = vor.u32 %v4211_v33, %v3802_v34 }
 0x139   : > { %v1086_v58 = vmul.f32 0.2, %v942_v45  ;;  %vm1022_vm8 = vcmp.ge.f32.partialorder %v942_v45, 0.0 }
 0x13a   : > { %1824 = vmatpush.bf16.msrb.mxu1 %v3805_v44 }
 0x13b   : > { %v595_v46 = vpop.f32.mrf.mxu0  ;;  %v1150_v6 = vsel %vm1022_vm8, %v942_v45, %v1086_v58  ;;  %v3933_v45 = vor.u32 %v4243_v35, %v3930_v41 }
 0x13c   : > { %v596_v49 = vadd.f32 %v4684_v36, %v595_v46 }
 0x13d   : > { %1913 = vmatpush.bf16.msrb.mxu2 %v3933_v45 }
 0x13e   : > { %vm647_vm7 = vcmp.ge.f32.partialorder %v596_v49, 0.0  ;;  %v679_v54 = vmul.f32 0.2, %v596_v49  ;;  %v943_v55 = vpop.f32.mrf.mxu2 }
 0x13f   : > { %v944_v59 = vadd.f32 %v943_v55, %v4747_v37 }
 0x140   : > { %v4755_v61 = vpop.f32.mrf.mxu1  ;;  %v711_v63 = vsel %vm647_vm7, %v596_v49, %v679_v54 }
 0x141   : > { %vm1024_vm9 = vcmp.ge.f32.partialorder %v944_v59, 0.0  ;;  %v1088_v0 = vmul.f32 0.2, %v944_v59  ;;  %v733_v1 = vpack.c.bf16 %v711_v63, %v710_v62 }
 0x143   : > { %v1152_v7 = vsel %vm1024_vm9, %v944_v59, %v1088_v0  ;;  %v598_v8 = vpop.f32.mrf.mxu0  ;;  %3775 = vmatmul.msk.bf16.gmra.mxu1 %vm794_vm4, %v733_v1  ;;  %3791 = vmatmul.msk.bf16.gmra.mxu2 %vm794_vm4, %v733_v1 }
 0x144   : > { %v4760_v10 = vpack.c.bf16 %v1152_v7, %v1150_v6  ;;  %v599_v19 = vadd.f32 %v4684_v36, %v598_v8  ;;  %v613_v8 = vpop.f32.mrf.mxu3 }
 0x146   : > { %v946_v15 = vpop.f32.mrf.mxu2  ;;  %1736 = vmatmul.bf16.vlgmr.msrb.gmra.mxu0 %v4760_v10  ;;  %vm648_vm10 = vcmp.ge.f32.partialorder %v599_v19, 0.0  ;;  %v680_v29 = vmul.f32 0.2, %v599_v19 }
 0x147   : > { %v947_v26 = vadd.f32 %v946_v15, %v4747_v37  ;;  %v855_v15 = vadd.f32 %v4750_v40, %v4788_v13 }
 0x148   : > { %v4764_v20 = vpop.f32.mrf.mxu1  ;;  %v712_v47 = vsel %vm648_vm10, %v599_v19, %v680_v29 }
 0x149   : > { %v1090_v42 = vmul.f32 0.2, %v947_v26  ;;  %vm1026_vm12 = vcmp.ge.f32.partialorder %v947_v26, 0.0  ;;  %v1087_v21 = vmul.f32 0.2, %v855_v15  ;;  %vm1023_vm2 = vcmp.ge.f32.partialorder %v855_v15, 0.0 }
 0x14b   : > { %v600_v27 = vpop.f32.mrf.mxu0  ;;  %v1154_v51 = vsel %vm1026_vm12, %v947_v26, %v1090_v42 }
 0x14c   : > { %v601_v30 = vadd.f32 %v4684_v36, %v600_v27  ;;  %v615_v23 = vpop.f32.mrf.mxu3  ;;  %v1151_v27 = vsel %vm1023_vm2, %v855_v15, %v1087_v21 }
 0x14e   : > { %vm649_vm11 = vcmp.ge.f32.partialorder %v601_v30, 0.0  ;;  %v681_v38 = vmul.f32 0.2, %v601_v30  ;;  %v948_v39 = vpop.f32.mrf.mxu2 }
 0x14f   : > { %v949_v43 = vadd.f32 %v948_v39, %v4747_v37 }
 0x150   : > { %v4769_v46 = vpop.f32.mrf.mxu1  ;;  %v713_v48 = vsel %vm649_vm11, %v601_v30, %v681_v38  ;;  %v4805_v38 = vpack.c.bf16 %v1151_v27, %v1149_v31 }
 0x151   : > { %vm1028_vm13 = vcmp.ge.f32.partialorder %v949_v43, 0.0  ;;  %v1092_v49 = vmul.f32 0.2, %v949_v43  ;;  %v734_v50 = vpack.c.bf16 %v713_v48, %v712_v47  ;;  %v860_v47 = vadd.f32 %v4764_v20, %v4788_v13 }
 0x152   : > { %v614_v48 = vadd.f32 %v4684_v36, %v613_v8 }
 0x153   : > { %v1156_v52 = vsel %vm1028_vm13, %v949_v43, %v1092_v49  ;;  %v603_v53 = vpop.f32.mrf.mxu0  ;;  %3776 = vmatmul.msk.bf16.gmra.mxu1 %vm794_vm4, %v734_v50  ;;  %3792 = vmatmul.msk.bf16.gmra.mxu2 %vm794_vm4, %v734_v50  ;;  %v616_v49 = vadd.f32 %v4684_v36, %v615_v23  ;;  %vm1027_vm9 = vcmp.ge.f32.partialorder %v860_v47, 0.0 }
 0x154   : > { %v4774_v54 = vpack.c.bf16 %v1156_v52, %v1154_v51  ;;  %v604_v56 = vadd.f32 %v4684_v36, %v603_v53  ;;  %v618_v45 = vpop.f32.mrf.mxu3  ;;  %v858_v51 = vadd.f32 %v4755_v61, %v4788_v13  ;;  %v1091_v53 = vmul.f32 0.2, %v860_v47 }
 0x155   : > { %vm654_vm10 = vcmp.ge.f32.partialorder %v614_v48, 0.0  ;;  %vm655_vm11 = vcmp.ge.f32.partialorder %v616_v49, 0.0  ;;  %v619_v15 = vadd.f32 %v4684_v36, %v618_v45 }
 0x156   : > { %v951_v55 = vpop.f32.mrf.mxu2  ;;  %1741 = vmatmul.bf16.gmra.mxu0 %v4774_v54  ;;  %v682_v60 = vmul.f32 0.2, %v604_v56  ;;  %vm650_vm14 = vcmp.ge.f32.partialorder %v604_v56, 0.0  ;;  %vm1025_vm12 = vcmp.ge.f32.partialorder %v858_v51, 0.0 }
 0x157   : > { %v952_v58 = vadd.f32 %v951_v55, %v4747_v37  ;;  %v686_v55 = vmul.f32 0.2, %v614_v48  ;;  %v688_v23 = vmul.f32 0.2, %v619_v15 }
 0x158   : > { %v4778_v57 = vpop.f32.mrf.mxu1  ;;  %v714_v4 = vsel %vm650_vm14, %v604_v56, %v682_v60  ;;  %v687_v56 = vmul.f32 0.2, %v616_v49 }
 0x159   : > { %v1094_v1 = vmul.f32 0.2, %v952_v58  ;;  %vm1030_vm0 = vcmp.ge.f32.partialorder %v952_v58, 0.0 }
 0x15b   : > { %v605_v59 = vpop.f32.mrf.mxu0  ;;  %v1158_v9 = vsel %vm1030_vm0, %v952_v58, %v1094_v1  ;;  %v1089_v58 = vmul.f32 0.2, %v858_v51  ;;  %vm656_vm0 = vcmp.ge.f32.partialorder %v619_v15, 0.0 }
 0x15c   : > { %v606_v62 = vadd.f32 %v4684_v36, %v605_v59  ;;  %v1155_v59 = vsel %vm1027_vm9, %v860_v47, %v1091_v53  ;;  %v620_v61 = vpop.f32.mrf.mxu3 }
 0x15e   : > { %vm651_vm15 = vcmp.ge.f32.partialorder %v606_v62, 0.0  ;;  %v683_v63 = vmul.f32 0.2, %v606_v62  ;;  %v953_v0 = vpop.f32.mrf.mxu2 }
 0x15f   : > { %v954_v2 = vadd.f32 %v953_v0, %v4747_v37 }
 0x160   : > { %v4783_v3 = vpop.f32.mrf.mxu1  ;;  %v715_v5 = vsel %vm651_vm15, %v606_v62, %v683_v63  ;;  %v718_v62 = vsel %vm654_vm10, %v614_v48, %v686_v55  ;;  %v719_v63 = vsel %vm655_vm11, %v616_v49, %v687_v56  ;;  %v3912_v48 = vld [vmem:[#allocation5 + $0xe0] sm:$0xf]  ;;  %v4241_v49 = vld [vmem:[#allocation5 + $0xec] sm:$0xf0] }
 0x161   : > { %vm1032_vm1 = vcmp.ge.f32.partialorder %v954_v2, 0.0  ;;  %v1096_v6 = vmul.f32 0.2, %v954_v2  ;;  %v735_v7 = vpack.c.bf16 %v715_v5, %v714_v4  ;;  %v3913_v56 = vor.u32 %v4241_v49, %v3912_v48 }
 0x163   : > { %v1160_v11 = vsel %vm1032_vm1, %v954_v2, %v1096_v6  ;;  %v608_v12 = vpop.f32.mrf.mxu0  ;;  %3777 = vmatmul.msk.bf16.gmra.mxu1 %vm794_vm4, %v735_v7  ;;  %3793 = vmatmul.msk.bf16.gmra.mxu2 %vm794_vm4, %v735_v7  ;;  %v1153_v2 = vsel %vm1025_vm12, %v858_v51, %v1089_v58  ;;  %v4830_v7 = vpack.c.bf16 %v719_v63, %v718_v62 }
 0x164   : > { %v4790_v14 = vpack.c.bf16 %v1160_v11, %v1158_v9  ;;  %v609_v18 = vadd.f32 %v4684_v36, %v608_v12  ;;  %v4828_v5 = vpack.c.bf16 %v1155_v59, %v1153_v2  ;;  %v865_v12 = vadd.f32 %v4778_v57, %v4788_v13  ;;  %v3896_v2 = vld [vmem:[#allocation5 + $0xc0] sm:$0xf] }
 0x166   : > { %v956_v16 = vpop.f32.mrf.mxu2  ;;  %1746 = vmatmul.bf16.gmra.mxu0 %v4790_v14  ;;  %v684_v26 = vmul.f32 0.2, %v609_v18  ;;  %vm652_vm5 = vcmp.ge.f32.partialorder %v609_v18, 0.0  ;;  %vm1031_vm15 = vcmp.ge.f32.partialorder %v865_v12, 0.0 }
 0x167   : > { %v957_v32 = vadd.f32 %v956_v16, %v4747_v37  ;;  %v621_v16 = vadd.f32 %v4684_v36, %v620_v61 }
 0x168   : > { %v4798_v19 = vpop.f32.mrf.mxu1  ;;  %v716_v33 = vsel %vm652_vm5, %v609_v18, %v684_v26  ;;  %v863_v18 = vadd.f32 %v4769_v46, %v4788_v13 }
 0x169   : > { %v1098_v29 = vmul.f32 0.2, %v957_v32  ;;  %vm1034_vm7 = vcmp.ge.f32.partialorder %v957_v32, 0.0  ;;  %v689_v25 = vmul.f32 0.2, %v621_v16  ;;  %vm657_vm1 = vcmp.ge.f32.partialorder %v621_v16, 0.0 }
 0x16a   : > { %v1093_v26 = vmul.f32 0.2, %v863_v18  ;;  %vm1029_vm2 = vcmp.ge.f32.partialorder %v863_v18, 0.0 }
 0x16b   : > { %v610_v22 = vpop.f32.mrf.mxu0  ;;  %v1162_v42 = vsel %vm1034_vm7, %v957_v32, %v1098_v29  ;;  %v623_v32 = vpop.f32.mrf.mxu3 }
 0x16c   : > { %v611_v40 = vadd.f32 %v4684_v36, %v610_v22  ;;  %v1095_v22 = vmul.f32 0.2, %v865_v12  ;;  %v624_v51 = vadd.f32 %v4684_v36, %v623_v32 }
 0x16e   : > { %vm653_vm6 = vcmp.ge.f32.partialorder %v611_v40, 0.0  ;;  %v685_v28 = vmul.f32 0.2, %v611_v40  ;;  %v958_v24 = vpop.f32.mrf.mxu2  ;;  %vm658_vm7 = vcmp.ge.f32.partialorder %v624_v51, 0.0 }
 0x16f   : > { %v959_v30 = vadd.f32 %v958_v24, %v4747_v37  ;;  %v721_v24 = vsel %vm657_vm1, %v621_v16, %v689_v25  ;;  %v3880_v25 = vld [vmem:[#allocation5 + $0xa0] sm:$0xf] }
 0x170   : > { %v717_v34 = vsel %vm653_vm6, %v611_v40, %v685_v28  ;;  %v4803_v35 = vpop.f32.mrf.mxu1  ;;  %v1159_v40 = vsel %vm1031_vm15, %v865_v12, %v1095_v22  ;;  %v720_v28 = vsel %vm656_vm0, %v619_v15, %v688_v23 }
 0x171   : > { %v4807_v39 = vpack.c.bf16 %v717_v34, %v716_v33  ;;  %vm1036_vm8 = vcmp.ge.f32.partialorder %v959_v30, 0.0  ;;  %v1100_v41 = vmul.f32 0.2, %v959_v30 }
 0x173   : > { %v1164_v43 = vsel %vm1036_vm8, %v959_v30, %v1100_v41  ;;  %3778 = vmatmul.msk.bf16.vlgmr.msrb.gmra.mxu3 %vm794_vm4, %v4807_v39  ;;  %1825 = vmatmul.bf16.vlgmr.msrb.gmra.mxu1 %v4805_v38  ;;  %v1157_v30 = vsel %vm1029_vm2, %v863_v18, %v1093_v26  ;;  %v4853_v41 = vpack.c.bf16 %v721_v24, %v720_v28  ;;  %v625_v45 = vpop.f32.mrf.mxu3 }
 0x174   : > { %v4812_v44 = vpack.c.bf16 %v1164_v43, %v1162_v42  ;;  %1914 = vmatmul.bf16.vlgmr.msrb.gmra.mxu2 %v4760_v10  ;;  %v4851_v33 = vpack.c.bf16 %v1159_v40, %v1157_v30  ;;  %v626_v53 = vadd.f32 %v4684_v36, %v625_v45  ;;  %1639 = vmatpush.bf16.msrb.mxu3 %v3913_v56 }
 0x175   : > { %v873_v28 = vadd.f32 %v4803_v35, %v4788_v13 }
 0x176   : > { %v961_v50 = vpop.f32.mrf.mxu2  ;;  %1751 = vmatmul.bf16.gmra.mxu0 %v4812_v44  ;;  %v691_v62 = vmul.f32 0.2, %v626_v53  ;;  %vm659_vm8 = vcmp.ge.f32.partialorder %v626_v53, 0.0 }
 0x177   : > { %v962_v20 = vadd.f32 %v961_v50, %v4747_v37  ;;  %v870_v50 = vadd.f32 %v4798_v19, %v4788_v13  ;;  %v1101_v30 = vmul.f32 0.2, %v873_v28 }
 0x178   : > { %v4822_v52 = vpop.f32.mrf.mxu1  ;;  %v723_v61 = vsel %vm659_vm8, %v626_v53, %v691_v62 }
 0x179   : > { %v1102_v0 = vmul.f32 0.2, %v962_v20  ;;  %vm1038_vm13 = vcmp.ge.f32.partialorder %v962_v20, 0.0  ;;  %v1099_v59 = vmul.f32 0.2, %v870_v50  ;;  %vm1035_vm6 = vcmp.ge.f32.partialorder %v870_v50, 0.0 }
 0x17a   : > { %v875_v26 = vadd.f32 %v4822_v52, %v4788_v13  ;;  %v4229_v52 = vld [vmem:[#allocation5 + $0x8c] sm:$0xf0] }
 0x17b   : > { %v1166_v8 = vsel %vm1038_vm13, %v962_v20, %v1102_v0  ;;  %v868_v20 = vadd.f32 %v4783_v3, %v4788_v13  ;;  %v1163_v36 = vsel %vm1035_vm6, %v870_v50, %v1099_v59  ;;  %vm1037_vm13 = vcmp.ge.f32.partialorder %v873_v28, 0.0  ;;  %v3848_v59 = vld [vmem:[#allocation5 + $0x60] sm:$0xf] }
 0x17c   : > { %vm1039_vm12 = vcmp.ge.f32.partialorder %v875_v26, 0.0  ;;  %v1165_v50 = vsel %vm1037_vm13, %v873_v28, %v1101_v30 }
 0x17d   : > { %v1097_v63 = vmul.f32 0.2, %v868_v20  ;;  %vm1033_vm9 = vcmp.ge.f32.partialorder %v868_v20, 0.0 }
 0x17e   : > { %v963_v60 = vpop.f32.mrf.mxu2 }
 0x17f   : > { %v964_v1 = vadd.f32 %v963_v60, %v4747_v37  ;;  %v690_v60 = vmul.f32 0.2, %v624_v51  ;;  %v1161_v12 = vsel %vm1033_vm9, %v868_v20, %v1097_v63 }
 0x180   : > { %v4826_v4 = vpop.f32.mrf.mxu1  ;;  %v4874_v16 = vpack.c.bf16 %v1163_v36, %v1161_v12 }
 0x181   : > { %vm1040_vm14 = vcmp.ge.f32.partialorder %v964_v1, 0.0  ;;  %v1104_v6 = vmul.f32 0.2, %v964_v1  ;;  %v878_v36 = vadd.f32 %v4826_v4, %v4788_v13 }
 0x183   : > { %v1168_v9 = vsel %vm1040_vm14, %v964_v1, %v1104_v6  ;;  %3779 = vmatmul.msk.bf16.gmra.mxu3 %vm794_vm4, %v4830_v7  ;;  %1830 = vmatmul.bf16.gmra.mxu1 %v4828_v5  ;;  %v722_v1 = vsel %vm658_vm7, %v624_v51, %v690_v60  ;;  %v4237_v6 = vld [vmem:[#allocation5 + $0xcc] sm:$0xf0]  ;;  %vm1041_vm1 = vcmp.ge.f32.partialorder %v878_v36, 0.0 }
 0x184   : > { %v4835_v11 = vpack.c.bf16 %v1168_v9, %v1166_v8  ;;  %1919 = vmatmul.bf16.gmra.mxu2 %v4774_v54  ;;  %v3897_v9 = vor.u32 %v4237_v6, %v3896_v2  ;;  %v4876_v18 = vpack.c.bf16 %v723_v61, %v722_v1  ;;  %v4225_v60 = vld [vmem:[#allocation5 + $0x6c] sm:$0xf0]  ;;  %v1105_v61 = vmul.f32 0.2, %v878_v36 }
 0x185   : > { %v3849_v63 = vor.u32 %v4225_v60, %v3848_v59 }
 0x186   : > { %v966_v17 = vpop.f32.mrf.mxu2  ;;  %1756 = vmatmul.bf16.gmra.mxu0 %v4835_v11  ;;  %1640 = vmatpush.bf16.msrb.mxu3 %v3897_v9 }
 0x187   : > { %v967_v57 = vadd.f32 %v966_v17, %v4747_v37 }
 0x188   : > { %v4845_v21 = vpop.f32.mrf.mxu1 }
 0x189   : > { %v1106_v29 = vmul.f32 0.2, %v967_v57  ;;  %vm1042_vm3 = vcmp.ge.f32.partialorder %v967_v57, 0.0  ;;  %v880_v62 = vadd.f32 %v4845_v21, %v4788_v13  ;;  %v4221_v21 = vld [vmem:[#allocation5 + $0x4c] sm:$0xf0] }
 0x18b   : > { %v1170_v42 = vsel %vm1042_vm3, %v967_v57, %v1106_v29  ;;  %v4233_v57 = vld [vmem:[#allocation5 + $0xac] sm:$0xf0]  ;;  %v1103_v29 = vmul.f32 0.2, %v875_v26  ;;  %vm1043_vm0 = vcmp.ge.f32.partialorder %v880_v62, 0.0 }
 0x18e   : > { %v968_v27 = vpop.f32.mrf.mxu2 }
 0x18f   : > { %v969_v46 = vadd.f32 %v968_v27, %v4747_v37  ;;  %v3881_v27 = vor.u32 %v4233_v57, %v3880_v25 }
 0x190   : > { %v4849_v31 = vpop.f32.mrf.mxu1 }
 0x191   : > { %vm1044_vm5 = vcmp.ge.f32.partialorder %v969_v46, 0.0  ;;  %v1108_v34 = vmul.f32 0.2, %v969_v46  ;;  %1641 = vmatpush.bf16.msrb.mxu3 %v3881_v27  ;;  %v4217_v27 = vld [vmem:[#allocation5 + $0x2c] sm:$0xf0]  ;;  %v883_v30 = vadd.f32 %v4849_v31, %v4788_v13 }
 0x193   : > { %v1172_v43 = vsel %vm1044_vm5, %v969_v46, %v1108_v34  ;;  %3780 = vmatmul.msk.bf16.gmra.mxu3 %vm794_vm4, %v4853_v41  ;;  %1835 = vmatmul.bf16.gmra.mxu1 %v4851_v33  ;;  %v1167_v34 = vsel %vm1039_vm12, %v875_v26, %v1103_v29  ;;  %vm1045_vm6 = vcmp.ge.f32.partialorder %v883_v30, 0.0 }
 0x194   : > { %v4858_v47 = vpack.c.bf16 %v1172_v43, %v1170_v42  ;;  %1924 = vmatmul.bf16.gmra.mxu2 %v4790_v14  ;;  %v3864_v43 = vld [vmem:[#allocation5 + $0x80] sm:$0xf]  ;;  %v4895_v51 = vpack.c.bf16 %v1167_v34, %v1165_v50 }
 0x195   : > { %v3865_v49 = vor.u32 %v4229_v52, %v3864_v43  ;;  %v1109_v43 = vmul.f32 0.2, %v883_v30 }
 0x196   : > { %v971_v55 = vpop.f32.mrf.mxu2  ;;  %1761 = vmatmul.bf16.gmra.mxu0 %v4858_v47 }
 0x197   : > { %v972_v19 = vadd.f32 %v971_v55, %v4747_v37  ;;  %1642 = vmatpush.bf16.msrb.mxu3 %v3865_v49 }
 0x198   : > { %v4868_v58 = vpop.f32.mrf.mxu1 }
 0x199   : > { %v1110_v3 = vmul.f32 0.2, %v972_v19  ;;  %vm1046_vm10 = vcmp.ge.f32.partialorder %v972_v19, 0.0  ;;  %v885_v28 = vadd.f32 %v4868_v58, %v4788_v13  ;;  %v4213_v58 = vld [vmem:[#allocation5 + $0xc] sm:$0xf0] }
 0x19b   : > { %v1174_v32 = vsel %vm1046_vm10, %v972_v19, %v1110_v3  ;;  %1643 = vmatpush.bf16.msrb.mxu3 %v3849_v63  ;;  %v3832_v3 = vld [vmem:[#allocation5 + $0x40] sm:$0xf]  ;;  %vm1047_vm5 = vcmp.ge.f32.partialorder %v885_v28, 0.0  ;;  %v3920_v63 = vld [vmem:[#allocation5 + $0xe8] sm:$0xf] }
 0x19c   : > { %v3833_v12 = vor.u32 %v4221_v21, %v3832_v3 }
 0x19e   : > { %v973_v0 = vpop.f32.mrf.mxu2 }
 0x19f   : > { %v974_v8 = vadd.f32 %v973_v0, %v4747_v37  ;;  %1644 = vmatpush.bf16.msrb.mxu3 %v3833_v12  ;;  %v4050_v12 = vld [vmem:[#allocation5 + $0x1f8] sm:$0xf0] }
 0x1a0   : > { %v4872_v15 = vpop.f32.mrf.mxu1 }
 0x1a1   : > { %vm1048_vm11 = vcmp.ge.f32.partialorder %v974_v8, 0.0  ;;  %v1112_v17 = vmul.f32 0.2, %v974_v8 }
 0x1a3   : > { %v1176_v22 = vsel %vm1048_vm11, %v974_v8, %v1112_v17  ;;  %3781 = vmatmul.msk.bf16.gmra.mxu3 %vm794_vm4, %v4876_v18  ;;  %1840 = vmatmul.bf16.gmra.mxu1 %v4874_v16  ;;  %v1169_v17 = vsel %vm1041_vm1, %v878_v36, %v1105_v61  ;;  %v4242_v36 = vld [vmem:[#allocation5 + $0xf4] sm:$0xf0] }
 0x1a4   : > { %v4881_v23 = vpack.c.bf16 %v1176_v22, %v1174_v32  ;;  %1929 = vmatmul.bf16.gmra.mxu2 %v4812_v44 }
 0x1a6   : > { %v976_v40 = vpop.f32.mrf.mxu2  ;;  %1766 = vmatmul.bf16.gmra.mxu0 %v4881_v23 }
 0x1a7   : > { %v977_v46 = vadd.f32 %v976_v40, %v4747_v37  ;;  %v3816_v40 = vld [vmem:[#allocation5 + $0x20] sm:$0xf] }
 0x1a8   : > { %v4889_v24 = vpop.f32.mrf.mxu1 }
 0x1a9   : > { %v1114_v45 = vmul.f32 0.2, %v977_v46  ;;  %vm1050_vm14 = vcmp.ge.f32.partialorder %v977_v46, 0.0  ;;  %v890_v61 = vadd.f32 %v4889_v24, %v4788_v13  ;;  %v4274_v24 = vld [vmem:[#allocation5 + $0x1f4] sm:$0xf0] }
 0x1ab   : > { %v1178_v55 = vsel %vm1050_vm14, %v977_v46, %v1114_v45  ;;  %v3817_v46 = vor.u32 %v4217_v27, %v3816_v40  ;;  %v1115_v3 = vmul.f32 0.2, %v890_v61  ;;  %vm1051_vm10 = vcmp.ge.f32.partialorder %v890_v61, 0.0 }
 0x1ad   : > { %1645 = vmatpush.bf16.msrb.mxu3 %v3817_v46  ;;  %v1179_v40 = vsel %vm1051_vm10, %v890_v61, %v1115_v3  ;;  %v4979_v61 = vld [vmem:[%s6274_s6] sm:$0xf] }
 0x1ae   : > { %v978_v42 = vpop.f32.mrf.mxu2 }
 0x1af   : > { %v979_v48 = vadd.f32 %v978_v42, %v4747_v37 }
 0x1b0   : > { %v4893_v35 = vpop.f32.mrf.mxu1 }
 0x1b1   : > { %vm1052_vm15 = vcmp.ge.f32.partialorder %v979_v48, 0.0  ;;  %v1116_v53 = vmul.f32 0.2, %v979_v48 }
 0x1b3   : > { %v1180_v56 = vsel %vm1052_vm15, %v979_v48, %v1116_v53  ;;  %3794 = vmatmul.msk.bf16.vlgmr.msra.gmra.mxu3 %vm794_vm4, %v4807_v39  ;;  %1845 = vmatmul.bf16.gmra.mxu1 %v4895_v51  ;;  %v1107_v39 = vmul.f32 0.2, %v880_v62  ;;  %v3800_v48 = vld [vmem:[#allocation5] sm:$0xf] }
 0x1b4   : > { %v4900_v20 = vpack.c.bf16 %v1180_v56, %v1178_v55  ;;  %1934 = vmatmul.bf16.gmra.mxu2 %v4835_v11  ;;  %v3801_v53 = vor.u32 %v4213_v58, %v3800_v48  ;;  %v1173_v55 = vsel %vm1045_vm6, %v883_v30, %v1109_v43 }
 0x1b5   : > { %v1171_v2 = vsel %vm1043_vm0, %v880_v62, %v1107_v39 }
 0x1b6   : > { %6357 = vst [vmem:[#allocation11_spill] sm:$0xff] %v4900_v20  ;;  %v981_v19 = vpop.f32.mrf.mxu2  ;;  %1771 = vmatmul.bf16.gmra.mxu0 %v4900_v20  ;;  %v4914_v32 = vpack.c.bf16 %v1171_v2, %v1169_v17  ;;  %1646 = vmatpush.bf16.msrb.mxu3 %v3801_v53  ;;  %v4048_v17 = vld [vmem:[#allocation5 + $0x1e8] sm:$0xf]  ;;  %v893_v53 = vadd.f32 %v4893_v35, %v4788_v13 }
 0x1b7   : > { %v982_v1 = vadd.f32 %v981_v19, %v4747_v37 }
 0x1b8   : > { %v4908_v0 = vpop.f32.mrf.mxu1  ;;  %vm1053_vm13 = vcmp.ge.f32.partialorder %v893_v53, 0.0 }
 0x1b9   : > { %v1118_v8 = vmul.f32 0.2, %v982_v1  ;;  %vm1054_vm2 = vcmp.ge.f32.partialorder %v982_v1, 0.0 }
 0x1bb   : > { %v1182_v25 = vsel %vm1054_vm2, %v982_v1, %v1118_v8  ;;  %v3921_v1 = vor.u32 %v4242_v36, %v3920_v63 }
 0x1bd   : > { %1995 = vmatpush.bf16.msra.mxu3 %v3921_v1 }
 0x1be   : > { %v983_v6 = vpop.f32.mrf.mxu2 }
 0x1bf   : > { %v984_v9 = vadd.f32 %v983_v6, %v4747_v37 }
 0x1c0   : > { %v4912_v4 = vpop.f32.mrf.mxu1 }
 0x1c1   : > { %vm1056_vm3 = vcmp.ge.f32.partialorder %v984_v9, 0.0  ;;  %v1120_v22 = vmul.f32 0.2, %v984_v9 }
 0x1c3   : > { %v1184_v57 = vsel %vm1056_vm3, %v984_v9, %v1120_v22  ;;  %3795 = vmatmul.msk.bf16.gmra.mxu3 %vm794_vm4, %v4830_v7  ;;  %1850 = vmatmul.bf16.gmra.mxu1 %v4914_v32  ;;  %v1111_v7 = vmul.f32 0.2, %v885_v28  ;;  %v4941_v39 = vpop.f32.mrf.mxu0  ;;  %v4272_v9 = vld [vmem:[#allocation5 + $0x1ec] sm:$0xf] }
 0x1c4   : > { %v4919_v26 = vpack.c.bf16 %v1184_v57, %v1182_v25  ;;  %1939 = vmatmul.bf16.gmra.mxu2 %v4858_v47  ;;  %v4053_v22 = vor.u32 %v4272_v9, %v4050_v12  ;;  %v4240_v25 = vld [vmem:[#allocation5 + $0xec] sm:$0xf]  ;;  %v3922_v57 = vld [vmem:[#allocation5 + $0xf8] sm:$0xf0] }
 0x1c5   : > { %v1175_v52 = vsel %vm1047_vm5, %v885_v28, %v1111_v7  ;;  %v4049_v28 = vor.u32 %v4274_v24, %v4048_v17  ;;  %v4238_v24 = vld [vmem:[#allocation5 + $0xd4] sm:$0xf0] }
 0x1c6   : > { %6358 = vst [vmem:[#allocation12_spill] sm:$0xff] %v4919_v26  ;;  %v986_v29 = vpop.f32.mrf.mxu2  ;;  %1776 = vmatmul.bf16.gmra.mxu0 %v4919_v26  ;;  %v4933_v56 = vpack.c.bf16 %v1175_v52, %v1173_v55  ;;  %2262 = vmatpush.bf16.msra.mxu2 %v4053_v22  ;;  %v3904_v22 = vld [vmem:[#allocation5 + $0xc8] sm:$0xf] }
 0x1c7   : > { %v987_v42 = vadd.f32 %v986_v29, %v4747_v37  ;;  %2084 = vmatpush.bf16.msra.mxu0 %v4049_v28 }
 0x1c8   : > { %v4927_v34 = vpop.f32.mrf.mxu1 }
 0x1c9   : > { %v1122_v49 = vmul.f32 0.2, %v987_v42  ;;  %vm1058_vm7 = vcmp.ge.f32.partialorder %v987_v42, 0.0 }
 0x1cb   : > { %v1186_v60 = vsel %vm1058_vm7, %v987_v42, %v1122_v49  ;;  %v4951_v29 = vpop.f32.mrf.mxu0  ;;  %v895_v49 = vadd.f32 %v4908_v0, %v4788_v13 }
 0x1ce   : > { %v988_v45 = vpop.f32.mrf.mxu2 }
 0x1cf   : > { %v989_v50 = vadd.f32 %v988_v45, %v4747_v37 }
 0x1d0   : > { %v4931_v31 = vpop.f32.mrf.mxu1 }
 0x1d1   : > { %vm1060_vm8 = vcmp.ge.f32.partialorder %v989_v50, 0.0  ;;  %v1124_v59 = vmul.f32 0.2, %v989_v50 }
 0x1d3   : > { %v1188_v62 = vsel %vm1060_vm8, %v989_v50, %v1124_v59  ;;  %3796 = vmatmul.msk.bf16.gmra.mxu3 %vm794_vm4, %v4853_v41  ;;  %1855 = vmatmul.bf16.gmra.mxu1 %v4933_v56  ;;  %v888_v41 = vadd.f32 %v4872_v15, %v4788_v13  ;;  %v3925_v15 = vor.u32 %v4240_v25, %v3922_v57  ;;  %v4972_v59 = vpop.f32.mrf.mxu0 }
 0x1d4   : > { %v4938_v19 = vpack.c.bf16 %v1188_v62, %v1186_v60  ;;  %1944 = vmatmul.bf16.gmra.mxu2 %v4881_v23  ;;  %v1117_v62 = vmul.f32 0.2, %v893_v53  ;;  %v3905_v25 = vor.u32 %v4238_v24, %v3904_v22  ;;  %v898_v57 = vadd.f32 %v4912_v4, %v4788_v13 }
 0x1d5   : > { %vm1049_vm9 = vcmp.ge.f32.partialorder %v888_v41, 0.0  ;;  %v1113_v21 = vmul.f32 0.2, %v888_v41  ;;  %2173 = vmatpush.bf16.msra.mxu1 %v3925_v15 }
 0x1d6   : > { %6359 = vst [vmem:[#allocation13_spill] sm:$0xff] %v4938_v19  ;;  %v991_v2 = vpop.f32.mrf.mxu2  ;;  %1781 = vmatmul.bf16.gmra.mxu0 %v4938_v19  ;;  %v1181_v35 = vsel %vm1053_vm13, %v893_v53, %v1117_v62  ;;  %1996 = vmatpush.bf16.msra.mxu3 %v3905_v25  ;;  %v4236_v53 = vld [vmem:[#allocation5 + $0xcc] sm:$0xf]  ;;  %vm1057_vm1 = vcmp.ge.f32.partialorder %v898_v57, 0.0 }
 0x1d7   : > { %v992_v8 = vadd.f32 %v991_v2, %v4747_v37  ;;  %v1177_v7 = vsel %vm1049_vm9, %v888_v41, %v1113_v21  ;;  %v4984_v21 = vperm.slane %v4979_v61, 1 }
 0x1d8   : > { %v4948_v6 = vpop.f32.mrf.mxu1  ;;  %v4957_v43 = vpack.c.bf16 %v1179_v40, %v1177_v7  ;;  %v900_v40 = vadd.f32 %v4927_v34, %v4788_v13  ;;  %v1121_v7 = vmul.f32 0.2, %v898_v57  ;;  %v3906_v34 = vld [vmem:[#allocation5 + $0xd8] sm:$0xf0] }
 0x1d9   : > { %v1126_v46 = vmul.f32 0.2, %v992_v8  ;;  %vm1062_vm11 = vcmp.ge.f32.partialorder %v992_v8, 0.0  ;;  %v3909_v62 = vor.u32 %v4236_v53, %v3906_v34 }
 0x1da   : > { %vm1059_vm0 = vcmp.ge.f32.partialorder %v900_v40, 0.0 }
 0x1db   : > { %v1190_v45 = vsel %vm1062_vm11, %v992_v8, %v1126_v46  ;;  %v4986_v8 = vpop.f32.mrf.mxu0  ;;  %2174 = vmatpush.bf16.msra.mxu1 %v3909_v62 }
 0x1de   : > { %v993_v27 = vpop.f32.mrf.mxu2 }
 0x1df   : > { %v994_v30 = vadd.f32 %v993_v27, %v4747_v37 }
 0x1e0   : > { %v4955_v42 = vpop.f32.mrf.mxu1 }
 0x1e1   : > { %vm1064_vm12 = vcmp.ge.f32.partialorder %v994_v30, 0.0  ;;  %v1128_v52 = vmul.f32 0.2, %v994_v30 }
 0x1e3   : > { %v1192_v48 = vsel %vm1064_vm12, %v994_v30, %v1128_v52  ;;  %3797 = vmatmul.msk.bf16.gmra.mxu3 %vm794_vm4, %v4876_v18  ;;  %1860 = vmatmul.bf16.gmra.mxu1 %v4957_v43  ;;  %v1119_v18 = vmul.f32 0.2, %v895_v49  ;;  %vm1055_vm4 = vcmp.ge.f32.partialorder %v895_v49, 0.0  ;;  %v1123_v52 = vmul.f32 0.2, %v900_v40 }
 0x1e4   : > { %v4962_v58 = vpack.c.bf16 %v1192_v48, %v1190_v45  ;;  %1949 = vmatmul.bf16.gmra.mxu2 %v4900_v20  ;;  %v4268_v45 = vld [vmem:[#allocation5 + $0x1cc] sm:$0xf]  ;;  %v4034_v48 = vld [vmem:[#allocation5 + $0x1d8] sm:$0xf0] }
 0x1e5   : > { %v1183_v63 = vsel %vm1055_vm4, %v895_v49, %v1119_v18  ;;  %v4032_v49 = vld [vmem:[#allocation5 + $0x1c8] sm:$0xf]  ;;  %v4037_v4 = vor.u32 %v4268_v45, %v4034_v48  ;;  %v5001_v18 = vpop.f32.mrf.mxu0 }
 0x1e6   : > { %6360 = vst [vmem:[#allocation14_spill] sm:$0xff] %v4962_v58  ;;  %v996_v50 = vpop.f32.mrf.mxu2  ;;  %1786 = vmatmul.bf16.gmra.mxu0 %v4962_v58  ;;  %v4981_v41 = vpack.c.bf16 %v1183_v63, %v1181_v35  ;;  %v1187_v63 = vsel %vm1059_vm0, %v900_v40, %v1123_v52  ;;  %v1185_v35 = vsel %vm1057_vm1, %v898_v57, %v1121_v7 }
 0x1e7   : > { %v997_v60 = vadd.f32 %v996_v50, %v4747_v37  ;;  %v4270_v50 = vld [vmem:[#allocation5 + $0x1d4] sm:$0xf0]  ;;  %2263 = vmatpush.bf16.msra.mxu2 %v4037_v4  ;;  %v905_v40 = vadd.f32 %v4948_v6, %v4788_v13 }
 0x1e8   : > { %v4970_v55 = vpop.f32.mrf.mxu1 }
 0x1e9   : > { %v1130_v1 = vmul.f32 0.2, %v997_v60  ;;  %vm1066_vm14 = vcmp.ge.f32.partialorder %v997_v60, 0.0  ;;  %v1127_v48 = vmul.f32 0.2, %v905_v40  ;;  %vm1063_vm5 = vcmp.ge.f32.partialorder %v905_v40, 0.0 }
 0x1eb   : > { %v1194_v9 = vsel %vm1066_vm14, %v997_v60, %v1130_v1  ;;  %v4033_v60 = vor.u32 %v4270_v50, %v4032_v49  ;;  %v1191_v4 = vsel %vm1063_vm5, %v905_v40, %v1127_v48 }
 0x1ed   : > { %2085 = vmatpush.bf16.msra.mxu0 %v4033_v60 }
 0x1ee   : > { %v998_v36 = vpop.f32.mrf.mxu2 }
 0x1ef   : > { %v999_v0 = vadd.f32 %v998_v36, %v4747_v37 }
 0x1f0   : > { %v1826_v2 = vpop.f32.mrf.mxu1 }
 0x1f1   : > { %vm1068_vm15 = vcmp.ge.f32.partialorder %v999_v0, 0.0  ;;  %v1132_v3 = vmul.f32 0.2, %v999_v0  ;;  %v1827_v27 = vadd.f32 %v1826_v2, %v4984_v21 }
 0x1f3   : > { %v1196_v12 = vsel %vm1068_vm15, %v999_v0, %v1132_v3  ;;  %1647 = vmatmul.bf16.vlgmr.msrb.gmra.mxu3 %v4805_v38  ;;  %1865 = vmatmul.bf16.gmra.mxu1 %v4981_v41 }
 0x1f4   : > { %v4990_v17 = vpack.c.bf16 %v1196_v12, %v1194_v9  ;;  %1954 = vmatmul.bf16.gmra.mxu2 %v4919_v26  ;;  %v5006_v12 = vpack.c.bf16 %v1187_v63, %v1185_v35  ;;  %v3888_v35 = vld [vmem:[#allocation5 + $0xa8] sm:$0xf] }
 0x1f6   : > { %6361 = vst [vmem:[#allocation15_spill] sm:$0xff] %v4990_v17  ;;  %v4998_v28 = vpop.f32.mrf.mxu3  ;;  %1791 = vmatmul.bf16.gmra.mxu0 %v4990_v17 }
 0x1f7   : > { %v1915_v15 = vpop.f32.mrf.mxu2 }
 0x1f8   : > { %v1916_v46 = vadd.f32 %v1915_v15, %v1827_v27  ;;  %v1828_v30 = vpop.f32.mrf.mxu1 }
 0x1f9   : > { %v1829_v36 = vadd.f32 %v1828_v30, %v4984_v21  ;;  %v5022_v30 = vpop.f32.mrf.mxu0 }
 0x1fa   : > { %v2480_v2 = vmul.f32 0.2, %v1916_v46  ;;  %vm2352_vm2 = vcmp.ge.f32.partialorder %v1916_v46, 0.0 }
 0x1fc   : > { %v5010_v24 = vsel %vm2352_vm2, %v1916_v46, %v2480_v2  ;;  %v903_v46 = vadd.f32 %v4931_v31, %v4788_v13  ;;  %v4234_v2 = vld [vmem:[#allocation5 + $0xb4] sm:$0xf0] }
 0x1fd   : > { %6362 = vst [vmem:[#allocation16_spill] sm:$0xff] %v5010_v24 }
 0x1fe   : > { %v5004_v1 = vpop.f32.mrf.mxu3  ;;  %v1125_v49 = vmul.f32 0.2, %v903_v46  ;;  %vm1061_vm6 = vcmp.ge.f32.partialorder %v903_v46, 0.0 }
 0x1ff   : > { %v1917_v0 = vpop.f32.mrf.mxu2 }
 0x200   : > { %v1918_v3 = vadd.f32 %v1917_v0, %v1829_v36  ;;  %v1831_v9 = vpop.f32.mrf.mxu1  ;;  %v1189_v34 = vsel %vm1061_vm6, %v903_v46, %v1125_v49 }
 0x201   : > { %v1832_v27 = vadd.f32 %v1831_v9, %v4984_v21  ;;  %v5029_v36 = vpack.c.bf16 %v1191_v4, %v1189_v34  ;;  %v5031_v0 = vpop.f32.mrf.mxu0  ;;  %v4264_v34 = vld [vmem:[#allocation5 + $0x1ac] sm:$0xf] }
 0x202   : > { %vm2356_vm3 = vcmp.ge.f32.partialorder %v1918_v3, 0.0  ;;  %v2484_v22 = vmul.f32 0.2, %v1918_v3 }
 0x203   : > { %1652 = vmatmul.bf16.gmra.mxu3 %v4828_v5  ;;  %1870 = vmatmul.bf16.gmra.mxu1 %v5006_v12 }
 0x204   : > { %v5012_v25 = vsel %vm2356_vm3, %v1918_v3, %v2484_v22  ;;  %1959 = vmatmul.bf16.gmra.mxu2 %v4938_v19  ;;  %v3889_v22 = vor.u32 %v4234_v2, %v3888_v35  ;;  %v4232_v35 = vld [vmem:[#allocation5 + $0xac] sm:$0xf] }
 0x205   : > { %6363 = vst [vmem:[#allocation17_spill] sm:$0xff] %v5012_v25 }
 0x206   : > { %v5020_v15 = vpop.f32.mrf.mxu3  ;;  %1997 = vmatpush.bf16.msra.mxu3 %v3889_v22 }
 0x207   : > { %v1920_v7 = vpop.f32.mrf.mxu2 }
 0x208   : > { %v1921_v52 = vadd.f32 %v1920_v7, %v1832_v27  ;;  %v1833_v45 = vpop.f32.mrf.mxu1  ;;  %v908_v27 = vadd.f32 %v4955_v42, %v4788_v13  ;;  %v910_v7 = vadd.f32 %v4970_v55, %v4788_v13  ;;  %v3890_v55 = vld [vmem:[#allocation5 + $0xb8] sm:$0xf0] }
 0x209   : > { %v1834_v50 = vadd.f32 %v1833_v45, %v4984_v21  ;;  %v3893_v2 = vor.u32 %v4232_v35, %v3890_v55 }
 0x20a   : > { %v2488_v60 = vmul.f32 0.2, %v1921_v52  ;;  %vm2360_vm7 = vcmp.ge.f32.partialorder %v1921_v52, 0.0  ;;  %v1129_v4 = vmul.f32 0.2, %v908_v27  ;;  %vm1067_vm9 = vcmp.ge.f32.partialorder %v910_v7, 0.0 }
 0x20b   : > { %vm1065_vm10 = vcmp.ge.f32.partialorder %v908_v27, 0.0  ;;  %2175 = vmatpush.bf16.msra.mxu1 %v3893_v2 }
 0x20c   : > { %v5036_v3 = vsel %vm2360_vm7, %v1921_v52, %v2488_v60  ;;  %v4018_v60 = vld [vmem:[#allocation5 + $0x1b8] sm:$0xf0]  ;;  %v1193_v57 = vsel %vm1065_vm10, %v908_v27, %v1129_v4 }
 0x20d   : > { %6364 = vst [vmem:[#allocation18_spill] sm:$0xff] %v5036_v3  ;;  %v4021_v42 = vor.u32 %v4264_v34, %v4018_v60 }
 0x20e   : > { %v5027_v6 = vpop.f32.mrf.mxu3 }
 0x20f   : > { %v1922_v53 = vpop.f32.mrf.mxu2  ;;  %2264 = vmatpush.bf16.msra.mxu2 %v4021_v42  ;;  %v913_v42 = vadd.f32 %v4998_v28, %v4788_v13 }
 0x210   : > { %v1923_v62 = vadd.f32 %v1922_v53, %v1834_v50  ;;  %v1836_v63 = vpop.f32.mrf.mxu1  ;;  %v1131_v50 = vmul.f32 0.2, %v910_v7  ;;  %v5049_v53 = vpop.f32.mrf.mxu0 }
 0x211   : > { %v1837_v46 = vadd.f32 %v1836_v63, %v4984_v21  ;;  %vm1069_vm13 = vcmp.ge.f32.partialorder %v913_v42, 0.0 }
 0x212   : > { %vm2364_vm8 = vcmp.ge.f32.partialorder %v1923_v62, 0.0  ;;  %v2492_v31 = vmul.f32 0.2, %v1923_v62  ;;  %v1195_v40 = vsel %vm1067_vm9, %v910_v7, %v1131_v50 }
 0x213   : > { %1657 = vmatmul.bf16.gmra.mxu3 %v4851_v33  ;;  %1875 = vmatmul.bf16.gmra.mxu1 %v5029_v36  ;;  %v5054_v34 = vpack.c.bf16 %v1195_v40, %v1193_v57  ;;  %v915_v57 = vadd.f32 %v5004_v1, %v4788_v13 }
 0x214   : > { %1964 = vmatmul.bf16.gmra.mxu2 %v4962_v58  ;;  %v5038_v9 = vsel %vm2364_vm8, %v1923_v62, %v2492_v31  ;;  %v4016_v62 = vld [vmem:[#allocation5 + $0x1a8] sm:$0xf]  ;;  %v4266_v31 = vld [vmem:[#allocation5 + $0x1b4] sm:$0xf0] }
 0x215   : > { %6365 = vst [vmem:[#allocation19_spill] sm:$0xff] %v5038_v9  ;;  %v4017_v63 = vor.u32 %v4266_v31, %v4016_v62  ;;  %vm1071_vm4 = vcmp.ge.f32.partialorder %v915_v57, 0.0  ;;  %v1133_v31 = vmul.f32 0.2, %v913_v42 }
 0x216   : > { %v5047_v45 = vpop.f32.mrf.mxu3 }
 0x217   : > { %v1925_v48 = vpop.f32.mrf.mxu2  ;;  %2086 = vmatpush.bf16.msra.mxu0 %v4017_v63  ;;  %v1197_v2 = vsel %vm1069_vm13, %v913_v42, %v1133_v31  ;;  %v918_v31 = vadd.f32 %v5020_v15, %v4788_v13  ;;  %v4002_v42 = vld [vmem:[#allocation5 + $0x198] sm:$0xf0]  ;;  %v4000_v15 = vld [vmem:[#allocation5 + $0x188] sm:$0xf] }
 0x218   : > { %v1926_v52 = vadd.f32 %v1925_v48, %v1837_v46  ;;  %v1838_v49 = vpop.f32.mrf.mxu1  ;;  %v5063_v50 = vpop.f32.mrf.mxu0 }
 0x219   : > { %v1839_v22 = vadd.f32 %v1838_v49, %v4984_v21  ;;  %vm1073_vm1 = vcmp.ge.f32.partialorder %v918_v31, 0.0 }
 0x21a   : > { %v2496_v3 = vmul.f32 0.2, %v1926_v52  ;;  %vm2368_vm11 = vcmp.ge.f32.partialorder %v1926_v52, 0.0 }
 0x21c   : > { %v5059_v7 = vsel %vm2368_vm11, %v1926_v52, %v2496_v3 }
 0x21d   : > { %6366 = vst [vmem:[#allocation20_spill] sm:$0xff] %v5059_v7 }
 0x21e   : > { %v5052_v46 = vpop.f32.mrf.mxu3 }
 0x21f   : > { %v1927_v48 = vpop.f32.mrf.mxu2 }
 0x220   : > { %v1928_v9 = vadd.f32 %v1927_v48, %v1839_v22  ;;  %v1841_v24 = vpop.f32.mrf.mxu1  ;;  %v5077_v1 = vpop.f32.mrf.mxu0 }
 0x221   : > { %v1842_v40 = vadd.f32 %v1841_v24, %v4984_v21 }
 0x222   : > { %vm2372_vm12 = vcmp.ge.f32.partialorder %v1928_v9, 0.0  ;;  %v2500_v60 = vmul.f32 0.2, %v1928_v9 }
 0x223   : > { %1662 = vmatmul.bf16.gmra.mxu3 %v4874_v16  ;;  %1880 = vmatmul.bf16.gmra.mxu1 %v5054_v34 }
 0x224   : > { %1969 = vmatmul.bf16.gmra.mxu2 %v4990_v17  ;;  %v5061_v49 = vsel %vm2372_vm12, %v1928_v9, %v2500_v60  ;;  %v1135_v9 = vmul.f32 0.2, %v915_v57 }
 0x225   : > { %6367 = vst [vmem:[#allocation21_spill] sm:$0xff] %v5061_v49  ;;  %v3874_v49 = vld [vmem:[#allocation5 + $0x98] sm:$0xf0] }
 0x226   : > { %v5070_v4 = vpop.f32.mrf.mxu3  ;;  %v1199_v35 = vsel %vm1071_vm4, %v915_v57, %v1135_v9  ;;  %v3872_v57 = vld [vmem:[#allocation5 + $0x88] sm:$0xf] }
 0x227   : > { %v1930_v62 = vpop.f32.mrf.mxu2  ;;  %v5079_v27 = vpack.c.bf16 %v1199_v35, %v1197_v2  ;;  %v920_v35 = vadd.f32 %v5027_v6, %v4788_v13  ;;  %v4228_v6 = vld [vmem:[#allocation5 + $0x8c] sm:$0xf] }
 0x228   : > { %v1931_v3 = vadd.f32 %v1930_v62, %v1842_v40  ;;  %v1843_v52 = vpop.f32.mrf.mxu1  ;;  %v4230_v40 = vld [vmem:[#allocation5 + $0x94] sm:$0xf0]  ;;  %v3877_v25 = vor.u32 %v4228_v6, %v3874_v49 }
 0x229   : > { %v1844_v55 = vadd.f32 %v1843_v52, %v4984_v21  ;;  %v3873_v9 = vor.u32 %v4230_v40, %v3872_v57  ;;  %vm1075_vm0 = vcmp.ge.f32.partialorder %v920_v35, 0.0  ;;  %v4260_v40 = vld [vmem:[#allocation5 + $0x18c] sm:$0xf] }
 0x22a   : > { %v2504_v22 = vmul.f32 0.2, %v1931_v3  ;;  %vm2376_vm14 = vcmp.ge.f32.partialorder %v1931_v3, 0.0  ;;  %2176 = vmatpush.bf16.msra.mxu1 %v3877_v25  ;;  %v3858_v25 = vld [vmem:[#allocation5 + $0x78] sm:$0xf0] }
 0x22b   : > { %1998 = vmatpush.bf16.msra.mxu3 %v3873_v9 }
 0x22c   : > { %v5083_v62 = vsel %vm2376_vm14, %v1931_v3, %v2504_v22  ;;  %v5094_v22 = vpop.f32.mrf.mxu0 }
 0x22d   : > { %6368 = vst [vmem:[#allocation22_spill] sm:$0xff] %v5083_v62  ;;  %v4005_v62 = vor.u32 %v4260_v40, %v4002_v42 }
 0x22e   : > { %v5075_v63 = vpop.f32.mrf.mxu3 }
 0x22f   : > { %v1932_v24 = vpop.f32.mrf.mxu2  ;;  %2265 = vmatpush.bf16.msra.mxu2 %v4005_v62 }
 0x230   : > { %v1933_v48 = vadd.f32 %v1932_v24, %v1844_v55  ;;  %v1846_v60 = vpop.f32.mrf.mxu1 }
 0x231   : > { %v1847_v55 = vadd.f32 %v1846_v60, %v4984_v21 }
 0x232   : > { %vm2380_vm15 = vcmp.ge.f32.partialorder %v1933_v48, 0.0  ;;  %v2508_v28 = vmul.f32 0.2, %v1933_v48 }
 0x233   : > { %1667 = vmatmul.bf16.gmra.mxu3 %v4895_v51  ;;  %1885 = vmatmul.bf16.gmra.mxu1 %v5079_v27 }
 0x234   : > { %v5085_v52 = vsel %vm2380_vm15, %v1933_v48, %v2508_v28  ;;  %v1137_v48 = vmul.f32 0.2, %v918_v31  ;;  %v1139_v28 = vmul.f32 0.2, %v920_v35  ;;  %v5101_v62 = vpop.f32.mrf.mxu0 }
 0x235   : > { %6369 = vst [vmem:[#allocation23_spill] sm:$0xff] %v5085_v52  ;;  %v4262_v52 = vld [vmem:[#allocation5 + $0x194] sm:$0xf0] }
 0x236   : > { %v1001_v24 = vpop.f32.mrf.mxu3  ;;  %v4001_v60 = vor.u32 %v4262_v52, %v4000_v15  ;;  %v1203_v9 = vsel %vm1075_vm0, %v920_v35, %v1139_v28  ;;  %v4224_v35 = vld [vmem:[#allocation5 + $0x6c] sm:$0xf] }
 0x237   : > { %v1935_v2 = vpop.f32.mrf.mxu2  ;;  %v1002_v57 = vadd.f32 %v1001_v24, %v4747_v37  ;;  %v1201_v24 = vsel %vm1073_vm1, %v918_v31, %v1137_v48 }
 0x238   : > { %v1936_v7 = vadd.f32 %v1935_v2, %v1847_v55  ;;  %v1848_v3 = vpop.f32.mrf.mxu1  ;;  %2087 = vmatpush.bf16.msra.mxu0 %v4001_v60  ;;  %v5099_v20 = vpack.c.bf16 %v1203_v9, %v1201_v24  ;;  %v925_v60 = vadd.f32 %v5052_v46, %v4788_v13  ;;  %v3842_v9 = vld [vmem:[#allocation5 + $0x58] sm:$0xf0] }
 0x239   : > { %v1849_v55 = vadd.f32 %v1848_v3, %v4984_v21  ;;  %v1134_v17 = vmul.f32 0.2, %v1002_v57  ;;  %vm1070_vm2 = vcmp.ge.f32.partialorder %v1002_v57, 0.0 }
 0x23a   : > { %v2512_v42 = vmul.f32 0.2, %v1936_v7  ;;  %vm2384_vm3 = vcmp.ge.f32.partialorder %v1936_v7, 0.0  ;;  %vm1079_vm7 = vcmp.ge.f32.partialorder %v925_v60, 0.0 }
 0x23b   : > { %v1198_v3 = vsel %vm1070_vm2, %v1002_v57, %v1134_v17  ;;  %v4220_v57 = vld [vmem:[#allocation5 + $0x4c] sm:$0xf] }
 0x23c   : > { %v5107_v48 = vsel %vm2384_vm3, %v1936_v7, %v2512_v42  ;;  %v923_v7 = vadd.f32 %v5047_v45, %v4788_v13 }
 0x23d   : > { %6371 = vst [vmem:[#allocation25_spill] sm:$0xff] %v5107_v48 }
 0x23e   : > { %v1003_v2 = vpop.f32.mrf.mxu3  ;;  %v1141_v46 = vmul.f32 0.2, %v923_v7  ;;  %vm1077_vm8 = vcmp.ge.f32.partialorder %v923_v7, 0.0 }
 0x23f   : > { %v1004_v58 = vadd.f32 %v1003_v2, %v4747_v37  ;;  %v1937_v19 = vpop.f32.mrf.mxu2  ;;  %v3845_v2 = vor.u32 %v4220_v57, %v3842_v9  ;;  %v3810_v57 = vld [vmem:[#allocation5 + $0x18] sm:$0xf0] }
 0x240   : > { %v1938_v40 = vadd.f32 %v1937_v19, %v1849_v55  ;;  %v1851_v26 = vpop.f32.mrf.mxu1  ;;  %v3861_v19 = vor.u32 %v4224_v35, %v3858_v25 }
 0x241   : > { %vm1072_vm5 = vcmp.ge.f32.partialorder %v1004_v58, 0.0  ;;  %v1136_v49 = vmul.f32 0.2, %v1004_v58 }
 0x242   : > { %vm2388_vm6 = vcmp.ge.f32.partialorder %v1938_v40, 0.0  ;;  %v2516_v52 = vmul.f32 0.2, %v1938_v40  ;;  %2177 = vmatpush.bf16.msra.mxu1 %v3861_v19  ;;  %v4212_v19 = vld [vmem:[#allocation5 + $0xc] sm:$0xf] }
 0x243   : > { %v1200_v28 = vsel %vm1072_vm5, %v1004_v58, %v1136_v49  ;;  %1672 = vmatmul.bf16.gmra.mxu3 %v4914_v32  ;;  %1890 = vmatmul.bf16.gmra.mxu1 %v5099_v20  ;;  %v1852_v58 = vadd.f32 %v1851_v26, %v4984_v21  ;;  %v4216_v49 = vld [vmem:[#allocation5 + $0x2c] sm:$0xf] }
 0x244   : > { %v5105_v31 = vpack.c.bf16 %v1200_v28, %v1198_v3  ;;  %v5109_v15 = vsel %vm2388_vm6, %v1938_v40, %v2516_v52  ;;  %v1143_v40 = vmul.f32 0.2, %v925_v60  ;;  %v3826_v52 = vld [vmem:[#allocation5 + $0x38] sm:$0xf0]  ;;  %v5121_v3 = vpop.f32.mrf.mxu0 }
 0x245   : > { %6372 = vst [vmem:[#allocation26_spill] sm:$0xff] %v5109_v15  ;;  %v3829_v35 = vor.u32 %v4216_v49, %v3826_v52  ;;  %v3813_v15 = vor.u32 %v4212_v19, %v3810_v57  ;;  %v4258_v19 = vld [vmem:[#allocation5 + $0x174] sm:$0xf0]  ;;  %v4256_v57 = vld [vmem:[#allocation5 + $0x16c] sm:$0xf] }
 0x246   : > { %6370 = vst [vmem:[#allocation24_spill] sm:$0xff] %v5105_v31  ;;  %v1006_v17 = vpop.f32.mrf.mxu3  ;;  %1796 = vmatmul.bf16.gmra.mxu0 %v5105_v31  ;;  %1974 = vmatmul.bf16.gmra.mxu2 %v5105_v31  ;;  %v1207_v28 = vsel %vm1079_vm7, %v925_v60, %v1143_v40 }
 0x247   : > { %v1940_v55 = vpop.f32.mrf.mxu2  ;;  %v1007_v26 = vadd.f32 %v1006_v17, %v4747_v37  ;;  %2178 = vmatpush.bf16.msra.mxu1 %v3845_v2 }
 0x248   : > { %v1941_v24 = vadd.f32 %v1940_v55, %v1852_v58  ;;  %v1853_v42 = vpop.f32.mrf.mxu1  ;;  %v1205_v58 = vsel %vm1077_vm8, %v923_v7, %v1141_v46  ;;  %v3856_v46 = vld [vmem:[#allocation5 + $0x68] sm:$0xf] }
 0x249   : > { %v1854_v45 = vadd.f32 %v1853_v42, %v4984_v21  ;;  %v1138_v9 = vmul.f32 0.2, %v1007_v26  ;;  %vm1074_vm9 = vcmp.ge.f32.partialorder %v1007_v26, 0.0  ;;  %v5125_v49 = vpack.c.bf16 %v1207_v28, %v1205_v58 }
 0x24a   : > { %v2520_v17 = vmul.f32 0.2, %v1941_v24  ;;  %vm2392_vm10 = vcmp.ge.f32.partialorder %v1941_v24, 0.0  ;;  %v930_v58 = vadd.f32 %v5075_v63, %v4788_v13  ;;  %v3968_v63 = vld [vmem:[#allocation5 + $0x148] sm:$0xf] }
 0x24b   : > { %2179 = vmatpush.bf16.msra.mxu1 %v3829_v35  ;;  %v1202_v40 = vsel %vm1074_vm9, %v1007_v26, %v1138_v9  ;;  %v3970_v26 = vld [vmem:[#allocation5 + $0x158] sm:$0xf0] }
 0x24c   : > { %v5131_v35 = vsel %vm2392_vm10, %v1941_v24, %v2520_v17  ;;  %v3986_v24 = vld [vmem:[#allocation5 + $0x178] sm:$0xf0]  ;;  %v5142_v17 = vpop.f32.mrf.mxu0  ;;  %vm1083_vm4 = vcmp.ge.f32.partialorder %v930_v58, 0.0 }
 0x24d   : > { %6374 = vst [vmem:[#allocation28_spill] sm:$0xff] %v5131_v35 }
 0x24e   : > { %v1008_v25 = vpop.f32.mrf.mxu3 }
 0x24f   : > { %v1009_v55 = vadd.f32 %v1008_v25, %v4747_v37  ;;  %v1942_v6 = vpop.f32.mrf.mxu2  ;;  %2180 = vmatpush.bf16.msra.mxu1 %v3813_v15  ;;  %v3984_v25 = vld [vmem:[#allocation5 + $0x168] sm:$0xf] }
 0x250   : > { %v1943_v2 = vadd.f32 %v1942_v6, %v1854_v45  ;;  %v1856_v48 = vpop.f32.mrf.mxu1  ;;  %v4226_v6 = vld [vmem:[#allocation5 + $0x74] sm:$0xf0]  ;;  %v3985_v15 = vor.u32 %v4258_v19, %v3984_v25  ;;  %v4252_v19 = vld [vmem:[#allocation5 + $0x14c] sm:$0xf] }
 0x251   : > { %vm1076_vm11 = vcmp.ge.f32.partialorder %v1009_v55, 0.0  ;;  %v1140_v60 = vmul.f32 0.2, %v1009_v55  ;;  %v3857_v45 = vor.u32 %v4226_v6, %v3856_v46  ;;  %v1857_v9 = vadd.f32 %v1856_v48, %v4984_v21  ;;  %v4254_v46 = vld [vmem:[#allocation5 + $0x154] sm:$0xf0] }
 0x252   : > { %vm2396_vm12 = vcmp.ge.f32.partialorder %v1943_v2, 0.0  ;;  %v2524_v42 = vmul.f32 0.2, %v1943_v2  ;;  %2088 = vmatpush.bf16.msra.mxu0 %v3985_v15  ;;  %v1147_v48 = vmul.f32 0.2, %v930_v58  ;;  %v3969_v25 = vor.u32 %v4254_v46, %v3968_v63 }
 0x253   : > { %v1204_v52 = vsel %vm1076_vm11, %v1009_v55, %v1140_v60  ;;  %1677 = vmatmul.bf16.gmra.mxu3 %v4933_v56  ;;  %1895 = vmatmul.bf16.gmra.mxu1 %v5125_v49  ;;  %v3989_v60 = vor.u32 %v4256_v57, %v3986_v24  ;;  %v3952_v57 = vld [vmem:[#allocation5 + $0x128] sm:$0xf]  ;;  %v4250_v24 = vld [vmem:[#allocation5 + $0x134] sm:$0xf0] }
 0x254   : > { %v5129_v7 = vpack.c.bf16 %v1204_v52, %v1202_v40  ;;  %v5133_v28 = vsel %vm2396_vm12, %v1943_v2, %v2524_v42  ;;  %1999 = vmatpush.bf16.msra.mxu3 %v3857_v45  ;;  %v928_v42 = vadd.f32 %v5070_v4, %v4788_v13  ;;  %v3973_v45 = vor.u32 %v4252_v19, %v3970_v26  ;;  %v4248_v13 = vld [vmem:[#allocation5 + $0x12c] sm:$0xf] }
 0x255   : > { %6375 = vst [vmem:[#allocation29_spill] sm:$0xff] %v5133_v28  ;;  %2266 = vmatpush.bf16.msra.mxu2 %v3989_v60  ;;  %v1211_v4 = vsel %vm1083_vm4, %v930_v58, %v1147_v48  ;;  %v3954_v60 = vld [vmem:[#allocation5 + $0x138] sm:$0xf0]  ;;  %v5152_v58 = vpop.f32.mrf.mxu0  ;;  %v3936_v48 = vld [vmem:[#allocation5 + $0x108] sm:$0xf] }
 0x256   : > { %6373 = vst [vmem:[#allocation27_spill] sm:$0xff] %v5129_v7  ;;  %v1011_v55 = vpop.f32.mrf.mxu3  ;;  %1801 = vmatmul.bf16.gmra.mxu0 %v5129_v7  ;;  %1979 = vmatmul.bf16.gmra.mxu2 %v5129_v7  ;;  %vm1081_vm13 = vcmp.ge.f32.partialorder %v928_v42, 0.0  ;;  %v1145_v35 = vmul.f32 0.2, %v928_v42  ;;  %v3957_v46 = vor.u32 %v4248_v13, %v3954_v60 }
 0x257   : > { %v1945_v2 = vpop.f32.mrf.mxu2  ;;  %v1012_v6 = vadd.f32 %v1011_v55, %v4747_v37  ;;  %2089 = vmatpush.bf16.msra.mxu0 %v3969_v25 }
 0x258   : > { %v1946_v40 = vadd.f32 %v1945_v2, %v1857_v9  ;;  %v1858_v52 = vpop.f32.mrf.mxu1  ;;  %v3953_v2 = vor.u32 %v4250_v24, %v3952_v57  ;;  %v1209_v7 = vsel %vm1081_vm13, %v928_v42, %v1145_v35  ;;  %v4246_v57 = vld [vmem:[#allocation5 + $0x114] sm:$0xf0]  ;;  %v3938_v42 = vld [vmem:[#allocation5 + $0x118] sm:$0xf0] }
 0x259   : > { %v1859_v9 = vadd.f32 %v1858_v52, %v4984_v21  ;;  %2267 = vmatpush.bf16.msra.mxu2 %v3973_v45  ;;  %v1142_v28 = vmul.f32 0.2, %v1012_v6  ;;  %vm1078_vm14 = vcmp.ge.f32.partialorder %v1012_v6, 0.0  ;;  %v5150_v31 = vpack.c.bf16 %v1211_v4, %v1209_v7  ;;  %v4244_v7 = vld [vmem:[#allocation5 + $0x10c] sm:$0xf] }
 0x25a   : > { %v2528_v26 = vmul.f32 0.2, %v1946_v40  ;;  %vm2400_vm15 = vcmp.ge.f32.partialorder %v1946_v40, 0.0  ;;  %v3937_v35 = vor.u32 %v4246_v57, %v3936_v48 }
 0x25b   : > { %2090 = vmatpush.bf16.msra.mxu0 %v3953_v2  ;;  %v1206_v24 = vsel %vm1078_vm14, %v1012_v6, %v1142_v28 }
 0x25d   : > { %2268 = vmatpush.bf16.msra.mxu2 %v3957_v46 }
 0x25e   : > { %v1013_v15 = vpop.f32.mrf.mxu3 }
 0x25f   : > { %v1014_v55 = vadd.f32 %v1013_v15, %v4747_v37  ;;  %v1947_v63 = vpop.f32.mrf.mxu2  ;;  %v5159_v15 = vsel %vm2400_vm15, %v1946_v40, %v2528_v26  ;;  %2091 = vmatpush.bf16.msra.mxu0 %v3937_v35 }
 0x260   : > { %v1948_v25 = vadd.f32 %v1947_v63, %v1859_v9  ;;  %v1861_v19 = vpop.f32.mrf.mxu1  ;;  %v3941_v9 = vor.u32 %v4244_v7, %v3938_v42 }
 0x261   : > { %vm1080_vm0 = vcmp.ge.f32.partialorder %v1014_v55, 0.0  ;;  %v1144_v52 = vmul.f32 0.2, %v1014_v55  ;;  %v1862_v6 = vadd.f32 %v1861_v19, %v4984_v21 }
 0x262   : > { %vm2404_vm1 = vcmp.ge.f32.partialorder %v1948_v25, 0.0  ;;  %v2532_v45 = vmul.f32 0.2, %v1948_v25  ;;  %2269 = vmatpush.bf16.msra.mxu2 %v3941_v9 }
 0x263   : > { %v1208_v13 = vsel %vm1080_vm0, %v1014_v55, %v1144_v52  ;;  %1682 = vmatmul.bf16.gmra.mxu3 %v4957_v43  ;;  %1900 = vmatmul.bf16.gmra.mxu1 %v5150_v31  ;;  %v5168_v52 = vpop.f32.mrf.mxu0 }
 0x264   : > { %v5156_v4 = vpack.c.bf16 %v1208_v13, %v1206_v24  ;;  %v5161_v2 = vsel %vm2404_vm1, %v1948_v25, %v2532_v45 }
 0x266   : > { %v1016_v60 = vpop.f32.mrf.mxu3  ;;  %1806 = vmatmul.bf16.gmra.mxu0 %v5156_v4  ;;  %1984 = vmatmul.bf16.gmra.mxu2 %v5156_v4 }
 0x267   : > { %v1950_v55 = vpop.f32.mrf.mxu2  ;;  %v1017_v40 = vadd.f32 %v1016_v60, %v4747_v37  ;;  %v4222_v60 = vld [vmem:[#allocation5 + $0x54] sm:$0xf0] }
 0x268   : > { %v1951_v63 = vadd.f32 %v1950_v55, %v1862_v6  ;;  %v1863_v46 = vpop.f32.mrf.mxu1  ;;  %v3840_v6 = vld [vmem:[#allocation5 + $0x48] sm:$0xf] }
 0x269   : > { %v1864_v26 = vadd.f32 %v1863_v46, %v4984_v21  ;;  %v1146_v48 = vmul.f32 0.2, %v1017_v40  ;;  %vm1082_vm2 = vcmp.ge.f32.partialorder %v1017_v40, 0.0 }
 0x26a   : > { %v2536_v57 = vmul.f32 0.2, %v1951_v63  ;;  %vm2408_vm3 = vcmp.ge.f32.partialorder %v1951_v63, 0.0 }
 0x26b   : > { %v1210_v42 = vsel %vm1082_vm2, %v1017_v40, %v1146_v48 }
 0x26c   : > { %v5177_v46 = vsel %vm2408_vm3, %v1951_v63, %v2536_v57 }
 0x26d   : > { %6376 = vst [vmem:[#allocation30_spill] sm:$0xff] %v5177_v46 }
 0x26e   : > { %v1018_v25 = vpop.f32.mrf.mxu3 }
 0x26f   : > { %v1019_v45 = vadd.f32 %v1018_v25, %v4747_v37  ;;  %v1952_v19 = vpop.f32.mrf.mxu2  ;;  %v3841_v37 = vor.u32 %v4222_v60, %v3840_v6  ;;  %v5181_v25 = vpop.f32.mrf.mxu0 }
 0x270   : > { %v1953_v24 = vadd.f32 %v1952_v19, %v1864_v26  ;;  %v1866_v13 = vpop.f32.mrf.mxu1  ;;  %v5184_v19 = vperm.slane %v4979_v61, 0 }
 0x271   : > { %vm1084_vm5 = vcmp.ge.f32.partialorder %v1019_v45, 0.0  ;;  %v1148_v35 = vmul.f32 0.2, %v1019_v45  ;;  %v1867_v48 = vadd.f32 %v1866_v13, %v4984_v21  ;;  %2000 = vmatpush.bf16.msra.mxu3 %v3841_v37 }
 0x272   : > { %vm2412_vm6 = vcmp.ge.f32.partialorder %v1953_v24, 0.0  ;;  %v2540_v7 = vmul.f32 0.2, %v1953_v24 }
 0x273   : > { %v1212_v9 = vsel %vm1084_vm5, %v1019_v45, %v1148_v35  ;;  %1687 = vmatmul.bf16.gmra.mxu3 %v4981_v41  ;;  %2181 = vmatmul.bf16.vlgmr.msra.gmra.mxu1 %v4805_v38 }
 0x274   : > { %v5175_v55 = vpack.c.bf16 %v1212_v9, %v1210_v42  ;;  %v5179_v26 = vsel %vm2412_vm6, %v1953_v24, %v2540_v7 }
 0x275   : > { %6377 = vst [vmem:[#allocation31_spill] sm:$0xff] %v5179_v26 }
 0x276   : > { %v1648_v45 = vpop.f32.mrf.mxu3  ;;  %1811 = vmatmul.bf16.gmra.mxu0 %v5175_v55  ;;  %1989 = vmatmul.bf16.gmra.mxu2 %v5175_v55 }
 0x277   : > { %v1955_v35 = vpop.f32.mrf.mxu2  ;;  %v1649_v24 = vadd.f32 %v1648_v45, %v5184_v19  ;;  %v5194_v9 = vpop.f32.mrf.mxu0 }
 0x278   : > { %v1956_v63 = vadd.f32 %v1955_v35, %v1867_v48  ;;  %v1868_v57 = vpop.f32.mrf.mxu1 }
 0x279   : > { %v1738_v7 = vadd.f32 %v4941_v39, %v1649_v24  ;;  %v1869_v61 = vadd.f32 %v1868_v57, %v4984_v21 }
 0x27a   : > { %v2544_v60 = vmul.f32 0.2, %v1956_v63  ;;  %vm2416_vm7 = vcmp.ge.f32.partialorder %v1956_v63, 0.0 }
 0x27b   : > { %v2479_v46 = vmul.f32 0.2, %v1738_v7  ;;  %vm2351_vm8 = vcmp.ge.f32.partialorder %v1738_v7, 0.0 }
 0x27c   : > { %v5200_v45 = vsel %vm2416_vm7, %v1956_v63, %v2544_v60 }
 0x27d   : > { %6378 = vst [vmem:[#allocation32_spill] sm:$0xff] %v5200_v45  ;;  %v5204_v57 = vsel %vm2351_vm8, %v1738_v7, %v2479_v46 }
 0x27e   : > { %v1650_v42 = vpop.f32.mrf.mxu3  ;;  %6380 = vst [vmem:[#allocation34_spill] sm:$0xff] %v5204_v57 }
 0x27f   : > { %v1651_v13 = vadd.f32 %v1650_v42, %v5184_v19  ;;  %v1957_v6 = vpop.f32.mrf.mxu2  ;;  %v5215_v46 = vpop.f32.mrf.mxu0 }
 0x280   : > { %v1958_v40 = vadd.f32 %v1957_v6, %v1869_v61  ;;  %v1871_v28 = vpop.f32.mrf.mxu1 }
 0x281   : > { %v1740_v37 = vadd.f32 %v4951_v29, %v1651_v13  ;;  %v1872_v42 = vadd.f32 %v1871_v28, %v4984_v21 }
 0x282   : > { %vm2420_vm9 = vcmp.ge.f32.partialorder %v1958_v40, 0.0  ;;  %v2548_v48 = vmul.f32 0.2, %v1958_v40 }
 0x283   : > { %vm2355_vm10 = vcmp.ge.f32.partialorder %v1740_v37, 0.0  ;;  %v2483_v39 = vmul.f32 0.2, %v1740_v37  ;;  %1692 = vmatmul.bf16.gmra.mxu3 %v5006_v12  ;;  %2186 = vmatmul.bf16.gmra.mxu1 %v4828_v5 }
 0x284   : > { %v5202_v35 = vsel %vm2420_vm9, %v1958_v40, %v2548_v48 }
 0x285   : > { %6379 = vst [vmem:[#allocation33_spill] sm:$0xff] %v5202_v35  ;;  %v5206_v24 = vsel %vm2355_vm10, %v1740_v37, %v2483_v39 }
 0x286   : > { %v1653_v13 = vpop.f32.mrf.mxu3  ;;  %2092 = vmatmul.bf16.vlgmr.msra.gmra.mxu0 %v4760_v10  ;;  %2270 = vmatmul.bf16.vlgmr.msra.gmra.mxu2 %v4760_v10 }
 0x287   : > { %v1960_v63 = vpop.f32.mrf.mxu2  ;;  %v1654_v7 = vadd.f32 %v1653_v13, %v5184_v19 }
 0x288   : > { %v1961_v40 = vadd.f32 %v1960_v63, %v1872_v42  ;;  %v1873_v6 = vpop.f32.mrf.mxu1  ;;  %v5222_v63 = vpop.f32.mrf.mxu0 }
 0x289   : > { %v1743_v60 = vadd.f32 %v4972_v59, %v1654_v7  ;;  %v1874_v37 = vadd.f32 %v1873_v6, %v4984_v21  ;;  %v3824_v59 = vld [vmem:[#allocation5 + $0x28] sm:$0xf]  ;;  %v4218_v6 = vld [vmem:[#allocation5 + $0x34] sm:$0xf0] }
 0x28a   : > { %v2552_v29 = vmul.f32 0.2, %v1961_v40  ;;  %vm2424_vm11 = vcmp.ge.f32.partialorder %v1961_v40, 0.0  ;;  %v3825_v7 = vor.u32 %v4218_v6, %v3824_v59 }
 0x28b   : > { %v2487_v35 = vmul.f32 0.2, %v1743_v60  ;;  %vm2359_vm12 = vcmp.ge.f32.partialorder %v1743_v60, 0.0 }
 0x28c   : > { %2001 = vmatpush.bf16.msra.mxu3 %v3825_v7 }
 0x28e   : > { %v1655_v48 = vpop.f32.mrf.mxu3 }
 0x28f   : > { %v1656_v39 = vadd.f32 %v1655_v48, %v5184_v19  ;;  %v1962_v28 = vpop.f32.mrf.mxu2 }
 0x290   : > { %v1963_v61 = vadd.f32 %v1962_v28, %v1874_v37  ;;  %v1876_v45 = vpop.f32.mrf.mxu1  ;;  %v5226_v37 = vsel %vm2424_vm11, %v1961_v40, %v2552_v29  ;;  %v5230_v28 = vsel %vm2359_vm12, %v1743_v60, %v2487_v35 }
 0x291   : > { %v1745_v10 = vadd.f32 %v4986_v8, %v1656_v39  ;;  %6381 = vst [vmem:[#allocation35_spill] sm:$0xff] %v5226_v37  ;;  %v1877_v26 = vadd.f32 %v1876_v45, %v4984_v21 }
 0x292   : > { %vm2428_vm4 = vcmp.ge.f32.partialorder %v1963_v61, 0.0  ;;  %v2556_v42 = vmul.f32 0.2, %v1963_v61  ;;  %6383 = vst [vmem:[#allocation37_spill] sm:$0xff] %v5230_v28 }
 0x293   : > { %v2491_v13 = vmul.f32 0.2, %v1745_v10  ;;  %1697 = vmatmul.bf16.gmra.mxu3 %v5029_v36  ;;  %2191 = vmatmul.bf16.gmra.mxu1 %v4851_v33  ;;  %vm2363_vm13 = vcmp.ge.f32.partialorder %v1745_v10, 0.0 }
 0x294   : > { %v5228_v48 = vsel %vm2428_vm4, %v1963_v61, %v2556_v42 }
 0x295   : > { %6382 = vst [vmem:[#allocation36_spill] sm:$0xff] %v5228_v48  ;;  %v5232_v8 = vsel %vm2363_vm13, %v1745_v10, %v2491_v13  ;;  %v5242_v10 = vpop.f32.mrf.mxu0 }
 0x296   : > { %v1658_v57 = vpop.f32.mrf.mxu3  ;;  %2097 = vmatmul.bf16.gmra.mxu0 %v4774_v54  ;;  %2275 = vmatmul.bf16.gmra.mxu2 %v4774_v54 }
 0x297   : > { %v1965_v40 = vpop.f32.mrf.mxu2  ;;  %v1659_v60 = vadd.f32 %v1658_v57, %v5184_v19 }
 0x298   : > { %v1966_v61 = vadd.f32 %v1965_v40, %v1877_v26  ;;  %v1878_v35 = vpop.f32.mrf.mxu1 }
 0x299   : > { %v1748_v42 = vadd.f32 %v5001_v18, %v1659_v60  ;;  %v1879_v45 = vadd.f32 %v1878_v35, %v4984_v21 }
 0x29a   : > { %v2560_v54 = vmul.f32 0.2, %v1966_v61  ;;  %vm2432_vm14 = vcmp.ge.f32.partialorder %v1966_v61, 0.0 }
 0x29b   : > { %v2495_v29 = vmul.f32 0.2, %v1748_v42  ;;  %vm2367_vm15 = vcmp.ge.f32.partialorder %v1748_v42, 0.0 }
 0x29c   : > { %v5250_v18 = vsel %vm2432_vm14, %v1966_v61, %v2560_v54 }
 0x29d   : > { %6384 = vst [vmem:[#allocation38_spill] sm:$0xff] %v5250_v18  ;;  %v5254_v35 = vsel %vm2367_vm15, %v1748_v42, %v2495_v29 }
 0x29e   : > { %v1660_v13 = vpop.f32.mrf.mxu3  ;;  %6386 = vst [vmem:[#allocation40_spill] sm:$0xff] %v5254_v35 }
 0x29f   : > { %v1661_v59 = vadd.f32 %v1660_v13, %v5184_v19  ;;  %v1967_v6 = vpop.f32.mrf.mxu2 }
 0x2a0   : > { %v1968_v39 = vadd.f32 %v1967_v6, %v1879_v45  ;;  %v1881_v37 = vpop.f32.mrf.mxu1 }
 0x2a1   : > { %v1750_v26 = vadd.f32 %v5022_v30, %v1661_v59  ;;  %v1882_v45 = vadd.f32 %v1881_v37, %v4984_v21  ;;  %v5265_v59 = vpop.f32.mrf.mxu0 }
 0x2a2   : > { %vm2436_vm0 = vcmp.ge.f32.partialorder %v1968_v39, 0.0  ;;  %v2564_v57 = vmul.f32 0.2, %v1968_v39 }
 0x2a3   : > { %v2499_v7 = vmul.f32 0.2, %v1750_v26  ;;  %1702 = vmatmul.bf16.gmra.mxu3 %v5054_v34  ;;  %2196 = vmatmul.bf16.gmra.mxu1 %v4874_v16  ;;  %vm2371_vm1 = vcmp.ge.f32.partialorder %v1750_v26, 0.0 }
 0x2a4   : > { %v5252_v40 = vsel %vm2436_vm0, %v1968_v39, %v2564_v57 }
 0x2a5   : > { %6385 = vst [vmem:[#allocation39_spill] sm:$0xff] %v5252_v40  ;;  %v5256_v60 = vsel %vm2371_vm1, %v1750_v26, %v2499_v7 }
 0x2a6   : > { %6387 = vst [vmem:[#allocation41_spill] sm:$0xff] %v5256_v60  ;;  %v1663_v13 = vpop.f32.mrf.mxu3  ;;  %2102 = vmatmul.bf16.gmra.mxu0 %v4790_v14  ;;  %2280 = vmatmul.bf16.gmra.mxu2 %v4790_v14 }
 0x2a7   : > { %v1970_v39 = vpop.f32.mrf.mxu2  ;;  %v1664_v6 = vadd.f32 %v1663_v13, %v5184_v19 }
 0x2a8   : > { %v1971_v29 = vadd.f32 %v1970_v39, %v1882_v45  ;;  %v1883_v42 = vpop.f32.mrf.mxu1 }
 0x2a9   : > { %v1753_v54 = vadd.f32 %v5031_v0, %v1664_v6  ;;  %v1884_v26 = vadd.f32 %v1883_v42, %v4984_v21  ;;  %v5271_v40 = vpop.f32.mrf.mxu0  ;;  %v3808_v0 = vld [vmem:[#allocation5 + $0x8] sm:$0xf]  ;;  %v4214_v42 = vld [vmem:[#allocation5 + $0x14] sm:$0xf0] }
 0x2aa   : > { %v2568_v30 = vmul.f32 0.2, %v1971_v29  ;;  %vm2440_vm2 = vcmp.ge.f32.partialorder %v1971_v29, 0.0 }
 0x2ab   : > { %v2503_v61 = vmul.f32 0.2, %v1753_v54  ;;  %vm2375_vm3 = vcmp.ge.f32.partialorder %v1753_v54, 0.0 }
 0x2ac   : > { %v5276_v6 = vsel %vm2440_vm2, %v1971_v29, %v2568_v30 }
 0x2ad   : > { %6388 = vst [vmem:[#allocation42_spill] sm:$0xff] %v5276_v6 }
 0x2ae   : > { %v1665_v37 = vpop.f32.mrf.mxu3 }
 0x2af   : > { %v1666_v57 = vadd.f32 %v1665_v37, %v5184_v19  ;;  %v1972_v7 = vpop.f32.mrf.mxu2  ;;  %v3809_v37 = vor.u32 %v4214_v42, %v3808_v0 }
 0x2b0   : > { %v1973_v14 = vadd.f32 %v1972_v7, %v1884_v26  ;;  %v1886_v18 = vpop.f32.mrf.mxu1  ;;  %v5280_v7 = vsel %vm2375_vm3, %v1753_v54, %v2503_v61 }
 0x2b1   : > { %v1755_v45 = vadd.f32 %v5049_v53, %v1666_v57  ;;  %6390 = vst [vmem:[#allocation44_spill] sm:$0xff] %v5280_v7  ;;  %2002 = vmatpush.bf16.msra.mxu3 %v3809_v37 }
 0x2b2   : > { %vm2444_vm5 = vcmp.ge.f32.partialorder %v1973_v14, 0.0  ;;  %v2572_v13 = vmul.f32 0.2, %v1973_v14 }
 0x2b3   : > { %v2507_v39 = vmul.f32 0.2, %v1755_v45  ;;  %1707 = vmatmul.bf16.gmra.mxu3 %v5079_v27  ;;  %2201 = vmatmul.bf16.gmra.mxu1 %v4895_v51  ;;  %vm2379_vm6 = vcmp.ge.f32.partialorder %v1755_v45, 0.0 }
 0x2b4   : > { %v5278_v26 = vsel %vm2444_vm5, %v1973_v14, %v2572_v13  ;;  %v5291_v14 = vpop.f32.mrf.mxu0 }
 0x2b5   : > { %6389 = vst [vmem:[#allocation43_spill] sm:$0xff] %v5278_v26  ;;  %v5282_v48 = vsel %vm2379_vm6, %v1755_v45, %v2507_v39 }
 0x2b6   : > { %6391 = vst [vmem:[#allocation45_spill] sm:$0xff] %v5282_v48  ;;  %v1668_v57 = vpop.f32.mrf.mxu3  ;;  %2107 = vmatmul.bf16.gmra.mxu0 %v4812_v44  ;;  %2285 = vmatmul.bf16.gmra.mxu2 %v4812_v44 }
 0x2b7   : > { %v1669_v29 = vadd.f32 %v1668_v57, %v5184_v19 }
 0x2b8   : > { %v1888_v30 = vpop.f32.mrf.mxu1 }
 0x2b9   : > { %v1758_v61 = vadd.f32 %v5063_v50, %v1669_v29  ;;  %v1887_v29 = vadd.f32 %v1886_v18, %v4984_v21 }
 0x2bb   : > { %v2511_v39 = vmul.f32 0.2, %v1758_v61  ;;  %vm2383_vm7 = vcmp.ge.f32.partialorder %v1758_v61, 0.0 }
 0x2bd   : > { %v5300_v37 = vsel %vm2383_vm7, %v1758_v61, %v2511_v39 }
 0x2be   : > { %v1670_v54 = vpop.f32.mrf.mxu3  ;;  %6392 = vst [vmem:[#allocation46_spill] sm:$0xff] %v5300_v37 }
 0x2bf   : > { %v1671_v45 = vadd.f32 %v1670_v54, %v5184_v19 }
 0x2c0   : > { %v1891_v13 = vpop.f32.mrf.mxu1 }
 0x2c1   : > { %v1760_v0 = vadd.f32 %v5077_v1, %v1671_v45 }
 0x2c3   : > { %v2515_v44 = vmul.f32 0.2, %v1760_v0  ;;  %1712 = vmatmul.bf16.gmra.mxu3 %v5099_v20  ;;  %v5297_v42 = vpop.f32.mrf.mxu0  ;;  %2206 = vmatmul.bf16.gmra.mxu1 %v4914_v32  ;;  %vm2387_vm8 = vcmp.ge.f32.partialorder %v1760_v0, 0.0 }
 0x2c5   : > { %v5302_v57 = vsel %vm2387_vm8, %v1760_v0, %v2515_v44  ;;  %v1889_v44 = vadd.f32 %v1888_v30, %v4984_v21  ;;  %v4282_v30 = vld [vmem:[%s6275_s7 + $0x38] sm:$0xff] }
 0x2c6   : > { %6393 = vst [vmem:[#allocation47_spill] sm:$0xff] %v5302_v57  ;;  %v1673_v50 = vpop.f32.mrf.mxu3  ;;  %2112 = vmatmul.bf16.gmra.mxu0 %v4835_v11  ;;  %2290 = vmatmul.bf16.gmra.mxu2 %v4835_v11 }
 0x2c7   : > { %v1674_v45 = vadd.f32 %v1673_v50, %v5184_v19  ;;  %3059 = vmatpush.bf16.msrb.mxu3 %v4282_v30 }
 0x2c8   : > { %v1893_v54 = vpop.f32.mrf.mxu1 }
 0x2c9   : > { %v1975_v53 = vpop.f32.mrf.mxu2  ;;  %v1763_v61 = vadd.f32 %v5094_v22, %v1674_v45  ;;  %v1894_v30 = vadd.f32 %v1893_v54, %v4984_v21 }
 0x2ca   : > { %v1976_v35 = vadd.f32 %v1975_v53, %v1887_v29 }
 0x2cb   : > { %v5310_v6 = vpop.f32.mrf.mxu0  ;;  %v2519_v26 = vmul.f32 0.2, %v1763_v61  ;;  %vm2391_vm9 = vcmp.ge.f32.partialorder %v1763_v61, 0.0 }
 0x2cc   : > { %v2576_v37 = vmul.f32 0.2, %v1976_v35  ;;  %vm2448_vm10 = vcmp.ge.f32.partialorder %v1976_v35, 0.0 }
 0x2ce   : > { %v1675_v39 = vpop.f32.mrf.mxu3 }
 0x2cf   : > { %v1676_v0 = vadd.f32 %v1675_v39, %v5184_v19 }
 0x2d0   : > { %v5315_v11 = vpop.f32.mrf.mxu1 }
 0x2d1   : > { %v1765_v1 = vadd.f32 %v5101_v62, %v1676_v0  ;;  %v1977_v18 = vpop.f32.mrf.mxu2  ;;  %v5325_v62 = vsel %vm2391_vm9, %v1763_v61, %v2519_v26  ;;  %v1892_v26 = vadd.f32 %v1891_v13, %v4984_v21 }
 0x2d2   : > { %v1978_v50 = vadd.f32 %v1977_v18, %v1889_v44  ;;  %6394 = vst [vmem:[#allocation48_spill] sm:$0xff] %v5325_v62  ;;  %v5333_v44 = vsel %vm2448_vm10, %v1976_v35, %v2576_v37  ;;  %v4290_v35 = vld [vmem:[%s6275_s7 + $0x78] sm:$0xff] }
 0x2d3   : > { %v2523_v53 = vmul.f32 0.2, %v1765_v1  ;;  %1717 = vmatmul.bf16.gmra.mxu3 %v5125_v49  ;;  %v5319_v29 = vpop.f32.mrf.mxu0  ;;  %2211 = vmatmul.bf16.gmra.mxu1 %v4933_v56  ;;  %vm2395_vm11 = vcmp.ge.f32.partialorder %v1765_v1, 0.0  ;;  %6396 = vst [vmem:[#allocation50_spill] sm:$0xff] %v5333_v44  ;;  %v4298_v37 = vld [vmem:[%s6275_s7 + $0xb8] sm:$0xff] }
 0x2d4   : > { %vm2452_vm12 = vcmp.ge.f32.partialorder %v1978_v50, 0.0  ;;  %v2580_v22 = vmul.f32 0.2, %v1978_v50  ;;  %3148 = vmatpush.bf16.msrb.mxu0 %v4290_v35  ;;  %3237 = vmatpush.bf16.msrb.mxu1 %v4298_v37 }
 0x2d5   : > { %v5327_v45 = vsel %vm2395_vm11, %v1765_v1, %v2523_v53 }
 0x2d6   : > { %6395 = vst [vmem:[#allocation49_spill] sm:$0xff] %v5327_v45  ;;  %v1678_v39 = vpop.f32.mrf.mxu3  ;;  %2117 = vmatmul.bf16.gmra.mxu0 %v4858_v47  ;;  %2295 = vmatmul.bf16.gmra.mxu2 %v4858_v47  ;;  %v5335_v18 = vsel %vm2452_vm12, %v1978_v50, %v2580_v22  ;;  %v4306_v47 = vld [vmem:[%s6275_s7 + $0xf8] sm:$0xff] }
 0x2d7   : > { %6397 = vst [vmem:[#allocation51_spill] sm:$0xff] %v5335_v18  ;;  %v1679_v61 = vadd.f32 %v1678_v39, %v5184_v19  ;;  %3326 = vmatpush.bf16.msrb.mxu2 %v4306_v47 }
 0x2d8   : > { %v1898_v1 = vpop.f32.mrf.mxu1 }
 0x2d9   : > { %v1980_v53 = vpop.f32.mrf.mxu2  ;;  %v1768_v13 = vadd.f32 %v5121_v3, %v1679_v61 }
 0x2da   : > { %v1981_v7 = vadd.f32 %v1980_v53, %v1892_v26 }
 0x2db   : > { %v5341_v48 = vpop.f32.mrf.mxu0  ;;  %v2527_v26 = vmul.f32 0.2, %v1768_v13  ;;  %vm2399_vm4 = vcmp.ge.f32.partialorder %v1768_v13, 0.0 }
 0x2dc   : > { %v2584_v0 = vmul.f32 0.2, %v1981_v7  ;;  %vm2456_vm13 = vcmp.ge.f32.partialorder %v1981_v7, 0.0 }
 0x2dd   : > { %v5360_v54 = vsel %vm2399_vm4, %v1768_v13, %v2527_v26  ;;  %v1897_v13 = vadd.f32 %v5315_v11, %v4984_v21 }
 0x2de   : > { %v1680_v50 = vpop.f32.mrf.mxu3  ;;  %6398 = vst [vmem:[#allocation52_spill] sm:$0xff] %v5360_v54  ;;  %v5368_v35 = vsel %vm2456_vm13, %v1981_v7, %v2584_v0  ;;  %v1899_v0 = vadd.f32 %v1898_v1, %v4984_v21 }
 0x2df   : > { %v1681_v22 = vadd.f32 %v1680_v50, %v5184_v19  ;;  %6400 = vst [vmem:[#allocation54_spill] sm:$0xff] %v5368_v35 }
 0x2e0   : > { %v1901_v39 = vpop.f32.mrf.mxu1 }
 0x2e1   : > { %v1770_v53 = vadd.f32 %v5142_v17, %v1681_v22  ;;  %v1982_v57 = vpop.f32.mrf.mxu2 }
 0x2e2   : > { %v1983_v44 = vadd.f32 %v1982_v57, %v1894_v30 }
 0x2e3   : > { %v2531_v18 = vmul.f32 0.2, %v1770_v53  ;;  %1722 = vmatmul.bf16.gmra.mxu3 %v5150_v31  ;;  %v5357_v3 = vpop.f32.mrf.mxu0  ;;  %2216 = vmatmul.bf16.gmra.mxu1 %v4957_v43  ;;  %vm2403_vm14 = vcmp.ge.f32.partialorder %v1770_v53, 0.0 }
 0x2e4   : > { %vm2460_vm15 = vcmp.ge.f32.partialorder %v1983_v44, 0.0  ;;  %v2588_v61 = vmul.f32 0.2, %v1983_v44 }
 0x2e5   : > { %v5362_v47 = vsel %vm2403_vm14, %v1770_v53, %v2531_v18 }
 0x2e6   : > { %6399 = vst [vmem:[#allocation53_spill] sm:$0xff] %v5362_v47  ;;  %v1683_v17 = vpop.f32.mrf.mxu3  ;;  %2122 = vmatmul.bf16.gmra.mxu0 %v4881_v23  ;;  %2300 = vmatmul.bf16.gmra.mxu2 %v4881_v23  ;;  %v5370_v37 = vsel %vm2460_vm15, %v1983_v44, %v2588_v61 }
 0x2e7   : > { %6401 = vst [vmem:[#allocation55_spill] sm:$0xff] %v5370_v37  ;;  %v1684_v18 = vadd.f32 %v1683_v17, %v5184_v19 }
 0x2e8   : > { %v1903_v30 = vpop.f32.mrf.mxu1 }
 0x2e9   : > { %v1985_v22 = vpop.f32.mrf.mxu2  ;;  %v1773_v23 = vadd.f32 %v5152_v58, %v1684_v18  ;;  %v6404_v18 = vld [vmem:[#allocation11_spill] sm:$0xff] }
 0x2ea   : > { %v1986_v26 = vadd.f32 %v1985_v22, %v1897_v13 }
 0x2eb   : > { %v5377_v53 = vpop.f32.mrf.mxu0  ;;  %v2535_v44 = vmul.f32 0.2, %v1773_v23  ;;  %vm2407_vm0 = vcmp.ge.f32.partialorder %v1773_v23, 0.0 }
 0x2ec   : > { %v2592_v11 = vmul.f32 0.2, %v1986_v26  ;;  %vm2464_vm1 = vcmp.ge.f32.partialorder %v1986_v26, 0.0 }
 0x2ed   : > { %v5387_v1 = vsel %vm2407_vm0, %v1773_v23, %v2535_v44 }
 0x2ee   : > { %v1685_v57 = vpop.f32.mrf.mxu3  ;;  %6402 = vst [vmem:[#allocation56_spill] sm:$0xff] %v5387_v1  ;;  %v5395_v22 = vsel %vm2464_vm1, %v1986_v26, %v2592_v11  ;;  %v4289_v26 = vld [vmem:[%s6275_s7 + $0x70] sm:$0xff] }
 0x2ef   : > { %v1686_v7 = vadd.f32 %v1685_v57, %v5184_v19  ;;  %6405 = vst [vmem:[#allocation11_spill] sm:$0xff] %v5395_v22  ;;  %v4297_v11 = vld [vmem:[%s6275_s7 + $0xb0] sm:$0xff]  ;;  %3149 = vmatpush.bf16.msrb.mxu0 %v4289_v26 }
 0x2f0   : > { %v2182_v58 = vpop.f32.mrf.mxu1  ;;  %3238 = vmatpush.bf16.msrb.mxu1 %v4297_v11 }
 0x2f1   : > { %v1775_v61 = vadd.f32 %v5168_v52, %v1686_v7  ;;  %v1987_v50 = vpop.f32.mrf.mxu2  ;;  %v4281_v7 = vld [vmem:[%s6275_s7 + $0x30] sm:$0xff] }
 0x2f2   : > { %v1988_v35 = vadd.f32 %v1987_v50, %v1899_v0  ;;  %v1902_v0 = vadd.f32 %v1901_v39, %v4984_v21  ;;  %3060 = vmatpush.bf16.msrb.mxu3 %v4281_v7 }
 0x2f3   : > { %v2539_v17 = vmul.f32 0.2, %v1775_v61  ;;  %v5383_v37 = vpop.f32.mrf.mxu0  ;;  %2003 = vmatmul.bf16.vlgmr.msra.gmra.mxu3 %v4805_v38  ;;  %2221 = vmatmul.bf16.gmra.mxu1 %v4981_v41  ;;  %vm2411_vm2 = vcmp.ge.f32.partialorder %v1775_v61, 0.0 }
 0x2f4   : > { %vm2468_vm3 = vcmp.ge.f32.partialorder %v1988_v35, 0.0  ;;  %v2596_v57 = vmul.f32 0.2, %v1988_v35 }
 0x2f5   : > { %v5389_v13 = vsel %vm2411_vm2, %v1775_v61, %v2539_v17 }
 0x2f6   : > { %6403 = vst [vmem:[#allocation57_spill] sm:$0xff] %v5389_v13  ;;  %v1688_v52 = vpop.f32.mrf.mxu3  ;;  %2127 = vmatmul.bf16.gmra.mxu0 %v6404_v18  ;;  %2305 = vmatmul.bf16.gmra.mxu2 %v6404_v18  ;;  %v5397_v38 = vsel %vm2468_vm3, %v1988_v35, %v2596_v57  ;;  %v4305_v35 = vld [vmem:[%s6275_s7 + $0xf0] sm:$0xff] }
 0x2f7   : > { %6406 = vst [vmem:[#allocation58_spill] sm:$0xff] %v5397_v38  ;;  %v1689_v44 = vadd.f32 %v1688_v52, %v5184_v19  ;;  %3327 = vmatpush.bf16.msrb.mxu2 %v4305_v35  ;;  %v6409_v35 = vld [vmem:[#allocation12_spill] sm:$0xff] }
 0x2f8   : > { %v2184_v57 = vpop.f32.mrf.mxu1 }
 0x2f9   : > { %v1990_v61 = vpop.f32.mrf.mxu2  ;;  %v1778_v39 = vadd.f32 %v5181_v25, %v1689_v44 }
 0x2fa   : > { %v1991_v17 = vadd.f32 %v1990_v61, %v1902_v0  ;;  %v1904_v0 = vadd.f32 %v1903_v30, %v4984_v21  ;;  %v5428_v21 = vld [vmem:[%s6274_s6] sm:$0xf] }
 0x2fb   : > { %v5406_v18 = vpop.f32.mrf.mxu0  ;;  %v2543_v61 = vmul.f32 0.2, %v1778_v39  ;;  %vm2415_vm5 = vcmp.ge.f32.partialorder %v1778_v39, 0.0 }
 0x2fc   : > { %v2600_v22 = vmul.f32 0.2, %v1991_v17  ;;  %vm2472_vm6 = vcmp.ge.f32.partialorder %v1991_v17, 0.0 }
 0x2fe   : > { %v1690_v52 = vpop.f32.mrf.mxu3  ;;  %v5442_v11 = vsel %vm2472_vm6, %v1991_v17, %v2600_v22 }
 0x2ff   : > { %v1691_v7 = vadd.f32 %v1690_v52, %v5184_v19  ;;  %6410 = vst [vmem:[#allocation12_spill] sm:$0xff] %v5442_v11 }
 0x301   : > { %v1780_v23 = vadd.f32 %v5194_v9, %v1691_v7  ;;  %v1992_v50 = vpop.f32.mrf.mxu2  ;;  %v5431_v9 = vperm.slane %v5428_v21, 3 }
 0x302   : > { %v1993_v38 = vadd.f32 %v1992_v50, %v1904_v0  ;;  %v5433_v50 = vsel %vm2415_vm5, %v1778_v39, %v2543_v61 }
 0x303   : > { %v2547_v1 = vmul.f32 0.2, %v1780_v23  ;;  %2008 = vmatmul.bf16.gmra.mxu3 %v4828_v5  ;;  %v5422_v25 = vpop.f32.mrf.mxu0  ;;  %2226 = vmatmul.bf16.gmra.mxu1 %v5006_v12  ;;  %vm2419_vm7 = vcmp.ge.f32.partialorder %v1780_v23, 0.0  ;;  %6407 = vst [vmem:[#allocation59_spill] sm:$0xff] %v5433_v50  ;;  %v2183_v39 = vadd.f32 %v2182_v58, %v5431_v9 }
 0x304   : > { %vm2476_vm8 = vcmp.ge.f32.partialorder %v1993_v38, 0.0  ;;  %v2604_v30 = vmul.f32 0.2, %v1993_v38 }
 0x305   : > { %v5435_v44 = vsel %vm2419_vm7, %v1780_v23, %v2547_v1  ;;  %v2187_v1 = vpop.f32.mrf.mxu1 }
 0x306   : > { %6408 = vst [vmem:[#allocation60_spill] sm:$0xff] %v5435_v44  ;;  %v1693_v5 = vpop.f32.mrf.mxu3  ;;  %2132 = vmatmul.bf16.gmra.mxu0 %v6409_v35  ;;  %2310 = vmatmul.bf16.gmra.mxu2 %v6409_v35  ;;  %v5444_v52 = vsel %vm2476_vm8, %v1993_v38, %v2604_v30  ;;  %v2185_v38 = vadd.f32 %v2184_v57, %v5431_v9 }
 0x307   : > { %6411 = vst [vmem:[#allocation61_spill] sm:$0xff] %v5444_v52  ;;  %v1694_v23 = vadd.f32 %v1693_v5, %v5184_v19 }
 0x309   : > { %v2271_v0 = vpop.f32.mrf.mxu2  ;;  %v1783_v35 = vadd.f32 %v5215_v46, %v1694_v23 }
 0x30a   : > { %v2272_v61 = vadd.f32 %v2271_v0, %v2183_v39  ;;  %v6414_v0 = vld [vmem:[#allocation13_spill] sm:$0xff] }
 0x30b   : > { %v5450_v13 = vpop.f32.mrf.mxu0  ;;  %v2551_v17 = vmul.f32 0.2, %v1783_v35  ;;  %vm2423_vm9 = vcmp.ge.f32.partialorder %v1783_v35, 0.0 }
 0x30c   : > { %v2482_v11 = vmul.f32 0.2, %v2272_v61  ;;  %vm2354_vm10 = vcmp.ge.f32.partialorder %v2272_v61, 0.0 }
 0x30d   : > { %v2189_v58 = vpop.f32.mrf.mxu1  ;;  %v5463_v57 = vsel %vm2423_vm9, %v1783_v35, %v2551_v17  ;;  %v2188_v35 = vadd.f32 %v2187_v1, %v5431_v9 }
 0x30e   : > { %v1695_v26 = vpop.f32.mrf.mxu3  ;;  %6412 = vst [vmem:[#allocation62_spill] sm:$0xff] %v5463_v57 }
 0x30f   : > { %v1696_v22 = vadd.f32 %v1695_v26, %v5184_v19 }
 0x311   : > { %v1785_v30 = vadd.f32 %v5222_v63, %v1696_v22  ;;  %v2273_v7 = vpop.f32.mrf.mxu2  ;;  %v4280_v63 = vld [vmem:[%s6275_s7 + $0x28] sm:$0xff] }
 0x312   : > { %v2274_v52 = vadd.f32 %v2273_v7, %v2185_v38  ;;  %v5467_v7 = vsel %vm2354_vm10, %v2272_v61, %v2482_v11  ;;  %3061 = vmatpush.bf16.msrb.mxu3 %v4280_v63  ;;  %v4296_v63 = vld [vmem:[%s6275_s7 + $0xa8] sm:$0xff] }
 0x313   : > { %v2555_v5 = vmul.f32 0.2, %v1785_v30  ;;  %2013 = vmatmul.bf16.gmra.mxu3 %v4851_v33  ;;  %v5457_v39 = vpop.f32.mrf.mxu0  ;;  %2231 = vmatmul.bf16.gmra.mxu1 %v5029_v36  ;;  %vm2427_vm11 = vcmp.ge.f32.partialorder %v1785_v30, 0.0 }
 0x314   : > { %vm2358_vm12 = vcmp.ge.f32.partialorder %v2274_v52, 0.0  ;;  %v2486_v46 = vmul.f32 0.2, %v2274_v52  ;;  %3239 = vmatpush.bf16.msrb.mxu1 %v4296_v63  ;;  %v6417_v63 = vld [vmem:[#allocation14_spill] sm:$0xff] }
 0x315   : > { %v5465_v26 = vsel %vm2427_vm11, %v1785_v30, %v2555_v5  ;;  %v2192_v30 = vpop.f32.mrf.mxu1  ;;  %v4304_v5 = vld [vmem:[%s6275_s7 + $0xe8] sm:$0xff] }
 0x316   : > { %6413 = vst [vmem:[#allocation63_spill] sm:$0xff] %v5465_v26  ;;  %v5469_v23 = vsel %vm2358_vm12, %v2274_v52, %v2486_v46  ;;  %v1698_v33 = vpop.f32.mrf.mxu3  ;;  %2137 = vmatmul.bf16.gmra.mxu0 %v6414_v0  ;;  %2315 = vmatmul.bf16.gmra.mxu2 %v6414_v0  ;;  %v4288_v46 = vld [vmem:[%s6275_s7 + $0x68] sm:$0xff] }
 0x317   : > { %v1699_v17 = vadd.f32 %v1698_v33, %v5184_v19  ;;  %3328 = vmatpush.bf16.msrb.mxu2 %v4304_v5  ;;  %3150 = vmatpush.bf16.msrb.mxu0 %v4288_v46 }
 0x319   : > { %v2276_v11 = vpop.f32.mrf.mxu2  ;;  %v1788_v1 = vadd.f32 %v5242_v10, %v1699_v17 }
 0x31a   : > { %v2277_v61 = vadd.f32 %v2276_v11, %v2188_v35  ;;  %v2190_v35 = vadd.f32 %v2189_v58, %v5431_v9 }
 0x31b   : > { %v5479_v52 = vpop.f32.mrf.mxu0  ;;  %v2559_v11 = vmul.f32 0.2, %v1788_v1  ;;  %vm2431_vm4 = vcmp.ge.f32.partialorder %v1788_v1, 0.0 }
 0x31c   : > { %v2490_v57 = vmul.f32 0.2, %v2277_v61  ;;  %vm2362_vm13 = vcmp.ge.f32.partialorder %v2277_v61, 0.0 }
 0x31d   : > { %v5498_v5 = vsel %vm2431_vm4, %v1788_v1, %v2559_v11  ;;  %v2193_v1 = vadd.f32 %v2192_v30, %v5431_v9 }
 0x31e   : > { %v1700_v33 = vpop.f32.mrf.mxu3  ;;  %6415 = vst [vmem:[#allocation13_spill] sm:$0xff] %v5498_v5 }
 0x31f   : > { %v1701_v0 = vadd.f32 %v1700_v33, %v5184_v19 }
 0x321   : > { %v1790_v22 = vadd.f32 %v5265_v59, %v1701_v0  ;;  %v2278_v38 = vpop.f32.mrf.mxu2  ;;  %v2194_v59 = vpop.f32.mrf.mxu1 }
 0x322   : > { %v2279_v26 = vadd.f32 %v2278_v38, %v2190_v35  ;;  %v5504_v38 = vsel %vm2362_vm13, %v2277_v61, %v2490_v57  ;;  %v2195_v61 = vadd.f32 %v2194_v59, %v5431_v9  ;;  %v4279_v59 = vld [vmem:[%s6275_s7 + $0x20] sm:$0xff] }
 0x323   : > { %v2563_v50 = vmul.f32 0.2, %v1790_v22  ;;  %2018 = vmatmul.bf16.gmra.mxu3 %v4874_v16  ;;  %v5495_v10 = vpop.f32.mrf.mxu0  ;;  %2236 = vmatmul.bf16.gmra.mxu1 %v5054_v34  ;;  %vm2435_vm14 = vcmp.ge.f32.partialorder %v1790_v22, 0.0 }
 0x324   : > { %vm2366_vm15 = vcmp.ge.f32.partialorder %v2279_v26, 0.0  ;;  %v2494_v17 = vmul.f32 0.2, %v2279_v26  ;;  %3062 = vmatpush.bf16.msrb.mxu3 %v4279_v59 }
 0x325   : > { %v5500_v58 = vsel %vm2435_vm14, %v1790_v22, %v2563_v50 }
 0x326   : > { %6416 = vst [vmem:[#allocation64_spill] sm:$0xff] %v5500_v58  ;;  %v1703_v46 = vpop.f32.mrf.mxu3  ;;  %2142 = vmatmul.bf16.gmra.mxu0 %v6417_v63  ;;  %2320 = vmatmul.bf16.gmra.mxu2 %v6417_v63  ;;  %v5506_v16 = vsel %vm2366_vm15, %v2279_v26, %v2494_v17 }
 0x327   : > { %v1704_v50 = vadd.f32 %v1703_v46, %v5184_v19 }
 0x329   : > { %v2281_v22 = vpop.f32.mrf.mxu2  ;;  %v1793_v63 = vadd.f32 %v5271_v40, %v1704_v50  ;;  %v2197_v17 = vpop.f32.mrf.mxu1 }
 0x32a   : > { %v2282_v35 = vadd.f32 %v2281_v22, %v2193_v1  ;;  %v6420_v22 = vld [vmem:[#allocation15_spill] sm:$0xff] }
 0x32b   : > { %v5514_v11 = vpop.f32.mrf.mxu0  ;;  %v2567_v33 = vmul.f32 0.2, %v1793_v63  ;;  %vm2439_vm0 = vcmp.ge.f32.partialorder %v1793_v63, 0.0 }
 0x32c   : > { %v2498_v30 = vmul.f32 0.2, %v2282_v35  ;;  %vm2370_vm1 = vcmp.ge.f32.partialorder %v2282_v35, 0.0 }
 0x32e   : > { %v1705_v57 = vpop.f32.mrf.mxu3 }
 0x32f   : > { %v1706_v26 = vadd.f32 %v1705_v57, %v5184_v19 }
 0x331   : > { %v1795_v5 = vadd.f32 %v5291_v14, %v1706_v26  ;;  %v2283_v0 = vpop.f32.mrf.mxu2  ;;  %v5527_v14 = vsel %vm2439_vm0, %v1793_v63, %v2567_v33  ;;  %v2198_v33 = vadd.f32 %v2197_v17, %v5431_v9 }
 0x332   : > { %v2284_v58 = vadd.f32 %v2283_v0, %v2195_v61  ;;  %6418 = vst [vmem:[#allocation14_spill] sm:$0xff] %v5527_v14 }
 0x333   : > { %v2571_v46 = vmul.f32 0.2, %v1795_v5  ;;  %2023 = vmatmul.bf16.gmra.mxu3 %v4895_v51  ;;  %v5521_v1 = vpop.f32.mrf.mxu0  ;;  %2241 = vmatmul.bf16.gmra.mxu1 %v5079_v27  ;;  %vm2443_vm2 = vcmp.ge.f32.partialorder %v1795_v5, 0.0  ;;  %v5533_v51 = vsel %vm2370_vm1, %v2282_v35, %v2498_v30  ;;  %v4287_v35 = vld [vmem:[%s6275_s7 + $0x60] sm:$0xff] }
 0x334   : > { %vm2374_vm3 = vcmp.ge.f32.partialorder %v2284_v58, 0.0  ;;  %v2502_v40 = vmul.f32 0.2, %v2284_v58  ;;  %v4295_v30 = vld [vmem:[%s6275_s7 + $0xa0] sm:$0xff]  ;;  %3151 = vmatpush.bf16.msrb.mxu0 %v4287_v35 }
 0x335   : > { %v5529_v50 = vsel %vm2443_vm2, %v1795_v5, %v2571_v46  ;;  %v2199_v46 = vpop.f32.mrf.mxu1  ;;  %3240 = vmatpush.bf16.msrb.mxu1 %v4295_v30  ;;  %v6423_v30 = vld [vmem:[#allocation24_spill] sm:$0xff] }
 0x336   : > { %6419 = vst [vmem:[#allocation65_spill] sm:$0xff] %v5529_v50  ;;  %v1708_v0 = vpop.f32.mrf.mxu3  ;;  %2147 = vmatmul.bf16.gmra.mxu0 %v6420_v22  ;;  %2325 = vmatmul.bf16.gmra.mxu2 %v6420_v22  ;;  %v5535_v57 = vsel %vm2374_vm3, %v2284_v58, %v2502_v40  ;;  %v4303_v58 = vld [vmem:[%s6275_s7 + $0xe0] sm:$0xff] }
 0x337   : > { %v1709_v5 = vadd.f32 %v1708_v0, %v5184_v19  ;;  %3329 = vmatpush.bf16.msrb.mxu2 %v4303_v58  ;;  %v2200_v0 = vadd.f32 %v2199_v46, %v5431_v9 }
 0x339   : > { %v2286_v63 = vpop.f32.mrf.mxu2  ;;  %v1798_v17 = vadd.f32 %v5297_v42, %v1709_v5 }
 0x33a   : > { %v2287_v44 = vadd.f32 %v2286_v63, %v2198_v33 }
 0x33b   : > { %v5543_v54 = vpop.f32.mrf.mxu0  ;;  %v2575_v22 = vmul.f32 0.2, %v1798_v17  ;;  %vm2447_vm5 = vcmp.ge.f32.partialorder %v1798_v17, 0.0 }
 0x33c   : > { %v2506_v26 = vmul.f32 0.2, %v2287_v44  ;;  %vm2378_vm6 = vcmp.ge.f32.partialorder %v2287_v44, 0.0 }
 0x33d   : > { %v5562_v5 = vpop.f32.mrf.mxu1  ;;  %v5564_v58 = vsel %vm2447_vm5, %v1798_v17, %v2575_v22 }
 0x33e   : > { %v1710_v40 = vpop.f32.mrf.mxu3  ;;  %6421 = vst [vmem:[#allocation15_spill] sm:$0xff] %v5564_v58 }
 0x33f   : > { %v1711_v59 = vadd.f32 %v1710_v40, %v5184_v19  ;;  %v5570_v40 = vsel %vm2378_vm6, %v2287_v44, %v2506_v26 }
 0x341   : > { %v1800_v33 = vadd.f32 %v5310_v6, %v1711_v59  ;;  %v2288_v63 = vpop.f32.mrf.mxu2 }
 0x342   : > { %v2289_v61 = vadd.f32 %v2288_v63, %v2200_v0  ;;  %v4302_v0 = vld [vmem:[%s6275_s7 + $0xd8] sm:$0xff] }
 0x343   : > { %v2579_v14 = vmul.f32 0.2, %v1800_v33  ;;  %2028 = vmatmul.bf16.gmra.mxu3 %v4914_v32  ;;  %v5559_v42 = vpop.f32.mrf.mxu0  ;;  %2246 = vmatmul.bf16.gmra.mxu1 %v5099_v20  ;;  %vm2451_vm7 = vcmp.ge.f32.partialorder %v1800_v33, 0.0 }
 0x344   : > { %vm2382_vm8 = vcmp.ge.f32.partialorder %v2289_v61, 0.0  ;;  %v2510_v46 = vmul.f32 0.2, %v2289_v61  ;;  %3330 = vmatpush.bf16.msrb.mxu2 %v4302_v0  ;;  %v4293_v0 = vld [vmem:[%s6275_s7 + $0x90] sm:$0xff] }
 0x345   : > { %v5566_v6 = vsel %vm2451_vm7, %v1800_v33, %v2579_v14  ;;  %v5584_v63 = vpop.f32.mrf.mxu1 }
 0x346   : > { %6422 = vst [vmem:[#allocation66_spill] sm:$0xff] %v5566_v6  ;;  %v1713_v35 = vpop.f32.mrf.mxu3  ;;  %2152 = vmatmul.bf16.gmra.mxu0 %v6423_v30  ;;  %2330 = vmatmul.bf16.gmra.mxu2 %v6423_v30  ;;  %v5572_v32 = vsel %vm2382_vm8, %v2289_v61, %v2510_v46  ;;  %v4283_v6 = vld [vmem:[%s6275_s7 + $0x40] sm:$0xff] }
 0x347   : > { %v1714_v17 = vadd.f32 %v1713_v35, %v5184_v19 }
 0x349   : > { %v5579_v22 = vpop.f32.mrf.mxu2  ;;  %v1803_v33 = vadd.f32 %v5319_v29, %v1714_v17  ;;  %v4278_v29 = vld [vmem:[%s6275_s7 + $0x18] sm:$0xff] }
 0x34a   : > { %3063 = vmatpush.bf16.msrb.mxu3 %v4278_v29  ;;  %v4301_v29 = vld [vmem:[%s6275_s7 + $0xd0] sm:$0xff] }
 0x34b   : > { %v5581_v14 = vpop.f32.mrf.mxu0  ;;  %v2583_v61 = vmul.f32 0.2, %v1803_v33  ;;  %vm2455_vm9 = vcmp.ge.f32.partialorder %v1803_v33, 0.0  ;;  %3331 = vmatpush.bf16.msrb.mxu2 %v4301_v29 }
 0x34d   : > { %v5597_v17 = vsel %vm2455_vm9, %v1803_v33, %v2583_v61  ;;  %v5611_v33 = vpop.f32.mrf.mxu1 }
 0x34e   : > { %v1715_v44 = vpop.f32.mrf.mxu3  ;;  %6424 = vst [vmem:[#allocation24_spill] sm:$0xff] %v5597_v17  ;;  %v4300_v17 = vld [vmem:[%s6275_s7 + $0xc8] sm:$0xff] }
 0x34f   : > { %v1716_v26 = vadd.f32 %v1715_v44, %v5184_v19  ;;  %3332 = vmatpush.bf16.msrb.mxu2 %v4300_v17 }
 0x351   : > { %v1805_v46 = vadd.f32 %v5341_v48, %v1716_v26  ;;  %v5588_v30 = vpop.f32.mrf.mxu2  ;;  %v6426_v26 = vld [vmem:[#allocation27_spill] sm:$0xff] }
 0x353   : > { %v2587_v59 = vmul.f32 0.2, %v1805_v46  ;;  %2033 = vmatmul.bf16.gmra.mxu3 %v4933_v56  ;;  %v5591_v35 = vpop.f32.mrf.mxu0  ;;  %2251 = vmatmul.bf16.gmra.mxu1 %v5125_v49  ;;  %vm2459_vm10 = vcmp.ge.f32.partialorder %v1805_v46, 0.0  ;;  %v4286_v56 = vld [vmem:[%s6275_s7 + $0x58] sm:$0xff] }
 0x354   : > { %3152 = vmatpush.bf16.msrb.mxu0 %v4286_v56 }
 0x355   : > { %v5599_v44 = vsel %vm2459_vm10, %v1805_v46, %v2587_v59  ;;  %v4294_v59 = vld [vmem:[%s6275_s7 + $0x98] sm:$0xff] }
 0x356   : > { %6425 = vst [vmem:[#allocation67_spill] sm:$0xff] %v5599_v44  ;;  %v1718_v48 = vpop.f32.mrf.mxu3  ;;  %2157 = vmatmul.bf16.gmra.mxu0 %v6426_v26  ;;  %2335 = vmatmul.bf16.gmra.mxu2 %v6426_v26  ;;  %v4285_v26 = vld [vmem:[%s6275_s7 + $0x50] sm:$0xff]  ;;  %v5644_v44 = vpop.f32.mrf.mxu1 }
 0x357   : > { %v1719_v61 = vadd.f32 %v1718_v48, %v5184_v19  ;;  %3241 = vmatpush.bf16.msrb.mxu1 %v4294_v59  ;;  %v4284_v59 = vld [vmem:[%s6275_s7 + $0x48] sm:$0xff] }
 0x358   : > { %3153 = vmatpush.bf16.msrb.mxu0 %v4285_v26 }
 0x359   : > { %v5617_v46 = vpop.f32.mrf.mxu2  ;;  %v1808_v56 = vadd.f32 %v5357_v3, %v1719_v61  ;;  %v4292_v3 = vld [vmem:[%s6275_s7 + $0x88] sm:$0xff] }
 0x35b   : > { %v5629_v48 = vpop.f32.mrf.mxu0  ;;  %3242 = vmatpush.bf16.msrb.mxu1 %v4293_v0  ;;  %v2591_v61 = vmul.f32 0.2, %v1808_v56  ;;  %vm2463_vm11 = vcmp.ge.f32.partialorder %v1808_v56, 0.0 }
 0x35c   : > { %3154 = vmatpush.bf16.msrb.mxu0 %v4284_v59 }
 0x35d   : > { %v5657_v59 = vsel %vm2463_vm11, %v1808_v56, %v2591_v61 }
 0x35e   : > { %v1720_v58 = vpop.f32.mrf.mxu3  ;;  %6427 = vst [vmem:[#allocation27_spill] sm:$0xff] %v5657_v59  ;;  %v5670_v47 = vpop.f32.mrf.mxu1 }
 0x35f   : > { %v1721_v26 = vadd.f32 %v1720_v58, %v5184_v19  ;;  %3243 = vmatpush.bf16.msrb.mxu1 %v4292_v3  ;;  %v4299_v58 = vld [vmem:[%s6275_s7 + $0xc0] sm:$0xff] }
 0x360   : > { %3155 = vmatpush.bf16.msrb.mxu0 %v4283_v6  ;;  %3333 = vmatpush.bf16.msrb.mxu2 %v4299_v58 }
 0x361   : > { %v1810_v29 = vadd.f32 %v5377_v53, %v1721_v26  ;;  %v5642_v0 = vpop.f32.mrf.mxu2  ;;  %v4291_v53 = vld [vmem:[%s6275_s7 + $0x80] sm:$0xff] }
 0x363   : > { %v2595_v17 = vmul.f32 0.2, %v1810_v29  ;;  %2038 = vmatmul.bf16.gmra.mxu3 %v4957_v43  ;;  %2256 = vmatmul.bf16.gmra.mxu1 %v5150_v31  ;;  %vm2467_vm12 = vcmp.ge.f32.partialorder %v1810_v29, 0.0  ;;  %v5665_v50 = vpop.f32.mrf.mxu0 }
 0x364   : > { %3244 = vmatpush.bf16.msrb.mxu1 %v4291_v53 }
 0x365   : > { %v5659_v26 = vsel %vm2467_vm12, %v1810_v29, %v2595_v17 }
 0x366   : > { %6428 = vst [vmem:[#allocation68_spill] sm:$0xff] %v5659_v26  ;;  %v1723_v3 = vpop.f32.mrf.mxu3  ;;  %2162 = vmatmul.bf16.gmra.mxu0 %v5156_v4  ;;  %2340 = vmatmul.bf16.gmra.mxu2 %v5156_v4 }
 0x367   : > { %v1724_v6 = vadd.f32 %v1723_v3, %v5184_v19  ;;  %v4277_v3 = vld [vmem:[%s6275_s7 + $0x10] sm:$0xff] }
 0x368   : > { %3064 = vmatpush.bf16.msrb.mxu3 %v4277_v3 }
 0x369   : > { %v5668_v58 = vpop.f32.mrf.mxu2  ;;  %v1813_v56 = vadd.f32 %v5383_v37, %v1724_v6  ;;  %v5684_v37 = vperm.slane %v5428_v21, 2 }
 0x36b   : > { %v2599_v17 = vmul.f32 0.2, %v1813_v56  ;;  %v5674_v62 = vpop.f32.mrf.mxu0  ;;  %vm2471_vm4 = vcmp.ge.f32.partialorder %v1813_v56, 0.0 }
 0x36e   : > { %v1725_v61 = vpop.f32.mrf.mxu3 }
 0x36f   : > { %v1726_v29 = vadd.f32 %v1725_v61, %v5184_v19  ;;  %v5686_v19 = vsel %vm2471_vm4, %v1813_v56, %v2599_v17  ;;  %v5690_v61 = vpop.f32.mrf.mxu1 }
 0x370   : > { %6429 = vst [vmem:[#allocation69_spill] sm:$0xff] %v5686_v19 }
 0x371   : > { %v1815_v4 = vadd.f32 %v5406_v18, %v1726_v29  ;;  %v5677_v43 = vpop.f32.mrf.mxu2 }
 0x373   : > { %v2603_v53 = vmul.f32 0.2, %v1815_v4  ;;  %2043 = vmatmul.bf16.gmra.mxu3 %v4981_v41  ;;  %vm2475_vm13 = vcmp.ge.f32.partialorder %v1815_v4, 0.0  ;;  %v5697_v59 = vpop.f32.mrf.mxu0 }
 0x375   : > { %v5688_v6 = vsel %vm2475_vm13, %v1815_v4, %v2603_v53 }
 0x376   : > { %6430 = vst [vmem:[#allocation70_spill] sm:$0xff] %v5688_v6  ;;  %v2004_v18 = vpop.f32.mrf.mxu3  ;;  %2167 = vmatmul.bf16.gmra.mxu0 %v5175_v55  ;;  %2345 = vmatmul.bf16.gmra.mxu2 %v5175_v55 }
 0x377   : > { %v2005_v29 = vadd.f32 %v2004_v18, %v5684_v37  ;;  %v5703_v53 = vpop.f32.mrf.mxu1 }
 0x379   : > { %v5699_v21 = vpop.f32.mrf.mxu2  ;;  %v2094_v56 = vadd.f32 %v5422_v25, %v2005_v29  ;;  %v6431_v29 = vld [vmem:[#allocation17_spill] sm:$0xff] }
 0x37b   : > { %v2481_v26 = vmul.f32 0.2, %v2094_v56  ;;  %vm2353_vm14 = vcmp.ge.f32.partialorder %v2094_v56, 0.0  ;;  %v5707_v18 = vpop.f32.mrf.mxu0 }
 0x37d   : > { %v2609_v3 = vsel %vm2353_vm14, %v2094_v56, %v2481_v26 }
 0x37e   : > { %v2006_v17 = vpop.f32.mrf.mxu3 }
 0x37f   : > { %v2007_v4 = vadd.f32 %v2006_v17, %v5684_v37  ;;  %v6432_v17 = vld [vmem:[#allocation16_spill] sm:$0xff] }
 0x380   : > { %v6433_v60 = vpack.c.bf16 %v6431_v29, %v6432_v17  ;;  %v6435_v17 = vld [vmem:[#allocation19_spill] sm:$0xff] }
 0x381   : > { %v2096_v55 = vadd.f32 %v5450_v13, %v2007_v4  ;;  %v5709_v45 = vpop.f32.mrf.mxu2  ;;  %v6434_v13 = vpack.c.bf16 %v5469_v23, %v5467_v7 }
 0x383   : > { %vm2357_vm15 = vcmp.ge.f32.partialorder %v2096_v55, 0.0  ;;  %v2485_v41 = vmul.f32 0.2, %v2096_v55  ;;  %2048 = vmatmul.bf16.gmra.mxu3 %v5006_v12  ;;  %v5718_v12 = vpop.f32.mrf.mxu1 }
 0x385   : > { %v2613_v19 = vsel %vm2357_vm15, %v2096_v55, %v2485_v41 }
 0x386   : > { %v2737_v6 = vpack.c.bf16 %v2613_v19, %v2609_v3  ;;  %v2009_v25 = vpop.f32.mrf.mxu3  ;;  %3156 = vmatmul.bf16.vlgmr.msrb.gmra.mxu0 %v6433_v60  ;;  %3334 = vmatmul.bf16.vlgmr.msrb.gmra.mxu2 %v6434_v13  ;;  %v5721_v19 = vpop.f32.mrf.mxu0  ;;  %v6436_v13 = vld [vmem:[#allocation18_spill] sm:$0xff] }
 0x387   : > { %v2010_v4 = vadd.f32 %v2009_v25, %v5684_v37 }
 0x388   : > { %3245 = vmatmul.bf16.vlgmr.msrb.gmra.mxu1 %v2737_v6 }
 0x389   : > { %v2099_v26 = vadd.f32 %v5457_v39, %v2010_v4  ;;  %v5724_v55 = vpop.f32.mrf.mxu2  ;;  %v4276_v39 = vld [vmem:[%s6275_s7 + $0x8] sm:$0xff]  ;;  %v6437_v4 = vpack.c.bf16 %v6435_v17, %v6436_v13  ;;  %v6439_v13 = vld [vmem:[#allocation21_spill] sm:$0xff] }
 0x38a   : > { %3065 = vmatpush.bf16.msrb.mxu3 %v4276_v39 }
 0x38b   : > { %v2489_v3 = vmul.f32 0.2, %v2099_v26  ;;  %vm2361_vm0 = vcmp.ge.f32.partialorder %v2099_v26, 0.0  ;;  %v5728_v23 = vpop.f32.mrf.mxu1 }
 0x38d   : > { %v2617_v6 = vsel %vm2361_vm0, %v2099_v26, %v2489_v3 }
 0x38e   : > { %v2011_v41 = vpop.f32.mrf.mxu3 }
 0x38f   : > { %v2012_v56 = vadd.f32 %v2011_v41, %v5684_v37 }
 0x391   : > { %v2101_v60 = vadd.f32 %v5479_v52, %v2012_v56  ;;  %v6438_v52 = vpack.c.bf16 %v5506_v16, %v5504_v38  ;;  %v5742_v28 = vpop.f32.mrf.mxu2 }
 0x393   : > { %v2493_v7 = vmul.f32 0.2, %v2101_v60  ;;  %2053 = vmatmul.bf16.gmra.mxu3 %v5029_v36  ;;  %vm2365_vm1 = vcmp.ge.f32.partialorder %v2101_v60, 0.0  ;;  %v5739_v36 = vpop.f32.mrf.mxu0  ;;  %v5745_v3 = vpop.f32.mrf.mxu1 }
 0x395   : > { %v2621_v25 = vsel %vm2365_vm1, %v2101_v60, %v2493_v7 }
 0x396   : > { %v2014_v29 = vpop.f32.mrf.mxu3  ;;  %3161 = vmatmul.bf16.gmra.mxu0 %v6437_v4  ;;  %3339 = vmatmul.bf16.gmra.mxu2 %v6438_v52  ;;  %v2741_v41 = vpack.c.bf16 %v2621_v25, %v2617_v6  ;;  %v6440_v4 = vld [vmem:[#allocation20_spill] sm:$0xff] }
 0x397   : > { %v2015_v56 = vadd.f32 %v2014_v29, %v5684_v37  ;;  %v6441_v52 = vpack.c.bf16 %v6439_v13, %v6440_v4  ;;  %v6443_v4 = vld [vmem:[#allocation23_spill] sm:$0xff] }
 0x398   : > { %3250 = vmatmul.bf16.gmra.mxu1 %v2741_v41  ;;  %v6442_v41 = vpack.c.bf16 %v5535_v57, %v5533_v51 }
 0x399   : > { %v2104_v26 = vadd.f32 %v5495_v10, %v2015_v56  ;;  %v5752_v6 = vpop.f32.mrf.mxu2 }
 0x39b   : > { %v2497_v17 = vmul.f32 0.2, %v2104_v26  ;;  %vm2369_vm2 = vcmp.ge.f32.partialorder %v2104_v26, 0.0  ;;  %v5749_v16 = vpop.f32.mrf.mxu0  ;;  %v5760_v56 = vpop.f32.mrf.mxu1 }
 0x39d   : > { %v2625_v25 = vsel %vm2369_vm2, %v2104_v26, %v2497_v17 }
 0x39e   : > { %v2016_v60 = vpop.f32.mrf.mxu3 }
 0x39f   : > { %v2017_v7 = vadd.f32 %v2016_v60, %v5684_v37 }
 0x3a1   : > { %v2106_v38 = vadd.f32 %v5514_v11, %v2017_v7  ;;  %v5766_v7 = vpop.f32.mrf.mxu2 }
 0x3a3   : > { %v2501_v39 = vmul.f32 0.2, %v2106_v38  ;;  %2058 = vmatmul.bf16.gmra.mxu3 %v5054_v34  ;;  %vm2373_vm3 = vcmp.ge.f32.partialorder %v2106_v38, 0.0  ;;  %v5763_v60 = vpop.f32.mrf.mxu0  ;;  %v5770_v51 = vpop.f32.mrf.mxu1 }
 0x3a5   : > { %v2629_v29 = vsel %vm2373_vm3, %v2106_v38, %v2501_v39 }
 0x3a6   : > { %v2019_v10 = vpop.f32.mrf.mxu3  ;;  %3166 = vmatmul.bf16.gmra.mxu0 %v6441_v52  ;;  %3344 = vmatmul.bf16.gmra.mxu2 %v6442_v41  ;;  %v2745_v11 = vpack.c.bf16 %v2629_v29, %v2625_v25  ;;  %v4275_v25 = vld [vmem:[%s6275_s7] sm:$0xff]  ;;  %v6444_v52 = vld [vmem:[#allocation22_spill] sm:$0xff] }
 0x3a7   : > { %v2020_v34 = vadd.f32 %v2019_v10, %v5684_v37  ;;  %v6445_v41 = vpack.c.bf16 %v6443_v4, %v6444_v52  ;;  %3066 = vmatpush.bf16.msrb.mxu3 %v4275_v25 }
 0x3a8   : > { %3255 = vmatmul.bf16.gmra.mxu1 %v2745_v11 }
 0x3a9   : > { %v2109_v26 = vadd.f32 %v5521_v1, %v2020_v34 }
 0x3ab   : > { %v2505_v39 = vmul.f32 0.2, %v2109_v26  ;;  %vm2377_vm5 = vcmp.ge.f32.partialorder %v2109_v26, 0.0  ;;  %v5784_v34 = vpop.f32.mrf.mxu0 }
 0x3ad   : > { %v2633_v1 = vsel %vm2377_vm5, %v2109_v26, %v2505_v39  ;;  %v2203_v26 = vadd.f32 %v5562_v5, %v5431_v9 }
 0x3ae   : > { %v2021_v17 = vpop.f32.mrf.mxu3 }
 0x3af   : > { %v2022_v38 = vadd.f32 %v2021_v17, %v5684_v37  ;;  %v5786_v17 = vpop.f32.mrf.mxu2 }
 0x3b1   : > { %v2111_v13 = vadd.f32 %v5543_v54, %v2022_v38  ;;  %v6446_v54 = vpack.c.bf16 %v5572_v32, %v5570_v40  ;;  %v2292_v40 = vadd.f32 %v5579_v22, %v2203_v26  ;;  %v5793_v32 = vpop.f32.mrf.mxu1  ;;  %v6447_v26 = vld [vmem:[#allocation26_spill] sm:$0xff] }
 0x3b3   : > { %v2509_v57 = vmul.f32 0.2, %v2111_v13  ;;  %2063 = vmatmul.bf16.gmra.mxu3 %v5079_v27  ;;  %vm2381_vm6 = vcmp.ge.f32.partialorder %v2111_v13, 0.0  ;;  %v2205_v27 = vadd.f32 %v5584_v63, %v5431_v9  ;;  %v2514_v25 = vmul.f32 0.2, %v2292_v40 }
 0x3b4   : > { %vm2386_vm8 = vcmp.ge.f32.partialorder %v2292_v40, 0.0 }
 0x3b5   : > { %v2637_v29 = vsel %vm2381_vm6, %v2111_v13, %v2509_v57  ;;  %v2294_v38 = vadd.f32 %v5588_v30, %v2205_v27  ;;  %v2642_v52 = vsel %vm2386_vm8, %v2292_v40, %v2514_v25 }
 0x3b6   : > { %v2024_v10 = vpop.f32.mrf.mxu3  ;;  %3171 = vmatmul.bf16.gmra.mxu0 %v6445_v41  ;;  %3349 = vmatmul.bf16.gmra.mxu2 %v6446_v54  ;;  %v2749_v11 = vpack.c.bf16 %v2637_v29, %v2633_v1  ;;  %v5797_v29 = vpop.f32.mrf.mxu0 }
 0x3b7   : > { %v2025_v39 = vadd.f32 %v2024_v10, %v5684_v37  ;;  %v2518_v13 = vmul.f32 0.2, %v2294_v38  ;;  %vm2390_vm7 = vcmp.ge.f32.partialorder %v2294_v38, 0.0  ;;  %v5800_v10 = vpop.f32.mrf.mxu2 }
 0x3b8   : > { %3260 = vmatmul.bf16.gmra.mxu1 %v2749_v11 }
 0x3b9   : > { %v2114_v63 = vadd.f32 %v5559_v42, %v2025_v39  ;;  %v2646_v4 = vsel %vm2390_vm7, %v2294_v38, %v2518_v13  ;;  %v5803_v11 = vpop.f32.mrf.mxu1  ;;  %v6448_v39 = vld [vmem:[#allocation25_spill] sm:$0xff]  ;;  %v2210_v38 = vadd.f32 %v5644_v44, %v5431_v9 }
 0x3ba   : > { %v2754_v42 = vpack.c.bf16 %v2646_v4, %v2642_v52 }
 0x3bb   : > { %v2513_v5 = vmul.f32 0.2, %v2114_v63  ;;  %vm2385_vm9 = vcmp.ge.f32.partialorder %v2114_v63, 0.0  ;;  %v2299_v40 = vadd.f32 %v5642_v0, %v2210_v38  ;;  %v6451_v38 = vld [vmem:[#allocation28_spill] sm:$0xff] }
 0x3bd   : > { %v2641_v41 = vsel %vm2385_vm9, %v2114_v63, %v2513_v5  ;;  %v2526_v5 = vmul.f32 0.2, %v2299_v40  ;;  %vm2398_vm11 = vcmp.ge.f32.partialorder %v2299_v40, 0.0 }
 0x3be   : > { %v2026_v57 = vpop.f32.mrf.mxu3  ;;  %v5815_v25 = vpop.f32.mrf.mxu0 }
 0x3bf   : > { %v2027_v1 = vadd.f32 %v2026_v57, %v5684_v37  ;;  %v6449_v57 = vpack.c.bf16 %v6447_v26, %v6448_v39 }
 0x3c1   : > { %v2116_v30 = vadd.f32 %v5581_v14, %v2027_v1  ;;  %v5817_v1 = vpop.f32.mrf.mxu2 }
 0x3c3   : > { %v2517_v22 = vmul.f32 0.2, %v2116_v30  ;;  %2068 = vmatmul.bf16.gmra.mxu3 %v5099_v20  ;;  %vm2389_vm10 = vcmp.ge.f32.partialorder %v2116_v30, 0.0  ;;  %v2208_v20 = vadd.f32 %v5611_v33, %v5431_v9  ;;  %v5821_v33 = vpop.f32.mrf.mxu1 }
 0x3c5   : > { %v2645_v54 = vsel %vm2389_vm10, %v2116_v30, %v2517_v22  ;;  %v2297_v63 = vadd.f32 %v5617_v46, %v2208_v20 }
 0x3c6   : > { %v2029_v27 = vpop.f32.mrf.mxu3  ;;  %3176 = vmatmul.bf16.gmra.mxu0 %v6449_v57  ;;  %3354 = vmatmul.bf16.gmra.mxu2 %v2754_v42  ;;  %v2753_v14 = vpack.c.bf16 %v2645_v54, %v2641_v41  ;;  %v2654_v42 = vsel %vm2398_vm11, %v2299_v40, %v2526_v5  ;;  %v2215_v40 = vadd.f32 %v5690_v61, %v5431_v9 }
 0x3c7   : > { %v2030_v13 = vadd.f32 %v2029_v27, %v5684_v37  ;;  %v2522_v44 = vmul.f32 0.2, %v2297_v63  ;;  %vm2394_vm12 = vcmp.ge.f32.partialorder %v2297_v63, 0.0 }
 0x3c8   : > { %3265 = vmatmul.bf16.gmra.mxu1 %v2753_v14  ;;  %v6450_v14 = vld [vmem:[#allocation29_spill] sm:$0xff] }
 0x3c9   : > { %v2119_v30 = vadd.f32 %v5591_v35, %v2030_v13  ;;  %v2650_v41 = vsel %vm2394_vm12, %v2297_v63, %v2522_v44  ;;  %v5825_v35 = vpop.f32.mrf.mxu0  ;;  %v5827_v39 = vpop.f32.mrf.mxu2  ;;  %v6452_v20 = vpack.c.bf16 %v6450_v14, %v6451_v38  ;;  %v2304_v13 = vadd.f32 %v5677_v43, %v2215_v40 }
 0x3ca   : > { %v2758_v54 = vpack.c.bf16 %v2654_v42, %v2650_v41  ;;  %v6453_v14 = vpack.c.bf16 %v5161_v2, %v5159_v15 }
 0x3cb   : > { %v2521_v0 = vmul.f32 0.2, %v2119_v30  ;;  %vm2393_vm4 = vcmp.ge.f32.partialorder %v2119_v30, 0.0  ;;  %v5838_v5 = vpop.f32.mrf.mxu1  ;;  %vm2406_vm14 = vcmp.ge.f32.partialorder %v2304_v13, 0.0 }
 0x3cd   : > { %v2649_v27 = vsel %vm2393_vm4, %v2119_v30, %v2521_v0 }
 0x3ce   : > { %v2031_v4 = vpop.f32.mrf.mxu3 }
 0x3cf   : > { %v2032_v22 = vadd.f32 %v2031_v4, %v5684_v37  ;;  %v2534_v4 = vmul.f32 0.2, %v2304_v13 }
 0x3d1   : > { %v2121_v52 = vadd.f32 %v5629_v48, %v2032_v22 }
 0x3d3   : > { %v2525_v46 = vmul.f32 0.2, %v2121_v52  ;;  %2073 = vmatmul.bf16.gmra.mxu3 %v5125_v49  ;;  %vm2397_vm13 = vcmp.ge.f32.partialorder %v2121_v52, 0.0  ;;  %v2213_v49 = vadd.f32 %v5670_v47, %v5431_v9  ;;  %v5845_v47 = vpop.f32.mrf.mxu2 }
 0x3d5   : > { %v2653_v26 = vsel %vm2397_vm13, %v2121_v52, %v2525_v46  ;;  %v2302_v30 = vadd.f32 %v5668_v58, %v2213_v49  ;;  %v5842_v52 = vpop.f32.mrf.mxu0  ;;  %v2662_v46 = vsel %vm2406_vm14, %v2304_v13, %v2534_v4 }
 0x3d6   : > { %v2034_v57 = vpop.f32.mrf.mxu3  ;;  %3181 = vmatmul.bf16.gmra.mxu0 %v6452_v20  ;;  %3359 = vmatmul.bf16.gmra.mxu2 %v2758_v54  ;;  %v2757_v48 = vpack.c.bf16 %v2653_v26, %v2649_v27 }
 0x3d7   : > { %v2035_v63 = vadd.f32 %v2034_v57, %v5684_v37  ;;  %v2530_v0 = vmul.f32 0.2, %v2302_v30  ;;  %vm2402_vm15 = vcmp.ge.f32.partialorder %v2302_v30, 0.0 }
 0x3d8   : > { %3270 = vmatmul.bf16.gmra.mxu1 %v2757_v48 }
 0x3d9   : > { %v2124_v44 = vadd.f32 %v5665_v50, %v2035_v63  ;;  %v2658_v58 = vsel %vm2402_vm15, %v2302_v30, %v2530_v0  ;;  %v5849_v50 = vpop.f32.mrf.mxu1 }
 0x3da   : > { %v2762_v54 = vpack.c.bf16 %v2662_v46, %v2658_v58 }
 0x3db   : > { %v2529_v43 = vmul.f32 0.2, %v2124_v44  ;;  %vm2401_vm0 = vcmp.ge.f32.partialorder %v2124_v44, 0.0  ;;  %v5862_v49 = vpop.f32.mrf.mxu2 }
 0x3dd   : > { %v2657_v27 = vsel %vm2401_vm0, %v2124_v44, %v2529_v43  ;;  %v5859_v48 = vpop.f32.mrf.mxu0 }
 0x3de   : > { %v2036_v22 = vpop.f32.mrf.mxu3 }
 0x3df   : > { %v2037_v61 = vadd.f32 %v2036_v22, %v5684_v37 }
 0x3e1   : > { %v2126_v42 = vadd.f32 %v5674_v62, %v2037_v61  ;;  %v2220_v62 = vadd.f32 %v5718_v12, %v5431_v9  ;;  %v5866_v63 = vpop.f32.mrf.mxu1 }
 0x3e3   : > { %v2533_v41 = vmul.f32 0.2, %v2126_v42  ;;  %2078 = vmatmul.bf16.gmra.mxu3 %v5150_v31  ;;  %vm2405_vm1 = vcmp.ge.f32.partialorder %v2126_v42, 0.0  ;;  %v2218_v31 = vadd.f32 %v5703_v53, %v5431_v9  ;;  %v2309_v20 = vadd.f32 %v5709_v45, %v2220_v62  ;;  %v5875_v43 = vpop.f32.mrf.mxu2 }
 0x3e5   : > { %v2661_v26 = vsel %vm2405_vm1, %v2126_v42, %v2533_v41  ;;  %v2307_v15 = vadd.f32 %v5699_v21, %v2218_v31  ;;  %v2542_v2 = vmul.f32 0.2, %v2309_v20  ;;  %vm2414_vm2 = vcmp.ge.f32.partialorder %v2309_v20, 0.0  ;;  %v5870_v22 = vpop.f32.mrf.mxu0  ;;  %v6454_v21 = vld [vmem:[#allocation34_spill] sm:$0xff] }
 0x3e6   : > { %v2039_v57 = vpop.f32.mrf.mxu3  ;;  %3186 = vmatmul.bf16.gmra.mxu0 %v6453_v14  ;;  %3364 = vmatmul.bf16.gmra.mxu2 %v2762_v54  ;;  %v2761_v38 = vpack.c.bf16 %v2661_v26, %v2657_v27  ;;  %v6455_v61 = vpack.c.bf16 %v5206_v24, %v6454_v21  ;;  %v6456_v54 = vld [vmem:[#allocation31_spill] sm:$0xff]  ;;  %v6457_v27 = vld [vmem:[#allocation30_spill] sm:$0xff]  ;;  %v2223_v24 = vadd.f32 %v5728_v23, %v5431_v9 }
 0x3e7   : > { %v2040_v40 = vadd.f32 %v2039_v57, %v5684_v37  ;;  %v2538_v30 = vmul.f32 0.2, %v2307_v15  ;;  %vm2410_vm3 = vcmp.ge.f32.partialorder %v2307_v15, 0.0  ;;  %v2670_v44 = vsel %vm2414_vm2, %v2309_v20, %v2542_v2 }
 0x3e8   : > { %3275 = vmatmul.bf16.gmra.mxu1 %v2761_v38  ;;  %v2225_v57 = vadd.f32 %v5745_v3, %v5431_v9  ;;  %v2312_v31 = vadd.f32 %v5724_v55, %v2223_v24 }
 0x3e9   : > { %v2129_v13 = vadd.f32 %v5697_v59, %v2040_v40  ;;  %v2666_v59 = vsel %vm2410_vm3, %v2307_v15, %v2538_v30  ;;  %v5882_v14 = vpop.f32.mrf.mxu1 }
 0x3ea   : > { %v2766_v42 = vpack.c.bf16 %v2670_v44, %v2666_v59  ;;  %v2314_v38 = vadd.f32 %v5742_v28, %v2225_v57  ;;  %vm2418_vm8 = vcmp.ge.f32.partialorder %v2312_v31, 0.0  ;;  %v6461_v59 = vld [vmem:[#allocation33_spill] sm:$0xff] }
 0x3eb   : > { %v2537_v45 = vmul.f32 0.2, %v2129_v13  ;;  %vm2409_vm5 = vcmp.ge.f32.partialorder %v2129_v13, 0.0  ;;  %v5892_v2 = vpop.f32.mrf.mxu2 }
 0x3ec   : > { %v2550_v20 = vmul.f32 0.2, %v2314_v38  ;;  %vm2422_vm7 = vcmp.ge.f32.partialorder %v2314_v38, 0.0 }
 0x3ed   : > { %v2665_v46 = vsel %vm2409_vm5, %v2129_v13, %v2537_v45  ;;  %v5889_v40 = vpop.f32.mrf.mxu0  ;;  %v2546_v13 = vmul.f32 0.2, %v2312_v31  ;;  %v6459_v45 = vld [vmem:[#allocation37_spill] sm:$0xff] }
 0x3ee   : > { %v2041_v12 = vpop.f32.mrf.mxu3  ;;  %v2678_v30 = vsel %vm2422_vm7, %v2314_v38, %v2550_v20 }
 0x3ef   : > { %v2042_v53 = vadd.f32 %v2041_v12, %v5684_v37 }
 0x3f1   : > { %v2131_v4 = vadd.f32 %v5707_v18, %v2042_v53  ;;  %v6458_v18 = vpack.c.bf16 %v6456_v54, %v6457_v27  ;;  %v5896_v53 = vpop.f32.mrf.mxu1 }
 0x3f3   : > { %v2541_v0 = vmul.f32 0.2, %v2131_v4  ;;  %3067 = vmatmul.bf16.vlgmr.msrb.gmra.mxu3 %v6455_v61  ;;  %vm2413_vm6 = vcmp.ge.f32.partialorder %v2131_v4, 0.0  ;;  %v5908_v54 = vpop.f32.mrf.mxu2 }
 0x3f5   : > { %v2669_v41 = vsel %vm2413_vm6, %v2131_v4, %v2541_v0  ;;  %v6460_v4 = vpack.c.bf16 %v5232_v8, %v6459_v45  ;;  %v2228_v8 = vadd.f32 %v5760_v56, %v5431_v9 }
 0x3f6   : > { %v2044_v58 = vpop.f32.mrf.mxu3  ;;  %3191 = vmatmul.bf16.gmra.mxu0 %v6458_v18  ;;  %3369 = vmatmul.bf16.gmra.mxu2 %v2766_v42  ;;  %v2765_v26 = vpack.c.bf16 %v2669_v41, %v2665_v46  ;;  %v6462_v42 = vld [vmem:[#allocation32_spill] sm:$0xff]  ;;  %v2230_v41 = vadd.f32 %v5770_v51, %v5431_v9 }
 0x3f7   : > { %v2045_v62 = vadd.f32 %v2044_v58, %v5684_v37  ;;  %v6463_v46 = vpack.c.bf16 %v6461_v59, %v6462_v42  ;;  %v5906_v58 = vpop.f32.mrf.mxu0 }
 0x3f8   : > { %3280 = vmatmul.bf16.gmra.mxu1 %v2765_v26  ;;  %v2319_v27 = vadd.f32 %v5766_v7, %v2230_v41  ;;  %v2317_v26 = vadd.f32 %v5752_v6, %v2228_v8 }
 0x3f9   : > { %v2134_v15 = vadd.f32 %v5721_v19, %v2045_v62  ;;  %v2674_v19 = vsel %vm2418_vm8, %v2312_v31, %v2546_v13  ;;  %v5915_v57 = vpop.f32.mrf.mxu1  ;;  %v6464_v13 = vld [vmem:[#allocation41_spill] sm:$0xff] }
 0x3fa   : > { %v2770_v44 = vpack.c.bf16 %v2678_v30, %v2674_v19  ;;  %v2558_v24 = vmul.f32 0.2, %v2319_v27  ;;  %vm2430_vm11 = vcmp.ge.f32.partialorder %v2319_v27, 0.0  ;;  %v2554_v62 = vmul.f32 0.2, %v2317_v26  ;;  %v6467_v19 = vld [vmem:[#allocation36_spill] sm:$0xff] }
 0x3fb   : > { %v2545_v23 = vmul.f32 0.2, %v2134_v15  ;;  %vm2417_vm9 = vcmp.ge.f32.partialorder %v2134_v15, 0.0  ;;  %vm2426_vm12 = vcmp.ge.f32.partialorder %v2317_v26, 0.0 }
 0x3fd   : > { %v2673_v0 = vsel %vm2417_vm9, %v2134_v15, %v2545_v23  ;;  %v2686_v15 = vsel %vm2430_vm11, %v2319_v27, %v2558_v24 }
 0x3fe   : > { %v2046_v3 = vpop.f32.mrf.mxu3 }
 0x3ff   : > { %v2047_v12 = vadd.f32 %v2046_v3, %v5684_v37  ;;  %v5919_v20 = vpop.f32.mrf.mxu0  ;;  %v5922_v3 = vpop.f32.mrf.mxu2 }
 0x401   : > { %v2136_v28 = vadd.f32 %v5739_v36, %v2047_v12  ;;  %v6465_v12 = vld [vmem:[#allocation40_spill] sm:$0xff]  ;;  %v5927_v45 = vpop.f32.mrf.mxu1 }
 0x402   : > { %v6466_v23 = vpack.c.bf16 %v6464_v13, %v6465_v12 }
 0x403   : > { %v2549_v55 = vmul.f32 0.2, %v2136_v28  ;;  %3072 = vmatmul.bf16.gmra.mxu3 %v6460_v4  ;;  %vm2421_vm10 = vcmp.ge.f32.partialorder %v2136_v28, 0.0 }
 0x405   : > { %v2677_v21 = vsel %vm2421_vm10, %v2136_v28, %v2549_v55 }
 0x406   : > { %v2049_v61 = vpop.f32.mrf.mxu3  ;;  %3196 = vmatmul.bf16.gmra.mxu0 %v6463_v46  ;;  %3374 = vmatmul.bf16.gmra.mxu2 %v2770_v44  ;;  %v2769_v36 = vpack.c.bf16 %v2677_v21, %v2673_v0  ;;  %v6468_v44 = vld [vmem:[#allocation35_spill] sm:$0xff]  ;;  %v2235_v21 = vadd.f32 %v5803_v11, %v5431_v9 }
 0x407   : > { %v2050_v18 = vadd.f32 %v2049_v61, %v5684_v37  ;;  %v2233_v61 = vadd.f32 %v5793_v32, %v5431_v9  ;;  %v5941_v41 = vpop.f32.mrf.mxu2 }
 0x408   : > { %3285 = vmatmul.bf16.gmra.mxu1 %v2769_v36  ;;  %v2324_v59 = vadd.f32 %v5800_v10, %v2235_v21  ;;  %v5939_v36 = vpop.f32.mrf.mxu0 }
 0x409   : > { %v2139_v38 = vadd.f32 %v5749_v16, %v2050_v18  ;;  %v2682_v16 = vsel %vm2426_vm12, %v2317_v26, %v2554_v62  ;;  %v2322_v46 = vadd.f32 %v5786_v17, %v2233_v61  ;;  %v5945_v32 = vpop.f32.mrf.mxu1  ;;  %v6471_v62 = vld [vmem:[#allocation44_spill] sm:$0xff] }
 0x40a   : > { %v2774_v28 = vpack.c.bf16 %v2686_v15, %v2682_v16  ;;  %v2566_v8 = vmul.f32 0.2, %v2324_v59  ;;  %vm2438_vm14 = vcmp.ge.f32.partialorder %v2324_v59, 0.0  ;;  %v6474_v16 = vld [vmem:[#allocation38_spill] sm:$0xff] }
 0x40b   : > { %v2553_v56 = vmul.f32 0.2, %v2139_v38  ;;  %vm2425_vm4 = vcmp.ge.f32.partialorder %v2139_v38, 0.0  ;;  %v2562_v11 = vmul.f32 0.2, %v2322_v46  ;;  %vm2434_vm15 = vcmp.ge.f32.partialorder %v2322_v46, 0.0 }
 0x40d   : > { %v2681_v30 = vsel %vm2425_vm4, %v2139_v38, %v2553_v56  ;;  %v2694_v38 = vsel %vm2438_vm14, %v2324_v59, %v2566_v8  ;;  %v2690_v56 = vsel %vm2434_vm15, %v2322_v46, %v2562_v11 }
 0x40e   : > { %v2051_v51 = vpop.f32.mrf.mxu3 }
 0x40f   : > { %v2052_v31 = vadd.f32 %v2051_v51, %v5684_v37  ;;  %v6470_v51 = vld [vmem:[#allocation45_spill] sm:$0xff]  ;;  %v5953_v13 = vpop.f32.mrf.mxu2 }
 0x411   : > { %v2141_v7 = vadd.f32 %v5763_v60, %v2052_v31  ;;  %v6469_v60 = vpack.c.bf16 %v6467_v19, %v6468_v44  ;;  %v6472_v31 = vpack.c.bf16 %v6470_v51, %v6471_v62  ;;  %v5964_v44 = vpop.f32.mrf.mxu1  ;;  %v6479_v51 = vld [vmem:[#allocation43_spill] sm:$0xff]  ;;  %v6480_v62 = vld [vmem:[#allocation42_spill] sm:$0xff] }
 0x413   : > { %v2557_v6 = vmul.f32 0.2, %v2141_v7  ;;  %3077 = vmatmul.bf16.gmra.mxu3 %v6466_v23  ;;  %vm2429_vm13 = vcmp.ge.f32.partialorder %v2141_v7, 0.0  ;;  %v6473_v23 = vld [vmem:[#allocation39_spill] sm:$0xff] }
 0x415   : > { %v2685_v55 = vsel %vm2429_vm13, %v2141_v7, %v2557_v6  ;;  %v5951_v7 = vpop.f32.mrf.mxu0 }
 0x416   : > { %v2054_v4 = vpop.f32.mrf.mxu3  ;;  %3201 = vmatmul.bf16.gmra.mxu0 %v6469_v60  ;;  %3379 = vmatmul.bf16.gmra.mxu2 %v2774_v28  ;;  %v2773_v0 = vpack.c.bf16 %v2685_v55, %v2681_v30  ;;  %v2240_v30 = vadd.f32 %v5838_v5, %v5431_v9  ;;  %v2238_v55 = vadd.f32 %v5821_v33, %v5431_v9 }
 0x417   : > { %v2055_v42 = vadd.f32 %v2054_v4, %v5684_v37  ;;  %v5971_v33 = vpop.f32.mrf.mxu2 }
 0x418   : > { %3290 = vmatmul.bf16.gmra.mxu1 %v2773_v0  ;;  %v2329_v4 = vadd.f32 %v5827_v39, %v2240_v30  ;;  %v2327_v60 = vadd.f32 %v5817_v1, %v2238_v55 }
 0x419   : > { %v2144_v27 = vadd.f32 %v5784_v34, %v2055_v42  ;;  %v2778_v34 = vpack.c.bf16 %v2694_v38, %v2690_v56  ;;  %v2245_v56 = vadd.f32 %v5866_v63, %v5431_v9 }
 0x41a   : > { %v2574_v0 = vmul.f32 0.2, %v2329_v4  ;;  %vm2446_vm2 = vcmp.ge.f32.partialorder %v2329_v4, 0.0  ;;  %v2570_v59 = vmul.f32 0.2, %v2327_v60  ;;  %vm2442_vm3 = vcmp.ge.f32.partialorder %v2327_v60, 0.0 }
 0x41b   : > { %v2561_v10 = vmul.f32 0.2, %v2144_v27  ;;  %vm2433_vm0 = vcmp.ge.f32.partialorder %v2144_v27, 0.0 }
 0x41c   : > { %v2702_v8 = vsel %vm2446_vm2, %v2329_v4, %v2574_v0 }
 0x41d   : > { %v2689_v15 = vsel %vm2433_vm0, %v2144_v27, %v2561_v10  ;;  %v5968_v42 = vpop.f32.mrf.mxu0  ;;  %v5974_v27 = vpop.f32.mrf.mxu1 }
 0x41e   : > { %v2056_v18 = vpop.f32.mrf.mxu3 }
 0x41f   : > { %v2057_v26 = vadd.f32 %v2056_v18, %v5684_v37  ;;  %v6476_v18 = vld [vmem:[#allocation47_spill] sm:$0xff] }
 0x421   : > { %v2146_v24 = vadd.f32 %v5797_v29, %v2057_v26  ;;  %v6475_v29 = vpack.c.bf16 %v6473_v23, %v6474_v16  ;;  %v2698_v26 = vsel %vm2442_vm3, %v2327_v60, %v2570_v59  ;;  %v5990_v23 = vpop.f32.mrf.mxu2 }
 0x422   : > { %v2782_v10 = vpack.c.bf16 %v2702_v8, %v2698_v26  ;;  %v2250_v26 = vadd.f32 %v5896_v53, %v5431_v9 }
 0x423   : > { %v2565_v17 = vmul.f32 0.2, %v2146_v24  ;;  %3082 = vmatmul.bf16.gmra.mxu3 %v6472_v31  ;;  %vm2437_vm1 = vcmp.ge.f32.partialorder %v2146_v24, 0.0  ;;  %v6481_v31 = vpack.c.bf16 %v6479_v51, %v6480_v62 }
 0x425   : > { %v2693_v6 = vsel %vm2437_vm1, %v2146_v24, %v2565_v17 }
 0x426   : > { %v2059_v12 = vpop.f32.mrf.mxu3  ;;  %3206 = vmatmul.bf16.gmra.mxu0 %v6475_v29  ;;  %3384 = vmatmul.bf16.gmra.mxu2 %v2778_v34  ;;  %v2777_v28 = vpack.c.bf16 %v2693_v6, %v2689_v15  ;;  %v2243_v34 = vadd.f32 %v5849_v50, %v5431_v9  ;;  %v2334_v15 = vadd.f32 %v5862_v49, %v2245_v56  ;;  %v5987_v6 = vpop.f32.mrf.mxu0 }
 0x427   : > { %v2060_v19 = vadd.f32 %v2059_v12, %v5684_v37  ;;  %v5993_v29 = vpop.f32.mrf.mxu1 }
 0x428   : > { %3295 = vmatmul.bf16.gmra.mxu1 %v2777_v28  ;;  %v2332_v16 = vadd.f32 %v5845_v47, %v2243_v34  ;;  %v2582_v28 = vmul.f32 0.2, %v2334_v15  ;;  %vm2454_vm7 = vcmp.ge.f32.partialorder %v2334_v15, 0.0  ;;  %v6482_v47 = vld [vmem:[#allocation49_spill] sm:$0xff] }
 0x429   : > { %v2149_v21 = vadd.f32 %v5815_v25, %v2060_v19  ;;  %v6477_v25 = vld [vmem:[#allocation46_spill] sm:$0xff] }
 0x42a   : > { %v6478_v11 = vpack.c.bf16 %v6476_v18, %v6477_v25  ;;  %v2578_v55 = vmul.f32 0.2, %v2332_v16  ;;  %vm2450_vm8 = vcmp.ge.f32.partialorder %v2332_v16, 0.0  ;;  %v2710_v19 = vsel %vm2454_vm7, %v2334_v15, %v2582_v28  ;;  %v6486_v18 = vld [vmem:[#allocation50_spill] sm:$0xff]  ;;  %v6489_v28 = vld [vmem:[#allocation52_spill] sm:$0xff] }
 0x42b   : > { %v2569_v39 = vmul.f32 0.2, %v2149_v21  ;;  %vm2441_vm5 = vcmp.ge.f32.partialorder %v2149_v21, 0.0 }
 0x42c   : > { %v2706_v59 = vsel %vm2450_vm8, %v2332_v16, %v2578_v55  ;;  %v6488_v16 = vld [vmem:[#allocation53_spill] sm:$0xff] }
 0x42d   : > { %v2697_v24 = vsel %vm2441_vm5, %v2149_v21, %v2569_v39  ;;  %v6483_v21 = vld [vmem:[#allocation48_spill] sm:$0xff] }
 0x42e   : > { %v2061_v61 = vpop.f32.mrf.mxu3  ;;  %v5998_v60 = vpop.f32.mrf.mxu0 }
 0x42f   : > { %v2062_v5 = vadd.f32 %v2061_v61, %v5684_v37  ;;  %v6484_v61 = vpack.c.bf16 %v6482_v47, %v6483_v21  ;;  %v6005_v8 = vpop.f32.mrf.mxu1 }
 0x431   : > { %v2151_v46 = vadd.f32 %v5825_v35, %v2062_v5  ;;  %v2786_v5 = vpack.c.bf16 %v2710_v19, %v2706_v59  ;;  %v6492_v19 = vld [vmem:[#allocation54_spill] sm:$0xff]  ;;  %v2253_v59 = vadd.f32 %v5915_v57, %v5431_v9 }
 0x433   : > { %v2573_v1 = vmul.f32 0.2, %v2151_v46  ;;  %3087 = vmatmul.bf16.gmra.mxu3 %v6478_v11  ;;  %vm2445_vm6 = vcmp.ge.f32.partialorder %v2151_v46, 0.0 }
 0x435   : > { %v2701_v38 = vsel %vm2445_vm6, %v2151_v46, %v2573_v1 }
 0x436   : > { %v2064_v17 = vpop.f32.mrf.mxu3  ;;  %3211 = vmatmul.bf16.gmra.mxu0 %v6481_v31  ;;  %3389 = vmatmul.bf16.gmra.mxu2 %v2782_v10  ;;  %v2781_v35 = vpack.c.bf16 %v2701_v38, %v2697_v24  ;;  %v2248_v10 = vadd.f32 %v5882_v14, %v5431_v9  ;;  %v2339_v24 = vadd.f32 %v5892_v2, %v2250_v26  ;;  %v6017_v62 = vpop.f32.mrf.mxu0 }
 0x437   : > { %v2065_v12 = vadd.f32 %v2064_v17, %v5684_v37  ;;  %v6023_v14 = vpop.f32.mrf.mxu1 }
 0x438   : > { %3300 = vmatmul.bf16.gmra.mxu1 %v2781_v35  ;;  %v2337_v17 = vadd.f32 %v5875_v43, %v2248_v10  ;;  %v2590_v51 = vmul.f32 0.2, %v2339_v24  ;;  %vm2462_vm11 = vcmp.ge.f32.partialorder %v2339_v24, 0.0 }
 0x439   : > { %v2154_v30 = vadd.f32 %v5842_v52, %v2065_v12  ;;  %v6003_v52 = vpop.f32.mrf.mxu2 }
 0x43a   : > { %v2586_v53 = vmul.f32 0.2, %v2337_v17  ;;  %vm2458_vm12 = vcmp.ge.f32.partialorder %v2337_v17, 0.0  ;;  %v2718_v12 = vsel %vm2462_vm11, %v2339_v24, %v2590_v51 }
 0x43b   : > { %v2577_v49 = vmul.f32 0.2, %v2154_v30  ;;  %vm2449_vm9 = vcmp.ge.f32.partialorder %v2154_v30, 0.0 }
 0x43d   : > { %v2705_v39 = vsel %vm2449_vm9, %v2154_v30, %v2577_v49  ;;  %v6490_v30 = vpack.c.bf16 %v6488_v16, %v6489_v28  ;;  %v2260_v16 = vadd.f32 %v5964_v44, %v5431_v9  ;;  %v2258_v28 = vadd.f32 %v5945_v32, %v5431_v9 }
 0x43e   : > { %v2066_v63 = vpop.f32.mrf.mxu3  ;;  %v6034_v21 = vpop.f32.mrf.mxu0 }
 0x43f   : > { %v2067_v50 = vadd.f32 %v2066_v63, %v5684_v37 }
 0x441   : > { %v2156_v4 = vadd.f32 %v5859_v48, %v2067_v50  ;;  %v6485_v48 = vld [vmem:[#allocation51_spill] sm:$0xff]  ;;  %v6020_v35 = vpop.f32.mrf.mxu2 }
 0x442   : > { %v6487_v25 = vpack.c.bf16 %v6485_v48, %v6486_v18 }
 0x443   : > { %v2581_v0 = vmul.f32 0.2, %v2156_v4  ;;  %3092 = vmatmul.bf16.gmra.mxu3 %v6484_v61  ;;  %vm2453_vm10 = vcmp.ge.f32.partialorder %v2156_v4, 0.0 }
 0x445   : > { %v2709_v46 = vsel %vm2453_vm10, %v2156_v4, %v2581_v0  ;;  %v6491_v4 = vld [vmem:[#allocation55_spill] sm:$0xff] }
 0x446   : > { %v2069_v1 = vpop.f32.mrf.mxu3  ;;  %3216 = vmatmul.bf16.gmra.mxu0 %v6487_v25  ;;  %3394 = vmatmul.bf16.gmra.mxu2 %v2786_v5  ;;  %v2785_v11 = vpack.c.bf16 %v2709_v46, %v2705_v39  ;;  %v6493_v0 = vpack.c.bf16 %v6491_v4, %v6492_v19  ;;  %v6042_v46 = vpop.f32.mrf.mxu1 }
 0x447   : > { %v2070_v38 = vadd.f32 %v2069_v1, %v5684_v37  ;;  %v2342_v1 = vadd.f32 %v5908_v54, %v2253_v59  ;;  %v6047_v26 = vpop.f32.mrf.mxu0  ;;  %v6494_v54 = vld [vmem:[#allocation57_spill] sm:$0xff]  ;;  %v6501_v59 = vld [vmem:[#allocation59_spill] sm:$0xff] }
 0x448   : > { %3305 = vmatmul.bf16.gmra.mxu1 %v2785_v11 }
 0x449   : > { %v2159_v31 = vadd.f32 %v5870_v22, %v2070_v38  ;;  %v2714_v22 = vsel %vm2458_vm12, %v2337_v17, %v2586_v53  ;;  %v6036_v61 = vpop.f32.mrf.mxu2  ;;  %v2594_v25 = vmul.f32 0.2, %v2342_v1  ;;  %vm2466_vm15 = vcmp.ge.f32.partialorder %v2342_v1, 0.0  ;;  %v6495_v17 = vld [vmem:[#allocation56_spill] sm:$0xff] }
 0x44a   : > { %v2790_v63 = vpack.c.bf16 %v2718_v12, %v2714_v22  ;;  %v6496_v51 = vpack.c.bf16 %v6494_v54, %v6495_v17  ;;  %v6498_v12 = vld [vmem:[#allocation11_spill] sm:$0xff] }
 0x44b   : > { %v2585_v2 = vmul.f32 0.2, %v2159_v31  ;;  %vm2457_vm4 = vcmp.ge.f32.partialorder %v2159_v31, 0.0 }
 0x44d   : > { %v2713_v55 = vsel %vm2457_vm4, %v2159_v31, %v2585_v2 }
 0x44e   : > { %v2071_v56 = vpop.f32.mrf.mxu3  ;;  %v6055_v31 = vpop.f32.mrf.mxu1 }
 0x44f   : > { %v2072_v34 = vadd.f32 %v2071_v56, %v5684_v37 }
 0x451   : > { %v2161_v15 = vadd.f32 %v5889_v40, %v2072_v34  ;;  %v2255_v40 = vadd.f32 %v5927_v45, %v5431_v9  ;;  %v6050_v24 = vpop.f32.mrf.mxu2 }
 0x453   : > { %v2589_v43 = vmul.f32 0.2, %v2161_v15  ;;  %3097 = vmatmul.bf16.gmra.mxu3 %v6490_v30  ;;  %vm2461_vm13 = vcmp.ge.f32.partialorder %v2161_v15, 0.0  ;;  %v2344_v5 = vadd.f32 %v5922_v3, %v2255_v40  ;;  %v2349_v30 = vadd.f32 %v5953_v13, %v2260_v16  ;;  %v6500_v40 = vld [vmem:[#allocation60_spill] sm:$0xff] }
 0x455   : > { %v2717_v50 = vsel %vm2461_vm13, %v2161_v15, %v2589_v43  ;;  %v2598_v48 = vmul.f32 0.2, %v2344_v5  ;;  %vm2470_vm14 = vcmp.ge.f32.partialorder %v2344_v5, 0.0  ;;  %v6497_v15 = vld [vmem:[#allocation58_spill] sm:$0xff]  ;;  %vm2478_vm2 = vcmp.ge.f32.partialorder %v2349_v30, 0.0 }
 0x456   : > { %v2074_v49 = vpop.f32.mrf.mxu3  ;;  %3221 = vmatmul.bf16.gmra.mxu0 %v6493_v0  ;;  %3399 = vmatmul.bf16.gmra.mxu2 %v2790_v63  ;;  %v2789_v47 = vpack.c.bf16 %v2717_v50, %v2713_v55  ;;  %v2347_v63 = vadd.f32 %v5941_v41, %v2258_v28  ;;  %v6067_v55 = vpop.f32.mrf.mxu0 }
 0x457   : > { %v2075_v39 = vadd.f32 %v2074_v49, %v5684_v37  ;;  %v2726_v10 = vsel %vm2470_vm14, %v2344_v5, %v2598_v48  ;;  %v2606_v49 = vmul.f32 0.2, %v2349_v30  ;;  %v6072_v19 = vpop.f32.mrf.mxu1  ;;  %v6502_v5 = vpack.c.bf16 %v6500_v40, %v6501_v59 }
 0x458   : > { %3310 = vmatmul.bf16.gmra.mxu1 %v2789_v47  ;;  %v2602_v0 = vmul.f32 0.2, %v2347_v63  ;;  %vm2474_vm3 = vcmp.ge.f32.partialorder %v2347_v63, 0.0 }
 0x459   : > { %v2164_v18 = vadd.f32 %v5906_v58, %v2075_v39  ;;  %v2722_v58 = vsel %vm2466_vm15, %v2342_v1, %v2594_v25  ;;  %v6069_v50 = vpop.f32.mrf.mxu2  ;;  %v2734_v47 = vsel %vm2478_vm2, %v2349_v30, %v2606_v49  ;;  %v6503_v25 = vld [vmem:[#allocation61_spill] sm:$0xff] }
 0x45a   : > { %v2794_v56 = vpack.c.bf16 %v2726_v10, %v2722_v58  ;;  %v2730_v39 = vsel %vm2474_vm3, %v2347_v63, %v2602_v0 }
 0x45b   : > { %v2593_v57 = vmul.f32 0.2, %v2164_v18  ;;  %vm2465_vm0 = vcmp.ge.f32.partialorder %v2164_v18, 0.0 }
 0x45d   : > { %v2721_v53 = vsel %vm2465_vm0, %v2164_v18, %v2593_v57 }
 0x45e   : > { %v2076_v45 = vpop.f32.mrf.mxu3  ;;  %v6084_v1 = vpop.f32.mrf.mxu0 }
 0x45f   : > { %v2077_v11 = vadd.f32 %v2076_v45, %v5684_v37 }
 0x461   : > { %v2166_v3 = vadd.f32 %v5919_v20, %v2077_v11  ;;  %v6499_v20 = vpack.c.bf16 %v6497_v15, %v6498_v12  ;;  %v6086_v18 = vpop.f32.mrf.mxu2  ;;  %v6504_v11 = vld [vmem:[#allocation12_spill] sm:$0xff]  ;;  %v6507_v15 = vld [vmem:[#allocation62_spill] sm:$0xff] }
 0x462   : > { %v6505_v57 = vpack.c.bf16 %v6503_v25, %v6504_v11 }
 0x463   : > { %v2597_v38 = vmul.f32 0.2, %v2166_v3  ;;  %3102 = vmatmul.bf16.gmra.mxu3 %v6496_v51  ;;  %vm2469_vm1 = vcmp.ge.f32.partialorder %v2166_v3, 0.0 }
 0x465   : > { %v2725_v34 = vsel %vm2469_vm1, %v2166_v3, %v2597_v38  ;;  %v6092_v38 = vpop.f32.mrf.mxu1 }
 0x466   : > { %v2079_v2 = vpop.f32.mrf.mxu3  ;;  %3226 = vmatmul.bf16.gmra.mxu0 %v6499_v20  ;;  %3404 = vmatmul.bf16.gmra.mxu2 %v2794_v56  ;;  %v2793_v43 = vpack.c.bf16 %v2725_v34, %v2721_v53  ;;  %v6112_v30 = vpop.f32.mrf.mxu0 }
 0x467   : > { %v2080_v22 = vadd.f32 %v2079_v2, %v5684_v37 }
 0x468   : > { %3315 = vmatmul.bf16.gmra.mxu1 %v2793_v43 }
 0x469   : > { %v2169_v4 = vadd.f32 %v5939_v36, %v2080_v22  ;;  %v6082_v36 = vld [vmem:[%s6276_s8] ss:$0 sm:$0xff]  ;;  %v6119_v49 = vpop.f32.mrf.mxu2 }
 0x46b   : > { %v2601_v32 = vmul.f32 0.2, %v2169_v4  ;;  %vm2473_vm5 = vcmp.ge.f32.partialorder %v2169_v4, 0.0 }
 0x46d   : > { %v6116_v22 = vpop.f32.mrf.mxu1 }
 0x46e   : > { %v2081_v44 = vpop.f32.mrf.mxu3 }
 0x46f   : > { %v2082_v9 = vadd.f32 %v2081_v44, %v5684_v37  ;;  %v2798_v37 = vpack.c.bf16 %v2734_v47, %v2730_v39  ;;  %v6128_v47 = vpop.f32.mrf.mxu0 }
 0x471   : > { %v2171_v13 = vadd.f32 %v5951_v7, %v2082_v9  ;;  %v2729_v7 = vsel %vm2473_vm5, %v2169_v4, %v2601_v32  ;;  %v6509_v32 = vld [vmem:[#allocation64_spill] sm:$0xff] }
 0x473   : > { %v2605_v41 = vmul.f32 0.2, %v2171_v13  ;;  %3107 = vmatmul.bf16.gmra.mxu3 %v6502_v5  ;;  %vm2477_vm6 = vcmp.ge.f32.partialorder %v2171_v13, 0.0 }
 0x475   : > { %v2733_v48 = vsel %vm2477_vm6, %v2171_v13, %v2605_v41  ;;  %v6131_v41 = vpop.f32.mrf.mxu1 }
 0x476   : > { %v3068_v45 = vpop.f32.mrf.mxu3  ;;  %3231 = vmatmul.bf16.gmra.mxu0 %v6505_v57  ;;  %3409 = vmatmul.bf16.gmra.mxu2 %v2798_v37  ;;  %v2797_v3 = vpack.c.bf16 %v2733_v48, %v2729_v7 }
 0x477   : > { %v3069_v10 = vadd.f32 %v6082_v36, %v3068_v45  ;;  %v6140_v48 = vpop.f32.mrf.mxu0 }
 0x478   : > { %3320 = vmatmul.bf16.gmra.mxu1 %v2797_v3 }
 0x479   : > { %v3158_v54 = vadd.f32 %v5968_v42, %v3069_v10 }
 0x47b   : > { %v3247_v17 = vadd.f32 %v5974_v27, %v3158_v54  ;;  %v6506_v27 = vld [vmem:[#allocation63_spill] sm:$0xff] }
 0x47c   : > { %v6508_v12 = vpack.c.bf16 %v6506_v27, %v6507_v15 }
 0x47d   : > { %v3336_v51 = vadd.f32 %v5971_v33, %v3247_v17  ;;  %v6143_v11 = vpop.f32.mrf.mxu1 }
 0x47e   : > { %v3070_v58 = vpop.f32.mrf.mxu3 }
 0x47f   : > { %vm3415_vm7 = vcmp.ge.f32.partialorder %v3336_v51, 0.0  ;;  %v3447_v56 = vmul.f32 0.2, %v3336_v51  ;;  %v3071_v53 = vadd.f32 %v6082_v36, %v3070_v58 }
 0x481   : > { %v3479_v34 = vsel %vm3415_vm7, %v3336_v51, %v3447_v56  ;;  %v3160_v2 = vadd.f32 %v5987_v6, %v3071_v53  ;;  %v3184_v53 = vpop.f32.mrf.mxu0 }
 0x482   : > { %3511 = vst [vmem:[%s6102_s27] sm:$0xff] %v3479_v34 }
 0x483   : > { %v3249_v42 = vadd.f32 %v5993_v29, %v3160_v2  ;;  %3112 = vmatmul.bf16.gmra.mxu3 %v6508_v12 }
 0x485   : > { %v3338_v33 = vadd.f32 %v5990_v23, %v3249_v42  ;;  %v3273_v2 = vpop.f32.mrf.mxu1 }
 0x486   : > { %v3073_v20 = vpop.f32.mrf.mxu3 }
 0x487   : > { %vm3416_vm8 = vcmp.ge.f32.partialorder %v3338_v33, 0.0  ;;  %v3448_v43 = vmul.f32 0.2, %v3338_v33  ;;  %v3074_v16 = vadd.f32 %v6082_v36, %v3073_v20 }
 0x489   : > { %v3480_v6 = vsel %vm3416_vm8, %v3338_v33, %v3448_v43  ;;  %v3163_v28 = vadd.f32 %v5998_v60, %v3074_v16  ;;  %v3187_v43 = vpop.f32.mrf.mxu0  ;;  %v6515_v16 = vld [vmem:[#allocation66_spill] sm:$0xff] }
 0x48a   : > { %3512 = vst [vmem:[%s6102_s27 + $0x8] sm:$0xff] %v3480_v6  ;;  %v6516_v6 = vld [vmem:[#allocation15_spill] sm:$0xff] }
 0x48b   : > { %v3252_v29 = vadd.f32 %v6005_v8, %v3163_v28  ;;  %v6510_v8 = vld [vmem:[#allocation13_spill] sm:$0xff]  ;;  %v6517_v28 = vpack.c.bf16 %v6515_v16, %v6516_v6 }
 0x48c   : > { %v6511_v13 = vpack.c.bf16 %v6509_v32, %v6510_v8 }
 0x48d   : > { %v3341_v63 = vadd.f32 %v6003_v52, %v3252_v29 }
 0x48e   : > { %v3075_v23 = vpop.f32.mrf.mxu3 }
 0x48f   : > { %vm3417_vm9 = vcmp.ge.f32.partialorder %v3341_v63, 0.0  ;;  %v3449_v4 = vmul.f32 0.2, %v3341_v63  ;;  %v3076_v44 = vadd.f32 %v6082_v36, %v3075_v23 }
 0x491   : > { %v3481_v0 = vsel %vm3417_vm9, %v3341_v63, %v3449_v4  ;;  %v3165_v60 = vadd.f32 %v6017_v62, %v3076_v44  ;;  %v6134_v62 = vpop.f32.mrf.mxu2 }
 0x492   : > { %3513 = vst [vmem:[%s6102_s27 + $0x10] sm:$0xff] %v3481_v0  ;;  %v3189_v0 = vpop.f32.mrf.mxu0 }
 0x493   : > { %v3254_v9 = vadd.f32 %v6023_v14, %v3165_v60  ;;  %3117 = vmatmul.bf16.gmra.mxu3 %v6511_v13 }
 0x495   : > { %v3343_v52 = vadd.f32 %v6020_v35, %v3254_v9 }
 0x496   : > { %v3078_v40 = vpop.f32.mrf.mxu3 }
 0x497   : > { %vm3418_vm10 = vcmp.ge.f32.partialorder %v3343_v52, 0.0  ;;  %v3450_v59 = vmul.f32 0.2, %v3343_v52  ;;  %v3079_v5 = vadd.f32 %v6082_v36, %v3078_v40 }
 0x499   : > { %v3482_v39 = vsel %vm3418_vm10, %v3343_v52, %v3450_v59  ;;  %v3168_v14 = vadd.f32 %v6034_v21, %v3079_v5  ;;  %v6146_v10 = vpop.f32.mrf.mxu2  ;;  %v6518_v59 = vld [vmem:[#allocation67_spill] sm:$0xff]  ;;  %v6519_v5 = vld [vmem:[#allocation24_spill] sm:$0xff] }
 0x49a   : > { %3514 = vst [vmem:[%s6102_s27 + $0x18] sm:$0xff] %v3482_v39  ;;  %v3192_v39 = vpop.f32.mrf.mxu0 }
 0x49b   : > { %v3257_v37 = vadd.f32 %v6042_v46, %v3168_v14  ;;  %v6512_v46 = vld [vmem:[#allocation65_spill] sm:$0xff] }
 0x49d   : > { %v3346_v7 = vadd.f32 %v6036_v61, %v3257_v37  ;;  %v6513_v61 = vld [vmem:[#allocation14_spill] sm:$0xff] }
 0x49e   : > { %v3080_v35 = vpop.f32.mrf.mxu3  ;;  %v6514_v54 = vpack.c.bf16 %v6512_v46, %v6513_v61 }
 0x49f   : > { %vm3419_vm11 = vcmp.ge.f32.partialorder %v3346_v7, 0.0  ;;  %v3451_v45 = vmul.f32 0.2, %v3346_v7  ;;  %v3081_v25 = vadd.f32 %v6082_v36, %v3080_v35 }
 0x4a1   : > { %v3483_v57 = vsel %vm3419_vm11, %v3346_v7, %v3451_v45  ;;  %v3170_v3 = vadd.f32 %v6047_v26, %v3081_v25  ;;  %v3362_v42 = vpop.f32.mrf.mxu2 }
 0x4a2   : > { %3515 = vst [vmem:[%s6102_s27 + $0x20] sm:$0xff] %v3483_v57  ;;  %v3194_v46 = vpop.f32.mrf.mxu0 }
 0x4a3   : > { %v3259_v21 = vadd.f32 %v6055_v31, %v3170_v3  ;;  %3122 = vmatmul.bf16.gmra.mxu3 %v6514_v54 }
 0x4a5   : > { %v3348_v17 = vadd.f32 %v6050_v24, %v3259_v21 }
 0x4a6   : > { %v3083_v51 = vpop.f32.mrf.mxu3 }
 0x4a7   : > { %vm3420_vm12 = vcmp.ge.f32.partialorder %v3348_v17, 0.0  ;;  %v3452_v58 = vmul.f32 0.2, %v3348_v17  ;;  %v3084_v56 = vadd.f32 %v6082_v36, %v3083_v51 }
 0x4a9   : > { %v3484_v34 = vsel %vm3420_vm12, %v3348_v17, %v3452_v58  ;;  %v3173_v26 = vadd.f32 %v6067_v55, %v3084_v56  ;;  %v3365_v29 = vpop.f32.mrf.mxu2  ;;  %v6521_v58 = vld [vmem:[#allocation68_spill] sm:$0xff] }
 0x4aa   : > { %3516 = vst [vmem:[%s6102_s27 + $0x28] sm:$0xff] %v3484_v34 }
 0x4ab   : > { %v3262_v31 = vadd.f32 %v6072_v19, %v3173_v26  ;;  %v3276_v19 = vpop.f32.mrf.mxu1 }
 0x4ad   : > { %v3351_v27 = vadd.f32 %v6069_v50, %v3262_v31 }
 0x4ae   : > { %v3085_v15 = vpop.f32.mrf.mxu3 }
 0x4af   : > { %vm3421_vm4 = vcmp.ge.f32.partialorder %v3351_v27, 0.0  ;;  %v3453_v24 = vmul.f32 0.2, %v3351_v27  ;;  %v3086_v12 = vadd.f32 %v6082_v36, %v3085_v15 }
 0x4b1   : > { %v3485_v33 = vsel %vm3421_vm4, %v3351_v27, %v3453_v24  ;;  %v3175_v20 = vadd.f32 %v6084_v1, %v3086_v12  ;;  %v3367_v13 = vpop.f32.mrf.mxu2  ;;  %v3197_v24 = vpop.f32.mrf.mxu0 }
 0x4b2   : > { %3517 = vst [vmem:[%s6102_s27 + $0x30] sm:$0xff] %v3485_v33 }
 0x4b3   : > { %v3264_v55 = vadd.f32 %v6092_v38, %v3175_v20  ;;  %3127 = vmatmul.bf16.gmra.mxu3 %v6517_v28  ;;  %v3278_v9 = vpop.f32.mrf.mxu1 }
 0x4b5   : > { %v3353_v50 = vadd.f32 %v6086_v18, %v3264_v55 }
 0x4b6   : > { %v3088_v63 = vpop.f32.mrf.mxu3 }
 0x4b7   : > { %vm3422_vm13 = vcmp.ge.f32.partialorder %v3353_v50, 0.0  ;;  %v3454_v23 = vmul.f32 0.2, %v3353_v50  ;;  %v3089_v4 = vadd.f32 %v6082_v36, %v3088_v63  ;;  %v6525_v63 = vld [vmem:[#allocation69_spill] sm:$0xff] }
 0x4b9   : > { %v3486_v44 = vsel %vm3422_vm13, %v3353_v50, %v3454_v23  ;;  %v3178_v1 = vadd.f32 %v6112_v30, %v3089_v4  ;;  %v3370_v25 = vpop.f32.mrf.mxu2  ;;  %v6524_v50 = vld [vmem:[#allocation70_spill] sm:$0xff] }
 0x4ba   : > { %3518 = vst [vmem:[%s6102_s27 + $0x38] sm:$0xff] %v3486_v44  ;;  %v6526_v23 = vpack.c.bf16 %v6524_v50, %v6525_v63 }
 0x4bb   : > { %v3267_v38 = vadd.f32 %v6116_v22, %v3178_v1  ;;  %v6520_v22 = vpack.c.bf16 %v6518_v59, %v6519_v5  ;;  %v3281_v35 = vpop.f32.mrf.mxu1 }
 0x4bd   : > { %v3356_v60 = vadd.f32 %v6119_v49, %v3267_v38 }
 0x4be   : > { %v3090_v32 = vpop.f32.mrf.mxu3 }
 0x4bf   : > { %vm3423_vm14 = vcmp.ge.f32.partialorder %v3356_v60, 0.0  ;;  %v3455_v18 = vmul.f32 0.2, %v3356_v60  ;;  %v3091_v8 = vadd.f32 %v6082_v36, %v3090_v32 }
 0x4c1   : > { %v3487_v52 = vsel %vm3423_vm14, %v3356_v60, %v3455_v18  ;;  %v3180_v40 = vadd.f32 %v6128_v47, %v3091_v8  ;;  %v3372_v34 = vpop.f32.mrf.mxu2 }
 0x4c2   : > { %3519 = vst [vmem:[%s6102_s27 + $0x40] sm:$0xff] %v3487_v52 }
 0x4c3   : > { %v3269_v30 = vadd.f32 %v6131_v41, %v3180_v40  ;;  %3132 = vmatmul.bf16.gmra.mxu3 %v6520_v22  ;;  %v3283_v17 = vpop.f32.mrf.mxu1 }
 0x4c5   : > { %v3358_v49 = vadd.f32 %v6134_v62, %v3269_v30 }
 0x4c6   : > { %v3093_v14 = vpop.f32.mrf.mxu3 }
 0x4c7   : > { %vm3424_vm15 = vcmp.ge.f32.partialorder %v3358_v49, 0.0  ;;  %v3456_v37 = vmul.f32 0.2, %v3358_v49  ;;  %v3094_v7 = vadd.f32 %v6082_v36, %v3093_v14 }
 0x4c9   : > { %v3488_v45 = vsel %vm3424_vm15, %v3358_v49, %v3456_v37  ;;  %v3183_v47 = vadd.f32 %v6140_v48, %v3094_v7  ;;  %v6522_v48 = vld [vmem:[#allocation27_spill] sm:$0xff] }
 0x4ca   : > { %3520 = vst [vmem:[%s6102_s27 + $0x48] sm:$0xff] %v3488_v45  ;;  %v6523_v56 = vpack.c.bf16 %v6521_v58, %v6522_v48 }
 0x4cb   : > { %v3272_v41 = vadd.f32 %v6143_v11, %v3183_v47  ;;  %v3286_v12 = vpop.f32.mrf.mxu1 }
 0x4cd   : > { %v3361_v57 = vadd.f32 %v6146_v10, %v3272_v41 }
 0x4ce   : > { %v3095_v3 = vpop.f32.mrf.mxu3 }
 0x4cf   : > { %vm3425_vm0 = vcmp.ge.f32.partialorder %v3361_v57, 0.0  ;;  %v3457_v62 = vmul.f32 0.2, %v3361_v57  ;;  %v3096_v21 = vadd.f32 %v6082_v36, %v3095_v3 }
 0x4d1   : > { %v3489_v61 = vsel %vm3425_vm0, %v3361_v57, %v3457_v62  ;;  %v3185_v54 = vadd.f32 %v3184_v53, %v3096_v21 }
 0x4d2   : > { %3521 = vst [vmem:[%s6102_s27 + $0x50] sm:$0xff] %v3489_v61 }
 0x4d3   : > { %v3274_v51 = vadd.f32 %v3273_v2, %v3185_v54  ;;  %3137 = vmatmul.bf16.gmra.mxu3 %v6523_v56  ;;  %v3375_v2 = vpop.f32.mrf.mxu2 }
 0x4d5   : > { %v3363_v11 = vadd.f32 %v3362_v42, %v3274_v51 }
 0x4d6   : > { %v3098_v26 = vpop.f32.mrf.mxu3 }
 0x4d7   : > { %vm3426_vm1 = vcmp.ge.f32.partialorder %v3363_v11, 0.0  ;;  %v3458_v10 = vmul.f32 0.2, %v3363_v11  ;;  %v3099_v31 = vadd.f32 %v6082_v36, %v3098_v26 }
 0x4d9   : > { %v3490_v27 = vsel %vm3426_vm1, %v3363_v11, %v3458_v10  ;;  %v3188_v15 = vadd.f32 %v3187_v43, %v3099_v31  ;;  %v3199_v43 = vpop.f32.mrf.mxu0 }
 0x4da   : > { %3522 = vst [vmem:[%s6102_s27 + $0x58] sm:$0xff] %v3490_v27 }
 0x4db   : > { %v3277_v53 = vadd.f32 %v3276_v19, %v3188_v15  ;;  %v3288_v19 = vpop.f32.mrf.mxu1  ;;  %v3377_v38 = vpop.f32.mrf.mxu2 }
 0x4dd   : > { %v3366_v33 = vadd.f32 %v3365_v29, %v3277_v53 }
 0x4de   : > { %v3100_v20 = vpop.f32.mrf.mxu3 }
 0x4df   : > { %vm3427_vm2 = vcmp.ge.f32.partialorder %v3366_v33, 0.0  ;;  %v3459_v55 = vmul.f32 0.2, %v3366_v33  ;;  %v3101_v16 = vadd.f32 %v6082_v36, %v3100_v20 }
 0x4e1   : > { %v3491_v42 = vsel %vm3427_vm2, %v3366_v33, %v3459_v55  ;;  %v3190_v6 = vadd.f32 %v3189_v0, %v3101_v16 }
 0x4e2   : > { %3523 = vst [vmem:[%s6102_s27 + $0x60] sm:$0xff] %v3491_v42 }
 0x4e3   : > { %v3279_v28 = vadd.f32 %v3278_v9, %v3190_v6  ;;  %3142 = vmatmul.bf16.gmra.mxu3 %v6526_v23  ;;  %v3202_v9 = vpop.f32.mrf.mxu0  ;;  %v3380_v5 = vpop.f32.mrf.mxu2 }
 0x4e5   : > { %v3368_v4 = vadd.f32 %v3367_v13, %v3279_v28  ;;  %v3291_v13 = vpop.f32.mrf.mxu1 }
 0x4e6   : > { %v3103_v44 = vpop.f32.mrf.mxu3 }
 0x4e7   : > { %vm3428_vm3 = vcmp.ge.f32.partialorder %v3368_v4, 0.0  ;;  %v3460_v29 = vmul.f32 0.2, %v3368_v4  ;;  %v3104_v1 = vadd.f32 %v6082_v36, %v3103_v44 }
 0x4e9   : > { %v3492_v60 = vsel %vm3428_vm3, %v3368_v4, %v3460_v29  ;;  %v3193_v32 = vadd.f32 %v3192_v39, %v3104_v1 }
 0x4ea   : > { %3524 = vst [vmem:[%s6102_s27 + $0x68] sm:$0xff] %v3492_v60 }
 0x4eb   : > { %v3282_v0 = vadd.f32 %v3281_v35, %v3193_v32  ;;  %v3204_v7 = vpop.f32.mrf.mxu0  ;;  %v3382_v41 = vpop.f32.mrf.mxu2 }
 0x4ed   : > { %v3371_v18 = vadd.f32 %v3370_v25, %v3282_v0  ;;  %v3293_v47 = vpop.f32.mrf.mxu1 }
 0x4ee   : > { %v3105_v8 = vpop.f32.mrf.mxu3 }
 0x4ef   : > { %vm3429_vm5 = vcmp.ge.f32.partialorder %v3371_v18, 0.0  ;;  %v3461_v52 = vmul.f32 0.2, %v3371_v18  ;;  %v3106_v40 = vadd.f32 %v6082_v36, %v3105_v8 }
 0x4f1   : > { %v3493_v30 = vsel %vm3429_vm5, %v3371_v18, %v3461_v52  ;;  %v3195_v59 = vadd.f32 %v3194_v46, %v3106_v40 }
 0x4f2   : > { %3525 = vst [vmem:[%s6102_s27 + $0x70] sm:$0xff] %v3493_v30 }
 0x4f3   : > { %v3284_v22 = vadd.f32 %v3283_v17, %v3195_v59  ;;  %v3207_v54 = vpop.f32.mrf.mxu0  ;;  %v3385_v48 = vpop.f32.mrf.mxu2 }
 0x4f5   : > { %v3373_v49 = vadd.f32 %v3372_v34, %v3284_v22  ;;  %v3296_v51 = vpop.f32.mrf.mxu1 }
 0x4f6   : > { %v3108_v14 = vpop.f32.mrf.mxu3 }
 0x4f7   : > { %vm3430_vm6 = vcmp.ge.f32.partialorder %v3373_v49, 0.0  ;;  %v3462_v39 = vmul.f32 0.2, %v3373_v49  ;;  %v3109_v37 = vadd.f32 %v6082_v36, %v3108_v14 }
 0x4f9   : > { %v3494_v35 = vsel %vm3430_vm6, %v3373_v49, %v3462_v39  ;;  %v3198_v45 = vadd.f32 %v3197_v24, %v3109_v37 }
 0x4fa   : > { %3526 = vst [vmem:[%s6102_s27 + $0x78] sm:$0xff] %v3494_v35 }
 0x4fb   : > { %v3287_v25 = vadd.f32 %v3286_v12, %v3198_v45  ;;  %v3209_v27 = vpop.f32.mrf.mxu0 }
 0x4fd   : > { %v3376_v57 = vadd.f32 %v3375_v2, %v3287_v25  ;;  %v3298_v24 = vpop.f32.mrf.mxu1  ;;  %v3387_v2 = vpop.f32.mrf.mxu2 }
 0x4fe   : > { %v3110_v3 = vpop.f32.mrf.mxu3 }
 0x4ff   : > { %vm3431_vm7 = vcmp.ge.f32.partialorder %v3376_v57, 0.0  ;;  %v3463_v62 = vmul.f32 0.2, %v3376_v57  ;;  %v3111_v21 = vadd.f32 %v6082_v36, %v3110_v3 }
 0x501   : > { %v3495_v46 = vsel %vm3431_vm7, %v3376_v57, %v3463_v62  ;;  %v3200_v61 = vadd.f32 %v3199_v43, %v3111_v21 }
 0x502   : > { %3527 = vst [vmem:[%s6102_s27 + $0x80] sm:$0xff] %v3495_v46 }
 0x503   : > { %v3289_v17 = vadd.f32 %v3288_v19, %v3200_v61  ;;  %v3212_v6 = vpop.f32.mrf.mxu0 }
 0x505   : > { %v3378_v58 = vadd.f32 %v3377_v38, %v3289_v17  ;;  %v3301_v23 = vpop.f32.mrf.mxu1  ;;  %v3390_v19 = vpop.f32.mrf.mxu2 }
 0x506   : > { %v3113_v56 = vpop.f32.mrf.mxu3 }
 0x507   : > { %vm3432_vm8 = vcmp.ge.f32.partialorder %v3378_v58, 0.0  ;;  %v3464_v34 = vmul.f32 0.2, %v3378_v58  ;;  %v3114_v11 = vadd.f32 %v6082_v36, %v3113_v56 }
 0x509   : > { %v3496_v26 = vsel %vm3432_vm8, %v3378_v58, %v3464_v34  ;;  %v3203_v10 = vadd.f32 %v3202_v9, %v3114_v11 }
 0x50a   : > { %3528 = vst [vmem:[%s6102_s27 + $0x88] sm:$0xff] %v3496_v26 }
 0x50b   : > { %v3292_v31 = vadd.f32 %v3291_v13, %v3203_v10  ;;  %v3214_v32 = vpop.f32.mrf.mxu0 }
 0x50d   : > { %v3381_v15 = vadd.f32 %v3380_v5, %v3292_v31  ;;  %v3303_v9 = vpop.f32.mrf.mxu1  ;;  %v3392_v52 = vpop.f32.mrf.mxu2 }
 0x50e   : > { %v3115_v53 = vpop.f32.mrf.mxu3 }
 0x50f   : > { %vm3433_vm9 = vcmp.ge.f32.partialorder %v3381_v15, 0.0  ;;  %v3465_v12 = vmul.f32 0.2, %v3381_v15  ;;  %v3116_v33 = vadd.f32 %v6082_v36, %v3115_v53 }
 0x511   : > { %v3497_v20 = vsel %vm3433_vm9, %v3381_v15, %v3465_v12  ;;  %v3205_v55 = vadd.f32 %v3204_v7, %v3116_v33 }
 0x512   : > { %3529 = vst [vmem:[%s6102_s27 + $0x90] sm:$0xff] %v3497_v20 }
 0x513   : > { %v3294_v16 = vadd.f32 %v3293_v47, %v3205_v55  ;;  %v3217_v49 = vpop.f32.mrf.mxu0 }
 0x515   : > { %v3383_v42 = vadd.f32 %v3382_v41, %v3294_v16  ;;  %v3306_v39 = vpop.f32.mrf.mxu1  ;;  %v3395_v7 = vpop.f32.mrf.mxu2 }
 0x516   : > { %v3118_v28 = vpop.f32.mrf.mxu3 }
 0x517   : > { %vm3434_vm10 = vcmp.ge.f32.partialorder %v3383_v42, 0.0  ;;  %v3466_v50 = vmul.f32 0.2, %v3383_v42  ;;  %v3119_v63 = vadd.f32 %v6082_v36, %v3118_v28 }
 0x519   : > { %v3498_v43 = vsel %vm3434_vm10, %v3383_v42, %v3466_v50  ;;  %v3208_v4 = vadd.f32 %v3207_v54, %v3119_v63 }
 0x51a   : > { %3530 = vst [vmem:[%s6102_s27 + $0x98] sm:$0xff] %v3498_v43 }
 0x51b   : > { %v3297_v44 = vadd.f32 %v3296_v51, %v3208_v4  ;;  %v3219_v3 = vpop.f32.mrf.mxu0 }
 0x51d   : > { %v3386_v29 = vadd.f32 %v3385_v48, %v3297_v44  ;;  %v3308_v21 = vpop.f32.mrf.mxu1  ;;  %v3397_v17 = vpop.f32.mrf.mxu2 }
 0x51e   : > { %v3120_v1 = vpop.f32.mrf.mxu3 }
 0x51f   : > { %vm3435_vm11 = vcmp.ge.f32.partialorder %v3386_v29, 0.0  ;;  %v3467_v38 = vmul.f32 0.2, %v3386_v29  ;;  %v3121_v60 = vadd.f32 %v6082_v36, %v3120_v1 }
 0x521   : > { %v3499_v0 = vsel %vm3435_vm11, %v3386_v29, %v3467_v38  ;;  %v3210_v18 = vadd.f32 %v3209_v27, %v3121_v60 }
 0x522   : > { %3531 = vst [vmem:[%s6102_s27 + $0xa0] sm:$0xff] %v3499_v0 }
 0x523   : > { %v3299_v8 = vadd.f32 %v3298_v24, %v3210_v18  ;;  %v3222_v34 = vpop.f32.mrf.mxu0 }
 0x525   : > { %v3388_v40 = vadd.f32 %v3387_v2, %v3299_v8  ;;  %v3311_v31 = vpop.f32.mrf.mxu1  ;;  %v3400_v24 = vpop.f32.mrf.mxu2 }
 0x526   : > { %v3123_v13 = vpop.f32.mrf.mxu3 }
 0x527   : > { %vm3436_vm12 = vcmp.ge.f32.partialorder %v3388_v40, 0.0  ;;  %v3468_v30 = vmul.f32 0.2, %v3388_v40  ;;  %v3124_v59 = vadd.f32 %v6082_v36, %v3123_v13 }
 0x529   : > { %v3500_v5 = vsel %vm3436_vm12, %v3388_v40, %v3468_v30  ;;  %v3213_v22 = vadd.f32 %v3212_v6, %v3124_v59 }
 0x52a   : > { %3532 = vst [vmem:[%s6102_s27 + $0xa8] sm:$0xff] %v3500_v5 }
 0x52b   : > { %v3302_v14 = vadd.f32 %v3301_v23, %v3213_v22  ;;  %v3224_v55 = vpop.f32.mrf.mxu0 }
 0x52d   : > { %v3391_v37 = vadd.f32 %v3390_v19, %v3302_v14  ;;  %v3313_v6 = vpop.f32.mrf.mxu1  ;;  %v3402_v50 = vpop.f32.mrf.mxu2 }
 0x52e   : > { %v3125_v35 = vpop.f32.mrf.mxu3 }
 0x52f   : > { %vm3437_vm4 = vcmp.ge.f32.partialorder %v3391_v37, 0.0  ;;  %v3469_v45 = vmul.f32 0.2, %v3391_v37  ;;  %v3126_v47 = vadd.f32 %v6082_v36, %v3125_v35 }
 0x531   : > { %v3501_v25 = vsel %vm3437_vm4, %v3391_v37, %v3469_v45  ;;  %v3215_v41 = vadd.f32 %v3214_v32, %v3126_v47 }
 0x532   : > { %3533 = vst [vmem:[%s6102_s27 + $0xb0] sm:$0xff] %v3501_v25 }
 0x533   : > { %v3304_v57 = vadd.f32 %v3303_v9, %v3215_v41  ;;  %v3227_v29 = vpop.f32.mrf.mxu0 }
 0x535   : > { %v3393_v62 = vadd.f32 %v3392_v52, %v3304_v57  ;;  %v3316_v38 = vpop.f32.mrf.mxu1  ;;  %v3405_v32 = vpop.f32.mrf.mxu2 }
 0x536   : > { %v3128_v46 = vpop.f32.mrf.mxu3 }
 0x537   : > { %vm3438_vm13 = vcmp.ge.f32.partialorder %v3393_v62, 0.0  ;;  %v3470_v61 = vmul.f32 0.2, %v3393_v62  ;;  %v3129_v54 = vadd.f32 %v6082_v36, %v3128_v46 }
 0x539   : > { %v3502_v51 = vsel %vm3438_vm13, %v3393_v62, %v3470_v61  ;;  %v3218_v58 = vadd.f32 %v3217_v49, %v3129_v54 }
 0x53a   : > { %3534 = vst [vmem:[%s6102_s27 + $0xb8] sm:$0xff] %v3502_v51 }
 0x53b   : > { %v3307_v48 = vadd.f32 %v3306_v39, %v3218_v58  ;;  %v3229_v13 = vpop.f32.mrf.mxu0 }
 0x53d   : > { %v3396_v56 = vadd.f32 %v3395_v7, %v3307_v48  ;;  %v3318_v59 = vpop.f32.mrf.mxu1  ;;  %v3407_v14 = vpop.f32.mrf.mxu2 }
 0x53e   : > { %v3130_v11 = vpop.f32.mrf.mxu3 }
 0x53f   : > { %vm3439_vm14 = vcmp.ge.f32.partialorder %v3396_v56, 0.0  ;;  %v3471_v26 = vmul.f32 0.2, %v3396_v56  ;;  %v3131_v10 = vadd.f32 %v6082_v36, %v3130_v11 }
 0x541   : > { %v3503_v27 = vsel %vm3439_vm14, %v3396_v56, %v3471_v26  ;;  %v3220_v15 = vadd.f32 %v3219_v3, %v3131_v10 }
 0x542   : > { %3535 = vst [vmem:[%s6102_s27 + $0xc0] sm:$0xff] %v3503_v27 }
 0x543   : > { %v3309_v53 = vadd.f32 %v3308_v21, %v3220_v15  ;;  %v3232_v45 = vpop.f32.mrf.mxu0 }
 0x545   : > { %v3398_v12 = vadd.f32 %v3397_v17, %v3309_v53  ;;  %v3321_v57 = vpop.f32.mrf.mxu1  ;;  %v3410_v21 = vpop.f32.mrf.mxu2 }
 0x546   : > { %v3133_v33 = vpop.f32.mrf.mxu3 }
 0x547   : > { %vm3440_vm15 = vcmp.ge.f32.partialorder %v3398_v12, 0.0  ;;  %v3472_v2 = vmul.f32 0.2, %v3398_v12  ;;  %v3134_v20 = vadd.f32 %v6082_v36, %v3133_v33 }
 0x549   : > { %v3504_v16 = vsel %vm3440_vm15, %v3398_v12, %v3472_v2  ;;  %v3223_v42 = vadd.f32 %v3222_v34, %v3134_v20 }
 0x54a   : > { %3536 = vst [vmem:[%s6102_s27 + $0xc8] sm:$0xff] %v3504_v16 }
 0x54b   : > { %v3312_v28 = vadd.f32 %v3311_v31, %v3223_v42  ;;  %v3234_v58 = vpop.f32.mrf.mxu0 }
 0x54d   : > { %v3401_v63 = vadd.f32 %v3400_v24, %v3312_v28  ;;  %v3323_v34 = vpop.f32.mrf.mxu1  ;;  %v3412_v26 = vpop.f32.mrf.mxu2 }
 0x54e   : > { %v3135_v23 = vpop.f32.mrf.mxu3 }
 0x54f   : > { %vm3441_vm0 = vcmp.ge.f32.partialorder %v3401_v63, 0.0  ;;  %v3473_v43 = vmul.f32 0.2, %v3401_v63  ;;  %v3136_v4 = vadd.f32 %v6082_v36, %v3135_v23 }
 0x551   : > { %v3505_v19 = vsel %vm3441_vm0, %v3401_v63, %v3473_v43  ;;  %v3225_v44 = vadd.f32 %v3224_v55, %v3136_v4 }
 0x552   : > { %3537 = vst [vmem:[%s6102_s27 + $0xd0] sm:$0xff] %v3505_v19 }
 0x553   : > { %v3314_v1 = vadd.f32 %v3313_v6, %v3225_v44 }
 0x555   : > { %v3403_v60 = vadd.f32 %v3402_v50, %v3314_v1 }
 0x556   : > { %v3138_v0 = vpop.f32.mrf.mxu3 }
 0x557   : > { %vm3442_vm1 = vcmp.ge.f32.partialorder %v3403_v60, 0.0  ;;  %v3474_v18 = vmul.f32 0.2, %v3403_v60  ;;  %v3139_v9 = vadd.f32 %v6082_v36, %v3138_v0 }
 0x559   : > { %v3506_v8 = vsel %vm3442_vm1, %v3403_v60, %v3474_v18  ;;  %v3228_v52 = vadd.f32 %v3227_v29, %v3139_v9 }
 0x55a   : > { %3538 = vst [vmem:[%s6102_s27 + $0xd8] sm:$0xff] %v3506_v8 }
 0x55b   : > { %v3317_v40 = vadd.f32 %v3316_v38, %v3228_v52 }
 0x55d   : > { %v3406_v30 = vadd.f32 %v3405_v32, %v3317_v40 }
 0x55e   : > { %v3140_v5 = vpop.f32.mrf.mxu3 }
 0x55f   : > { %vm3443_vm2 = vcmp.ge.f32.partialorder %v3406_v30, 0.0  ;;  %v3475_v22 = vmul.f32 0.2, %v3406_v30  ;;  %v3141_v49 = vadd.f32 %v6082_v36, %v3140_v5 }
 0x561   : > { %v3507_v39 = vsel %vm3443_vm2, %v3406_v30, %v3475_v22  ;;  %v3230_v37 = vadd.f32 %v3229_v13, %v3141_v49 }
 0x562   : > { %3539 = vst [vmem:[%s6102_s27 + $0xe0] sm:$0xff] %v3507_v39 }
 0x563   : > { %v3319_v7 = vadd.f32 %v3318_v59, %v3230_v37 }
 0x565   : > { %v3408_v35 = vadd.f32 %v3407_v14, %v3319_v7 }
 0x566   : > { %v3143_v47 = vpop.f32.mrf.mxu3 }
 0x567   : > { %vm3444_vm3 = vcmp.ge.f32.partialorder %v3408_v35, 0.0  ;;  %v3476_v25 = vmul.f32 0.2, %v3408_v35  ;;  %v3144_v41 = vadd.f32 %v6082_v36, %v3143_v47 }
 0x569   : > { %v3508_v3 = vsel %vm3444_vm3, %v3408_v35, %v3476_v25  ;;  %v3233_v62 = vadd.f32 %v3232_v45, %v3144_v41 }
 0x56a   : > { %3540 = vst [vmem:[%s6102_s27 + $0xe8] sm:$0xff] %v3508_v3 }
 0x56b   : > { %v3322_v46 = vadd.f32 %v3321_v57, %v3233_v62 }
 0x56d   : > { %v3411_v61 = vadd.f32 %v3410_v21, %v3322_v46 }
 0x56e   : > { %v3145_v54 = vpop.f32.mrf.mxu3 }
 0x56f   : > { %vm3445_vm5 = vcmp.ge.f32.partialorder %v3411_v61, 0.0  ;;  %v3477_v17 = vmul.f32 0.2, %v3411_v61  ;;  %v3146_v51 = vadd.f32 %v6082_v36, %v3145_v54 }
 0x571   : > { %v3509_v48 = vsel %vm3445_vm5, %v3411_v61, %v3477_v17  ;;  %v3235_v56 = vadd.f32 %v3234_v58, %v3146_v51 }
 0x572   : > { %3541 = vst [vmem:[%s6102_s27 + $0xf0] sm:$0xff] %v3509_v48 }
 0x573   : > { %v3324_v11 = vadd.f32 %v3323_v34, %v3235_v56 }
 0x575   : > { %v3413_v10 = vadd.f32 %v3412_v26, %v3324_v11 }
 0x577   : > { %vm3446_vm6 = vcmp.ge.f32.partialorder %v3413_v10, 0.0  ;;  %v3478_v31 = vmul.f32 0.2, %v3413_v10 }
 0x579   : > { %v3510_v36 = vsel %vm3446_vm6, %v3413_v10, %v3478_v31 }
 0x57a   : > { %3542 = vst [vmem:[%s6102_s27 + $0xf8] sm:$0xff] %v3510_v36 }
 0x57b   : > { %4473 = shalt.err (!%p4470_p8)
}
 0x57c   : > { %s4524_s25 = smov 128   ;;  %s4525_s27 = smov 8  }
 0x57d   : > { %4325 = dma.vmem_to_hbm [thread:$0]  (%p4614_p5), %s3557_s17, 4096, %s3559_s13, %s3544_s22, %s4524_s25, %s4524_s25, %s4525_s27  }
 0x57e PF: > { %p4342_p9 = scmp.ge.s32.totalorder %s4516_s12, 2  ;;  %s3573_s14 = sand.u32 1, %s4504_s30  }
 0x57f   : > { %s3574_s16 = scalar_lea.sflag [#allocation4], %s3573_s14 }
 0x580   : > { %p4335_p10 = pnand %p4342_p9, %p4618_p6 }
 0x582   : > { %p4336_p11 = pneg %p4335_p10 }
 0x584   : > { %4499 = dma.done.wait (%p4336_p11), %s3574_s16, 4096  }
 0x585   : > { %4501 = vsyncadd (%p4336_p11), %s3574_s16, 4294963200  ;;  %p21_p12 = scmp.ge.s32.totalorder %s4601_s15, 4   ;;  %s6527_s30 = smov %s4508_s10 }
 0x586   : > { %s6528_s10 = smov %s4512_s11  ;;  %s6529_s11 = smov %s4612_s18 }
 0x587   : > { %s6530_s12 = smov %s4601_s15  ;;  %23 = sbr.rel (!%p21_p12) target bundleno = 7 (0x7), region = 100 }
 0x58c   :  { %3580 = vsyncpa [#allocation3], 1 }
 0x58d   :  { %3582 = vsyncpa [#allocation3 + $0x1], 1 }
 0x58e   :  { %3583 = vsyncpa [#allocation6], 1 }
 0x58f   :  { %3584 = vsyncpa [#allocation4], 1 }
 0x590   :  { %3586 = vsyncpa [#allocation4 + $0x1], 1 }

</bundles_post_ra>
